<compile_context>
chip_gen: v7x
topology: tpu7x:2x2x1
jax: 0.10.0
libtpu: 0.0.40
codegen_flags: <defaults>
</compile_context>

<pallas_src>
from functools import partial

import jax
import jax.numpy as jnp
from jax import lax
from jax.experimental import pallas as pl
from jax.experimental.pallas import tpu as pltpu

EPS = 1e-5
SINGLE_K_MAX = 4096            # largest contraction handled by the single-step kernel
TK_MULTI = 1024                # K tile for the grid-K accumulator kernel
VMEM_TILE_BUDGET = 10 * 1024 * 1024   # double-buffered block budget (fits v5e/v7x)
VMEM_LIMIT_BYTES = 32 * 1024 * 1024   # scoped VMEM limit (<= v7x default, > v5e default)

# TODO(synk): channel widths are the original ResNet-101/UNet widths divided by
# WIDTH_DIV (64->4, 256->16, ..., 4096->256) so the synthetic test stays small;
# the forward graph (ResNet-101 depths [3,4,23,3], bottleneck head, Up decoders,
# 1x1 out conv) is reproduced exactly otherwise.
WIDTH_DIV = 16


def _round_up(v, m):
    return (v + m - 1) // m * m


def _t3(v):
    return (v, v, v) if isinstance(v, int) else tuple(v)


def _pad_k(k):
    """Contraction-dim padding rule shared by weight construction and tiling."""
    k128 = _round_up(k, 128)
    return k128 if k128 <= SINGLE_K_MAX else _round_up(k, TK_MULTI)


def _choose_tiles(M, Kp, Np, *, has_res, out_bytes, multi_k):
    """Pick (TM, Mp, TN): TM | Mp, TM multiple of 16, double-buffered footprint
    under VMEM_TILE_BUDGET."""
    TN = 256 if Np % 256 == 0 else 128
    k_step = TK_MULTI if multi_k else Kp
    b_bytes = 2 * k_step * TN * 2                       # double-buffered B tile
    per_tm = 2 * (k_step * 2) + 2 * (TN * out_bytes)    # db A tile + db out tile
    if has_res:
        per_tm += 2 * TN * 2                            # db residual tile
    if multi_k:
        per_tm += TN * 4                                 # f32 scratch accumulator
    avail = max(VMEM_TILE_BUDGET - b_bytes, 256 * 1024)
    max_tm = max(16, min(512, (avail // per_tm) // 16 * 16))
    if M <= max_tm:
        mp = _round_up(M, 16)
        return mp, mp, TN
    for t in (512, 384, 256, 192, 128, 96, 64, 48, 32, 16):
        if t <= max_tm and M % t == 0:
            return t, M, TN
    return max_tm, _round_up(M, max_tm), TN


# ---------------------------------------------------------------------------
# Pallas kernels: fused conv matmul (+bias/ReLU/residual epilogue).
# ---------------------------------------------------------------------------
def _mm_single_kernel(a_ref, b_ref, c_ref, o_ref, *, relu):
    r = jnp.dot(a_ref[...], b_ref[...], preferred_element_type=jnp.float32)
    r = r + c_ref[...]
    if relu:
        r = jnp.maximum(r, 0.0)
    o_ref[...] = r.astype(o_ref.dtype)


def _mm_single_res_kernel(a_ref, b_ref, c_ref, r_ref, o_ref, *, relu):
    r = jnp.dot(a_ref[...], b_ref[...], preferred_element_type=jnp.float32)
    r = r + c_ref[...] + r_ref[...].astype(jnp.float32)
    if relu:
        r = jnp.maximum(r, 0.0)
    o_ref[...] = r.astype(o_ref.dtype)


def _mm_multi_kernel(a_ref, b_ref, c_ref, o_ref, acc_ref, *, relu):
    k = pl.program_id(2)

    @pl.when(k == 0)
    def _():
        acc_ref[...] = jnp.zeros_like(acc_ref)

    acc_ref[...] += jnp.dot(a_ref[...], b_ref[...],
                            preferred_element_type=jnp.float32)

    @pl.when(k == pl.num_programs(2) - 1)
    def _():
        r = acc_ref[...] + c_ref[...]
        if relu:
            r = jnp.maximum(r, 0.0)
        o_ref[...] = r.astype(o_ref.dtype)


def _mm_multi_res_kernel(a_ref, b_ref, c_ref, r_ref, o_ref, acc_ref, *, relu):
    k = pl.program_id(2)

    @pl.when(k == 0)
    def _():
        acc_ref[...] = jnp.zeros_like(acc_ref)

    acc_ref[...] += jnp.dot(a_ref[...], b_ref[...],
                            preferred_element_type=jnp.float32)

    @pl.when(k == pl.num_programs(2) - 1)
    def _():
        r = acc_ref[...] + c_ref[...] + r_ref[...].astype(jnp.float32)
        if relu:
            r = jnp.maximum(r, 0.0)
        o_ref[...] = r.astype(o_ref.dtype)


def matmul_fused(a, w, bias, residual=None, *, relu, out_dtype=jnp.bfloat16,
                 keep_padded_n=False):
    """[relu](a @ w + bias [+ residual]).

    a: (M, Kp) bf16 (K already aligned to w), w: (Kp, Np) bf16 pre-padded at
    build time, bias: unpadded (n,) f32.  Result is (M, n), or (M, Np) when
    keep_padded_n (padded columns are exactly 0 through the epilogue).
    """
    M, Kp = a.shape
    Kw, Np = w.shape
    assert Kp == Kw, (Kp, Kw)
    n = bias.shape[0]
    multi_k = Kp > SINGLE_K_MAX
    out_bytes = jnp.dtype(out_dtype).itemsize
    TM, Mp, TN = _choose_tiles(M, Kp, Np, has_res=residual is not None,
                               out_bytes=out_bytes, multi_k=multi_k)

    b_row = jnp.pad(bias.astype(jnp.float32), (0, Np - n)).reshape(1, Np)
    if Mp > M:
        a = jnp.pad(a, ((0, Mp - M), (0, 0)))
    args = [a, w, b_row]

    res = None
    if residual is not None:
        rM, rN = residual.shape
        assert rN <= Np, (rN, Np)
        if rM != Mp or rN != Np:      # usually a no-op (residuals carried padded)
            residual = jnp.pad(residual, ((0, Mp - rM), (0, Np - rN)))
        res = residual
        args.append(res)

    if not multi_k:
        # Whole contraction in one step: no scratch accumulator, no pl.when.
        grid = (Mp // TM, Np // TN)
        in_specs = [
            pl.BlockSpec((TM, Kp), lambda i, j: (i, 0)),
            pl.BlockSpec((Kp, TN), lambda i, j: (0, j)),
            pl.BlockSpec((1, TN), lambda i, j: (0, j)),
        ]
        if res is not None:
            in_specs.append(pl.BlockSpec((TM, TN), lambda i, j: (i, j)))
            kernel = partial(_mm_single_res_kernel, relu=relu)
        else:
            kernel = partial(_mm_single_kernel, relu=relu)
        out_spec = pl.BlockSpec((TM, TN), lambda i, j: (i, j))
        scratch = []
        dims = ("parallel", "parallel")
    else:
        assert Kp % TK_MULTI == 0, Kp
        grid = (Mp // TM, Np // TN, Kp // TK_MULTI)
        in_specs = [
            pl.BlockSpec((TM, TK_MULTI), lambda i, j, k: (i, k)),
            pl.BlockSpec((TK_MULTI, TN), lambda i, j, k: (k, j)),
            pl.BlockSpec((1, TN), lambda i, j, k: (0, j)),
        ]
        if res is not None:
            in_specs.append(pl.BlockSpec((TM, TN), lambda i, j, k: (i, j)))
            kernel = partial(_mm_multi_res_kernel, relu=relu)
        else:
            kernel = partial(_mm_multi_kernel, relu=relu)
        out_spec = pl.BlockSpec((TM, TN), lambda i, j, k: (i, j))
        scratch = [pltpu.VMEM((TM, TN), jnp.float32)]
        dims = ("parallel", "parallel", "arbitrary")

    flops = 2 * Mp * Kp * Np
    bytes_accessed = ((Mp * Kp + Kp * Np) * 2 + Np * 4 + Mp * Np * out_bytes
                      + (Mp * Np * 2 if res is not None else 0))

    out = pl.pallas_call(
        kernel,
        out_shape=jax.ShapeDtypeStruct((Mp, Np), out_dtype),
        grid_spec=pltpu.PrefetchScalarGridSpec(
            num_scalar_prefetch=0,
            grid=grid,
            in_specs=in_specs,
            out_specs=out_spec,
            scratch_shapes=scratch,
        ),
        compiler_params=pltpu.CompilerParams(
            dimension_semantics=dims,
            vmem_limit_bytes=VMEM_LIMIT_BYTES),
        cost_estimate=pl.CostEstimate(flops=flops, transcendentals=0,
                                      bytes_accessed=bytes_accessed),
    )(*args)

    need_col_slice = (not keep_padded_n) and Np > n
    if Mp > M or need_col_slice:
        out = out[:M, :(n if need_col_slice else Np)]
    return out


# ---------------------------------------------------------------------------
# Layer wrappers (glue: im2col extraction, pool separation, reshapes)
# ---------------------------------------------------------------------------
@partial(jax.jit, static_argnames=("ksize", "stride", "padding", "relu",
                                   "out_dtype", "keep_padded"))
def conv3d(x, w, bias, residual=None, *, ksize, stride, padding, relu,
           out_dtype=jnp.bfloat16, keep_padded=False):
    """x: (N, D, H, W, C) bf16 channels-last; w: (Kp, Np) pre-padded, BN-folded.

    C may exceed the real input-channel count (zero-padded carry) as long as the
    resulting im2col K does not exceed the weight's Kp (only valid for 1x1 convs).
    """
    kd, kh, kw = ksize
    sd, sh, sw = stride
    pd, ph, pw = padding
    N, D, H, W, C = x.shape
    Do = (D + 2 * pd - kd) // sd + 1
    Ho = (H + 2 * ph - kh) // sh + 1
    Wo = (W + 2 * pw - kw) // sw + 1
    Kp = w.shape[0]
    K = kd * kh * kw * C
    assert K <= Kp, (K, Kp)   # padded-channel inputs must only reach 1x1 convs

    xp = x if not (pd or ph or pw) else jnp.pad(
        x, ((0, 0), (pd, pd), (ph, ph), (pw, pw), (0, 0)))
    cols = []
    for i in range(kd):
        for j in range(kh):
            for l in range(kw):
                cols.append(xp[:, i:i + sd * (Do - 1) + 1:sd,
                               j:j + sh * (Ho - 1) + 1:sh,
                               l:l + sw * (Wo - 1) + 1:sw, :])
    if Kp > K:   # fold the MXU K-alignment padding into the im2col concat
        cols.append(jnp.zeros((N, Do, Ho, Wo, Kp - K), x.dtype))
    patches = cols[0] if len(cols) == 1 else jnp.concatenate(cols, axis=-1)
    a = patches.reshape(N * Do * Ho * Wo, Kp)
    res = None if residual is None else residual.reshape(N * Do * Ho * Wo, -1)
    out = matmul_fused(a, w, bias, res, relu=relu, out_dtype=out_dtype,
                       keep_padded_n=keep_padded)
    cout = w.shape[1] if keep_padded else bias.shape[0]
    return out.reshape(N, Do, Ho, Wo, cout)


@jax.jit
def conv_transpose3d_2x(x, w, bias):
    """ConvTranspose3d(kernel=2, stride=2); w: (Kp, Np) tap-major, bias: (Cout,).

    Input x may carry zero-padded channels up to Kp (1x1-like contraction)."""
    # TODO(synk): when loading real PyTorch (Cin, Cout, 2,2,2) weights the tap
    # permutation must match the interleave transpose below (synthetic weights
    # are self-consistent here).
    N, D, H, W, C = x.shape
    cout = bias.shape[0]
    Kp = w.shape[0]
    assert C <= Kp, (C, Kp)
    a = x.reshape(N * D * H * W, C)
    if Kp > C:
        a = jnp.concatenate(
            [a, jnp.zeros((a.shape[0], Kp - C), x.dtype)], axis=-1)
    out = matmul_fused(a, w, jnp.tile(bias, 8), relu=False,
                       out_dtype=jnp.bfloat16)
    out = out.reshape(N, D, H, W, 2, 2, 2, cout)
    # TODO(synk): the 8-way interleave could be folded into the Pallas writeback
    # via a scattering out_spec instead of this XLA transpose.
    out = out.transpose(0, 1, 4, 2, 5, 3, 6, 7)
    return out.reshape(N, 2 * D, 2 * H, 2 * W, cout)


@partial(jax.jit, static_argnames=("ksize", "stride", "padding"))
def maxpool3d(x, *, ksize, stride, padding):
    """Fully separable max pool: all three tap axes fuse into XLA elementwise
    maxima (no tap-stack materialization, no lane-sparse kernel)."""
    kd, kh, kw = ksize
    sd, sh, sw = stride
    pd, ph, pw = padding
    N, D, H, W, C = x.shape
    Do = (D + 2 * pd - kd) // sd + 1
    Ho = (H + 2 * ph - kh) // sh + 1
    Wo = (W + 2 * pw - kw) // sw + 1
    xp = x if not (pd or ph or pw) else jnp.pad(
        x, ((0, 0), (pd, pd), (ph, ph), (pw, pw), (0, 0)),
        constant_values=-jnp.inf)

    def axis_max(t, axis, k, s, olen):
        r = lax.slice_in_dim(t, 0, s * (olen - 1) + 1, stride=s, axis=axis)
        for i in range(1, k):
            r = jnp.maximum(r, lax.slice_in_dim(
                t, i, i + s * (olen - 1) + 1, stride=s, axis=axis))
        return r

    t = axis_max(xp, 3, kw, sw, Wo)
    t = axis_max(t, 2, kh, sh, Ho)
    t = axis_max(t, 1, kd, sd, Do)
    return t


def apply_conv(x, p, k, s, pad, relu, residual=None, out_dtype=jnp.bfloat16,
               keep_padded=False):
    return conv3d(x, p['w'], p['b'], residual,
                  ksize=_t3(k), stride=_t3(s), padding=_t3(pad), relu=relu,
                  out_dtype=out_dtype, keep_padded=keep_padded)


# ---------------------------------------------------------------------------
# Deterministic parameter construction (synthetic; BN folded into weights/bias,
# weights pre-padded to MXU-aligned (Kp, Np) bf16 at build time).
# ---------------------------------------------------------------------------
class KeyGen:
    def __init__(self, seed):
        self.key = jax.random.PRNGKey(seed)

    def __call__(self):
        self.key, sub = jax.random.split(self.key)
        return sub


def init_w(kg, fan_in, shape):
    return jax.random.normal(kg(), shape, jnp.float32) * (fan_in ** -0.5)


def init_bn(kg, c):
    gamma = jax.random.uniform(kg(), (c,), minval=0.5, maxval=1.5)
    beta = jax.random.normal(kg(), (c,)) * 0.1
    mean = jax.random.normal(kg(), (c,)) * 0.1
    var = jax.random.uniform(kg(), (c,), minval=0.5, maxval=1.5)
    scale = gamma / jnp.sqrt(var + EPS)
    bias = beta - mean * scale
    return scale, bias


def _pad_weight(w):
    """(K, n) f32 -> MXU-aligned (Kp, Np) bf16 with zero-padded rows/cols."""
    K, n = w.shape
    Kp, Np = _pad_k(K), _round_up(n, 128)
    return jnp.pad(w, ((0, Kp - K), (0, Np - n))).astype(jnp.bfloat16)


def conv_bn(kg, cin, cout, k):
    kvol = k[0] * k[1] * k[2]
    K = cin * kvol
    w = init_w(kg, K, (K, cout))
    s, b = init_bn(kg, cout)
    return {'w': _pad_weight(w * s[None, :]), 'b': b.astype(jnp.float32)}


def conv_bias_bn(kg, cin, cout):
    """1x1 Conv3d(bias=True) + BatchNorm3d, folded."""
    w = init_w(kg, cin, (cin, cout))
    cb = jax.random.normal(kg(), (cout,)) * 0.05
    s, b = init_bn(kg, cout)
    return {'w': _pad_weight(w * s[None, :]),
            'b': (b + cb * s).astype(jnp.float32)}


def make_bottleneck(kg, cin, planes, stride):
    exp = 4
    p = {'c1': conv_bn(kg, cin, planes, (1, 1, 1)),
         'c2': conv_bn(kg, planes, planes, (3, 3, 3)),
         'c3': conv_bn(kg, planes, planes * exp, (1, 1, 1))}
    if stride != 1 or cin != planes * exp:
        p['down'] = conv_bn(kg, cin, planes * exp, (1, 1, 1))
    else:
        p['down'] = None
    return p


def make_up(kg, x1_ch, x2_ch, out_ch):
    up_out = x1_ch // 2
    wt = init_w(kg, x1_ch, (x1_ch, 8 * up_out))
    bt = jax.random.normal(kg(), (up_out,)) * 0.05
    dc_in = up_out + x2_ch
    return {'wt': _pad_weight(wt), 'bt': bt.astype(jnp.float32),
            'c1': conv_bn(kg, dc_in, out_ch, (3, 3, 3)),
            'c2': conv_bn(kg, out_ch, out_ch, (3, 3, 3))}


def build_params(kg, in_channels=4, num_classes=4, div=WIDTH_DIV):
    P = {}
    c0 = 64 // div
    P['l0'] = conv_bn(kg, in_channels, c0, (7, 7, 7))

    exp = 4
    planes_list = [64 // div, 128 // div, 256 // div, 512 // div]
    depths = [3, 4, 23, 3]                       # ResNet-101
    strides = [1, 2, 2, 2]
    cin = c0
    layers = []
    for planes, depth, stride in zip(planes_list, depths, strides):
        blocks = []
        for bi in range(depth):
            s = stride if bi == 0 else 1
            blocks.append(make_bottleneck(kg, cin, planes, s))
            cin = planes * exp
        layers.append(blocks)
    P['layers'] = layers

    c1, c2, c3, c4 = [p_ * exp for p_ in planes_list]
    P['enc_ch'] = (c0, c1, c2, c3, c4)            # real (unpadded) skip widths
    cb = 4096 // div
    # _avgpool head: MaxPool3d(2,2) + 1x1 conv+BN+ReLU + 1x1 conv+BN+ReLU
    P['bott1'] = conv_bias_bn(kg, c4, cb)
    P['bott2'] = conv_bias_bn(kg, cb, cb)

    P['dec4'] = make_up(kg, x1_ch=cb, x2_ch=c4, out_ch=c4)   # Up(4096, 2048, 2048)
    P['dec3'] = make_up(kg, x1_ch=c4, x2_ch=c3, out_ch=c3)   # Up(2048, 1024, 1024)
    P['dec2'] = make_up(kg, x1_ch=c3, x2_ch=c2, out_ch=c2)   # Up(1024, 512, 512)
    P['dec1'] = make_up(kg, x1_ch=c2, x2_ch=c1, out_ch=c1)   # Up(512, 256, 256)
    # TODO(synk): original decoder0 = Up(128+64, 64, 64) is channel-inconsistent
    # with decode1 (256 ch) and cannot run in PyTorch; we use the consistent
    # intent: ConvT(256->128), cat with x1(64), DoubleConv(192->64) (scaled).
    P['dec0'] = make_up(kg, x1_ch=c1, x2_ch=c0, out_ch=c0)

    P['out'] = {'w': _pad_weight(init_w(kg, c0, (c0, num_classes))),
                'b': (jax.random.normal(kg(), (num_classes,)) * 0.05
                      ).astype(jnp.float32)}
    return P


# ---------------------------------------------------------------------------
# Forward pass
# ---------------------------------------------------------------------------
def bottleneck_fwd(x, p, stride):
    # c1 output feeds the 3x3 conv -> keep real width; c2/c3/down outputs feed
    # only 1x1 consumers / the residual -> carry channel-padded (no slice, no
    # zero K-concat downstream, no residual pad).
    out = apply_conv(x, p['c1'], 1, 1, 0, relu=True)
    out = apply_conv(out, p['c2'], 3, stride, 1, relu=True, keep_padded=True)
    if p['down'] is not None:
        identity = apply_conv(x, p['down'], 1, stride, 0, relu=False,
                              keep_padded=True)
    else:
        identity = x        # already carried at the padded width
    # conv3 + BN + residual add + ReLU, all in the Pallas epilogue
    return apply_conv(out, p['c3'], 1, 1, 0, relu=True, residual=identity,
                      keep_padded=True)


def up_fwd(x1, x2, x2_ch, p):
    x1 = conv_transpose3d_2x(x1, p['wt'], p['bt'])
    if x2.shape[-1] > x2_ch:        # skip map is carried channel-padded
        x2 = x2[..., :x2_ch]
    # F.pad in the reference pads only the last two spatial dims (H, W)
    diff_y = x2.shape[2] - x1.shape[2]
    diff_x = x2.shape[3] - x1.shape[3]
    if diff_y or diff_x:
        x1 = jnp.pad(x1, ((0, 0), (0, 0),
                          (diff_y // 2, diff_y - diff_y // 2),
                          (diff_x // 2, diff_x - diff_x // 2),
                          (0, 0)))
    x = jnp.concatenate([x2, x1], axis=-1)     # torch.cat([x2, x1], dim=1)
    x = apply_conv(x, p['c1'], 3, 1, 1, relu=True)
    x = apply_conv(x, p['c2'], 3, 1, 1, relu=True, keep_padded=True)
    return x


def resnet101_unet_forward(x_ncdhw, P):
    c0r, c1r, c2r, c3r, c4r = P['enc_ch']
    x = jnp.transpose(x_ncdhw, (0, 2, 3, 4, 1)).astype(jnp.bfloat16)  # -> NDHWC
    x1 = apply_conv(x, P['l0'], 7, 2, 3, relu=True)                   # layer0
    x2 = maxpool3d(x1, ksize=(3, 3, 3), stride=(2, 2, 2), padding=(1, 1, 1))

    feats = []
    h = x2
    layer_strides = (1, 2, 2, 2)
    for li, blocks in enumerate(P['layers']):
        for bi, bp in enumerate(blocks):
            h = bottleneck_fwd(h, bp, layer_strides[li] if bi == 0 else 1)
        feats.append(h)
    e1, e2, e3, e4 = feats          # carried channel-padded (multiples of 128)

    # _avgpool bottleneck head (1x1 convs consume the padded width for free)
    b = maxpool3d(e4, ksize=(2, 2, 2), stride=(2, 2, 2), padding=(0, 0, 0))
    b = apply_conv(b, P['bott1'], 1, 1, 0, relu=True, keep_padded=True)
    b = apply_conv(b, P['bott2'], 1, 1, 0, relu=True, keep_padded=True)

    d4 = up_fwd(b, e4, c4r, P['dec4'])
    d3 = up_fwd(d4, e3, c3r, P['dec3'])
    d2 = up_fwd(d3, e2, c2r, P['dec2'])
    d1 = up_fwd(d2, e1, c1r, P['dec1'])
    d0 = up_fwd(d1, x1, c0r, P['dec0'])

    out = apply_conv(d0, P['out'], 1, 1, 0, relu=False, out_dtype=jnp.float32)
    return jnp.transpose(out, (0, 4, 1, 2, 3))                         # -> NCDHW


if __name__ == "__main__":
    kg = KeyGen(0)
    params = build_params(kg, in_channels=4, num_classes=4)

    # Smallest spatial size that survives 5 stride-2 stages + the 2x2x2 maxpool
    # in the bottleneck head is 64 per dim; batch=1 keeps the test small.
    x = jax.random.normal(jax.random.PRNGKey(0), (1, 4, 64, 64, 64), jnp.float32)

    y = resnet101_unet_forward(x, params)
    y = jax.block_until_ready(y)
    assert y.shape == (1, 4, 32, 32, 32), y.shape
    assert jnp.isfinite(y).all()
    print("KERNEL_OK")
</pallas_src>

<mosaic_0001>
module attributes {stable_mosaic.version = 11 : i64} {
  func.func @_mm_single_kernel(%arg0: i32, %arg1: i32, %arg2: memref<512x1408xbf16, #tpu.memory_space<vmem>>, %arg3: memref<1408x128xbf16, #tpu.memory_space<vmem>>, %arg4: memref<1x128xf32, #tpu.memory_space<vmem>>, %arg5: memref<512x128xbf16, #tpu.memory_space<vmem>>) attributes {dimension_semantics = [#tpu.dimension_semantics<parallel>, #tpu.dimension_semantics<parallel>], iteration_bounds = array<i64: 64, 1>, scalar_prefetch = 0 : i64, scratch_operands = 0 : i64, tpu.core_type = #tpu.core_type<tc>, window_params = [{transform_indices = @transform_0, window_bounds = array<i64: 512, 1408>}, {transform_indices = @transform_1, window_bounds = array<i64: 1408, 128>}, {transform_indices = @transform_2, window_bounds = array<i64: 1, 128>}, {transform_indices = @transform_3, window_bounds = array<i64: 512, 128>}]} {
    %c0 = arith.constant 0 : index
    %c0_0 = arith.constant 0 : index
    %0 = vector.load %arg2[%c0, %c0_0] : memref<512x1408xbf16, #tpu.memory_space<vmem>>, vector<512x1408xbf16>
    %c0_1 = arith.constant 0 : index
    %c0_2 = arith.constant 0 : index
    %1 = vector.load %arg3[%c0_1, %c0_2] : memref<1408x128xbf16, #tpu.memory_space<vmem>>, vector<1408x128xbf16>
    %cst = arith.constant dense<0.000000e+00> : vector<512x128xf32>
    %2 = tpu.matmul %0, %1, %cst {dimension_numbers = #tpu.dot_dimension_numbers<[1], [0], [0], [1], [0, 0, 1, 1], [], []>} : vector<512x1408xbf16>, vector<1408x128xbf16>, vector<512x128xf32> -> vector<512x128xf32>
    %c0_3 = arith.constant 0 : index
    %c0_4 = arith.constant 0 : index
    %3 = vector.load %arg4[%c0_3, %c0_4] : memref<1x128xf32, #tpu.memory_space<vmem>>, vector<1x128xf32>
    %4 = vector.broadcast %3 : vector<1x128xf32> to vector<512x128xf32>
    %5 = arith.addf %2, %4 : vector<512x128xf32>
    %cst_5 = arith.constant 0.000000e+00 : f32
    %6 = vector.broadcast %cst_5 : f32 to vector<512x128xf32>
    %7 = arith.maximumf %5, %6 : vector<512x128xf32>
    %8 = arith.truncf %7 : vector<512x128xf32> to vector<512x128xbf16>
    %c0_6 = arith.constant 0 : index
    %c0_7 = arith.constant 0 : index
    %9 = vector.load %arg5[%c0_6, %c0_7] : memref<512x128xbf16, #tpu.memory_space<vmem>>, vector<512x128xbf16>
    tpu.vector_store %arg5[%c0_6, %c0_7], %8 {strides = array<i32>} : memref<512x128xbf16, #tpu.memory_space<vmem>>, vector<512x128xbf16>,
    return
  }
  func.func @transform_0(%arg0: i32, %arg1: i32) -> (i32, i32) {
    %c0_i32 = arith.constant 0 : i32
    %c0_i32_0 = arith.constant 0 : i32
    return %arg0, %c0_i32 : i32, i32
  }
  func.func @transform_1(%arg0: i32, %arg1: i32) -> (i32, i32) {
    %c0_i32 = arith.constant 0 : i32
    %c0_i32_0 = arith.constant 0 : i32
    return %c0_i32, %arg1 : i32, i32
  }
  func.func @transform_2(%arg0: i32, %arg1: i32) -> (i32, i32) {
    %c0_i32 = arith.constant 0 : i32
    %c0_i32_0 = arith.constant 0 : i32
    return %c0_i32, %arg1 : i32, i32
  }
  func.func @transform_3(%arg0: i32, %arg1: i32) -> (i32, i32) {
    %c0_i32 = arith.constant 0 : i32
    return %arg0, %arg1 : i32, i32
  }
}

</mosaic_0001>

<bundles_post_ra>
// kernel: conv3d.1
= control target key start
LH: loop header
LB: loop body
LE: loop exit
PB: predicated region body
PF: predicated region fallthrough
CT: control target
= control target key end

     0   :  { %8 = vsyncpa [#allocation3], 0  ;;  %s8923_s0 = inlined_call_operand.hbm [shape: bf16[32768,1408], index: 0, kind: input, shape index: {}]   ;;  %s8924_s1 = inlined_call_operand.vmem [shape: bf16[1408,128], index: 1, kind: input, shape index: {}]   ;;  %s8925_s2 = inlined_call_operand.vmem [shape: f32[1,128], index: 2, kind: input, shape index: {}]   ;;  %s8926_s3 = inlined_call_operand.vmem [shape: bf16[32768,128], index: 3, kind: output, shape index: {}]  }
   0x1   :  { %10 = vsyncpa [#allocation3 + $0x1], 0  ;;  %s7586_s12 = smov 0   ;;  %s7588_s13 = smov 0  }
   0x2   :  { %s7590_s14 = smov 0   ;;  %s7592_s15 = smov 0  }
   0x3   :  { %s7594_s16 = smov 0   ;;  %s7596_s17 = smov 0  }
   0x4 LB: > { %s5364_s18 = sadd.s32 4294967295, %s7560_s17   ;;  %s28_s19 = sadd.s32 1, %s7556_s16  ;;  %s7560_s17 = sphi %s7596_s17, %s16_s17   ;;  %s7556_s16 = sphi %s7594_s16, %s8967_s16   ;;  %s7552_s15 = sphi %s7592_s15, %s8966_s15   ;;  %s7548_s14 = sphi %s7590_s14, %s8965_s14   ;;  %s7544_s13 = sphi %s7588_s13, %s8964_s13   ;;  %s7540_s12 = sphi %s7586_s12, %s8963_s12  }
   0x5   : > { %p30_p0 = scmp.ge.s32.totalorder %s28_s19, 64  ;;  %s35_s20 = sadd.s32 1, %s7548_s14 }
   0x6   : > { %p42_p1 = scmp.ne.s32.totalorder %s7548_s14, %s7544_s13  ;;  %p43_p2 = scmp.eq.s32.totalorder %s7560_s17, 0 }
   0x7   : > { %s8969_s19 = smov (%p30_p0, %s28_s19), 0  ;;  %p48_p4 = scmp.ne.s32.totalorder %s7544_s13, %s7540_s12 }
   0x8   : > { %p44_p3 = por %p43_p2, %p42_p1  ;;  %s32_s21 = ssub.s32 %s7556_s16, %s8969_s19 }
   0x9   : > { %p49_p5 = scmp.eq.s32.totalorder %s5364_s18, 0  ;;  %p33_p6 = scmp.eq.s32.totalorder %s32_s21, 0 }
   0xa   : > { %p6811_p8 = scmp.lt.s32.totalorder %s7560_s17, 64  ;;  %s165_s24 = sand.u32 1, %s7548_s14  }
   0xb   : > { %p7625_p7 = por %p49_p5, %p48_p4  ;;  %s6803_s25 = smul.u32 45056, %s7556_s16 }
   0xc   : > { %s7631_s23 = scalar_select %p33_p6, %s7548_s14, %s35_s20  }
   0xd   : > { %s6802_s26 = smul.u32 2816, %s165_s24  ;;  %s7638_s29 = scalar_lea.hbm %s8923_s0, %s6803_s25 }
   0xe   : > { %p7640_p9 = pnand %p6811_p8, %p44_p3  ;;  %s7646_s6 = scalar_lea.sflag [#allocation3], %s165_s24 }
   0xf   : > { %s169_s4 = scalar_lea.vmem [#allocation2], %s6802_s26  ;;  %s7480_s7 = scalar_lea.hbm %s7638_s29, 45056 }
  0x10   : > { %s177_s5 = sshll.u32 %s169_s4, 4  ;;  %p7481_p10 = scmp.ne.s32.totalorder %s7638_s29, %s7480_s7  ;;  %s7644_s5 = int_to_ptr.vmem [resolvable:$true] %s177_s5 }
  0x11   : > { %p7482_p11 = pneg %p7640_p9  ;;  %s7485_s10 = scalar_lea.hbm %s8923_s0, 2883584 }
  0x12   : > { %p7486_p0 = scmp.lt.u32.totalorder %s7638_s29, %s8923_s0  ;;  %p7487_p1 = scmp.lt.u32.totalorder %s7485_s10, %s7480_s7 }
  0x13   : > { %p7483_p12 = pnand %p7482_p11, %p7481_p10  ;;  %p7489_p3 = scmp.lt.u32.totalorder %s7480_s7, %s7638_s29 }
  0x14   : > { %p7488_p2 = por %p7487_p1, %p7486_p0 }
  0x15   : > { %p7484_p13 = pneg %p7483_p12 }
  0x16   : > { %p7490_p4 = por %p7489_p3, %p7488_p2 }
  0x18   : > { %p7491_p5 = pnand %p7490_p4, %p7484_p13 }
  0x1a   : > { %7494 = shalt.err (!%p7491_p5)
}
  0x1b   : > { %s7495_s18 = scalar_lea.vmem %s7644_s5, 45056  ;;  %s7562_s20 = smov [#allocation2]  }
  0x1c   : > { %p7496_p6 = scmp.ne.s32.totalorder %s7644_s5, %s7495_s18  ;;  %s7500_s21 = sshll.u32 %s7562_s20, 4  ;;  %s7501_s21 = int_to_ptr.vmem [resolvable:$false] %s7500_s21 }
  0x1d   : > { %s7502_s24 = scalar_lea.vmem %s7501_s21, 90112  ;;  %p7503_p12 = scmp.lt.s32.totalorder %s7644_s5, %s7501_s21 }
  0x1e   : > { %p7498_p8 = pnand %p7496_p6, %p7482_p11  ;;  %p7504_p0 = scmp.lt.s32.totalorder %s7502_s24, %s7495_s18 }
  0x20   : > { %p7499_p10 = pneg %p7498_p8  ;;  %p7505_p1 = por %p7504_p0, %p7503_p12 }
  0x22   : > { %p7506_p2 = pnand %p7505_p1, %p7499_p10 }
  0x24   : > { %7509 = shalt.err (!%p7506_p2)
}
  0x25   : > { %s7563_s25 = smov 704   ;;  %s7564_s26 = smov 44  }
  0x26   : > { %6810 = dma.hbm_to_vmem [thread:$0]  (!%p7640_p9), %s7638_s29, 45056, %s7644_s5, %s7646_s6, %s7563_s25, %s7563_s25, %s7564_s26  }
  0x27   : > { %p5373_p11 = scmp.ge.s32.totalorder %s7560_s17, 1  ;;  %p185_p13 = scmp.lt.s32.totalorder %s7560_s17, 65 }
  0x29   : > { %p186_p3 = pnand %p5373_p11, %p185_p13 }
  0x2b   : > { %189 = sbr.rel (%p186_p3) target bundleno = 1039 (0x40f), region = 32 }
  0x32   : > { %s191_s27 = sand.u32 1, %s7544_s13  }
  0x33   : > { %s6804_s28 = smul.u32 2816, %s191_s27  ;;  %s192_s4 = scalar_lea.sflag [#allocation3], %s191_s27 }
  0x35   : > { %s7677_s7 = scalar_lea.vmem [#allocation2], %s6804_s28 }
  0x36   : > { %7535 = dma.done.wait (%p7625_p7), %s192_s4, 45056  }
  0x37   : > { %7537 = vsyncadd (%p7625_p7), %s192_s4, 4294922240  ;;  %v7565_v0 = vmov 0   ;;  %v6863_v1 = vld [vmem:[%s8924_s1] sm:$0xff]   ;;  %v6865_v3 = vld [vmem:[%s8924_s1 + $0x8] sm:$0xff]  }
  0x38   : > { %3133 = vmatprep.subr.bf16.mxu1 %v7565_v0  ;;  %3711 = vmatprep.subr.bf16.mxu0 %v7565_v0  ;;  %v6864_v2 = vld [vmem:[%s8924_s1 + $0x100] sm:$0xff]   ;;  %v6866_v4 = vld [vmem:[%s8924_s1 + $0x108] sm:$0xff]   ;;  %v6867_v5 = vld [vmem:[%s8924_s1 + $0x10] sm:$0xff]  }
  0x39   : > { %3134 = vmatpush1.bf16.msra.mxu1 %v6863_v1  ;;  %3712 = vmatpush1.bf16.msra.mxu0 %v6864_v2  ;;  %v6868_v6 = vld [vmem:[%s8924_s1 + $0x110] sm:$0xff]   ;;  %v6869_v7 = vld [vmem:[%s8924_s1 + $0x18] sm:$0xff]   ;;  %v6871_v9 = vld [vmem:[%s8924_s1 + $0x20] sm:$0xff]  }
  0x3a   : > { %3135 = vmatprep.subr.bf16.mxu1 %v7565_v0  ;;  %3713 = vmatprep.subr.bf16.mxu0 %v7565_v0  ;;  %v6870_v8 = vld [vmem:[%s8924_s1 + $0x118] sm:$0xff]   ;;  %v6872_v10 = vld [vmem:[%s8924_s1 + $0x120] sm:$0xff]   ;;  %v6873_v11 = vld [vmem:[%s8924_s1 + $0x28] sm:$0xff]  }
  0x3b   : > { %v6874_v12 = vld [vmem:[%s8924_s1 + $0x128] sm:$0xff]   ;;  %v6875_v13 = vld [vmem:[%s8924_s1 + $0x30] sm:$0xff]   ;;  %v6877_v15 = vld [vmem:[%s8924_s1 + $0x38] sm:$0xff]  }
  0x3c   : > { %v6876_v14 = vld [vmem:[%s8924_s1 + $0x130] sm:$0xff]   ;;  %v6878_v16 = vld [vmem:[%s8924_s1 + $0x138] sm:$0xff]   ;;  %v6879_v17 = vld [vmem:[%s8924_s1 + $0x40] sm:$0xff]  }
  0x3d   : > { %3136 = vmatpush1.bf16.msra.mxu1 %v6865_v3  ;;  %3714 = vmatpush1.bf16.msra.mxu0 %v6866_v4  ;;  %v6880_v18 = vld [vmem:[%s8924_s1 + $0x140] sm:$0xff]   ;;  %v6897_v19 = vld [vmem:[%s7677_s7 + $0x4] ss:$44 sps:$4 sm:$0xff]   ;;  %v6900_v21 = vld [vmem:[%s7677_s7 + $0x14] ss:$44 sps:$4 sm:$0xff]  }
  0x3e   : > { %3137 = vmatprep.subr.bf16.mxu1 %v7565_v0  ;;  %3715 = vmatprep.subr.bf16.mxu0 %v7565_v0  ;;  %v6881_v20 = vld [vmem:[%s8924_s1 + $0x48] sm:$0xff]   ;;  %v6883_v23 = vld [vmem:[%s8924_s1 + $0x50] sm:$0xff]   ;;  %v6885_v25 = vld [vmem:[%s8924_s1 + $0x58] sm:$0xff]  }
  0x3f   : > { %v6882_v22 = vld [vmem:[%s8924_s1 + $0x148] sm:$0xff]   ;;  %3165 = vmatprep.mubr.bf16.mxu1 %v6897_v19  ;;  %3743 = vmatprep.mubr.bf16.mxu0 %v6900_v21  ;;  %v6884_v24 = vld [vmem:[%s8924_s1 + $0x150] sm:$0xff]   ;;  %v6886_v26 = vld [vmem:[%s8924_s1 + $0x158] sm:$0xff]  }
  0x40   : > { %v6887_v27 = vld [vmem:[%s8924_s1 + $0x60] sm:$0xff]   ;;  %v6889_v29 = vld [vmem:[%s8924_s1 + $0x68] sm:$0xff]   ;;  %v6891_v31 = vld [vmem:[%s8924_s1 + $0x70] sm:$0xff]  }
  0x41   : > { %3138 = vmatpush1.bf16.msra.mxu1 %v6867_v5  ;;  %3716 = vmatpush1.bf16.msra.mxu0 %v6868_v6  ;;  %v6888_v28 = vld [vmem:[%s8924_s1 + $0x160] sm:$0xff]   ;;  %v6890_v30 = vld [vmem:[%s8924_s1 + $0x168] sm:$0xff]   ;;  %v6892_v32 = vld [vmem:[%s8924_s1 + $0x170] sm:$0xff]  }
  0x42   : > { %3139 = vmatprep.subr.bf16.mxu1 %v7565_v0  ;;  %3717 = vmatprep.subr.bf16.mxu0 %v7565_v0  ;;  %v6893_v33 = vld [vmem:[%s8924_s1 + $0x78] sm:$0xff]   ;;  %v6895_v35 = vld [vmem:[%s7677_s7] ss:$44 sps:$4 sm:$0xff]   ;;  %v6901_v37 = vld [vmem:[%s8924_s1 + $0x180] sm:$0xff]  }
  0x43   : > { %v6894_v34 = vld [vmem:[%s8924_s1 + $0x178] sm:$0xff]   ;;  %v6902_v38 = vld [vmem:[%s8924_s1 + $0x80] sm:$0xff]   ;;  %v6916_v41 = vld [vmem:[%s8924_s1 + $0x88] sm:$0xff]  }
  0x44   : > { %v6898_v36 = vld [vmem:[%s7677_s7 + $0x10] ss:$44 sps:$4 sm:$0xff]   ;;  %v6905_v40 = vld [vmem:[%s7677_s7 + $0x6c] ss:$44 sps:$4 sm:$0xff]   ;;  %v6909_v42 = vld [vmem:[%s8924_s1 + $0x188] sm:$0xff]  }
  0x45   : > { %3140 = vmatpush1.bf16.msra.mxu1 %v6869_v7  ;;  %3718 = vmatpush1.bf16.msra.mxu0 %v6870_v8  ;;  %v6903_v39 = vld [vmem:[%s7677_s7 + $0x5c] ss:$44 sps:$4 sm:$0xff]   ;;  %v6907_v43 = vld [vmem:[%s7677_s7 + $0x58] ss:$44 sps:$4 sm:$0xff]   ;;  %v6910_v45 = vld [vmem:[%s7677_s7 + $0xb4] ss:$44 sps:$4 sm:$0xff]  }
  0x46   : > { %3141 = vmatprep.subr.bf16.mxu1 %v7565_v0  ;;  %3719 = vmatprep.subr.bf16.mxu0 %v7565_v0  ;;  %v6908_v44 = vld [vmem:[%s7677_s7 + $0x68] ss:$44 sps:$4 sm:$0xff]   ;;  %v6912_v46 = vld [vmem:[%s7677_s7 + $0xc4] ss:$44 sps:$4 sm:$0xff]   ;;  %v6915_v52 = vld [vmem:[%s7677_s7 + $0xc0] ss:$44 sps:$4 sm:$0xff]  }
  0x47   : > { %v6923_v47 = vld [vmem:[%s8924_s1 + $0x190] sm:$0xff]   ;;  %v6931_v49 = vld [vmem:[%s8924_s1 + $0x198] sm:$0xff]   ;;  %v6944_v55 = vld [vmem:[%s8924_s1 + $0x1a0] sm:$0xff]  }
  0x48   : > { %v6930_v48 = vld [vmem:[%s8924_s1 + $0x90] sm:$0xff]   ;;  %v6945_v50 = vld [vmem:[%s8924_s1 + $0x98] sm:$0xff]   ;;  %v6959_v56 = vld [vmem:[%s8924_s1 + $0xa0] sm:$0xff]  }
  0x49   : > { %3142 = vmatpush1.bf16.msra.mxu1 %v6871_v9  ;;  %3720 = vmatpush1.bf16.msra.mxu0 %v6872_v10  ;;  %v6914_v51 = vld [vmem:[%s7677_s7 + $0xb0] ss:$44 sps:$4 sm:$0xff]   ;;  %v6917_v53 = vld [vmem:[%s7677_s7 + $0x10c] ss:$44 sps:$4 sm:$0xff]   ;;  %v6921_v57 = vld [vmem:[%s7677_s7 + $0x108] ss:$44 sps:$4 sm:$0xff]  }
  0x4a   : > { %3143 = vmatprep.subr.bf16.mxu1 %v7565_v0  ;;  %3721 = vmatprep.subr.bf16.mxu0 %v7565_v0  ;;  %v6919_v54 = vld [vmem:[%s7677_s7 + $0x11c] ss:$44 sps:$4 sm:$0xff]   ;;  %v6952_v58 = vld [vmem:[%s8924_s1 + $0x1a8] sm:$0xff]   ;;  %v6974_v2 = vld [vmem:[%s8924_s1 + $0x1b8] sm:$0xff]  }
  0x4b   : > { %v6922_v59 = vld [vmem:[%s7677_s7 + $0x118] ss:$44 sps:$4 sm:$0xff]   ;;  %v6926_v62 = vld [vmem:[%s7677_s7 + $0x174] ss:$44 sps:$4 sm:$0xff]   ;;  %v6966_v63 = vld [vmem:[%s8924_s1 + $0x1b0] sm:$0xff]  }
  0x4c   : > { %v6973_v60 = vld [vmem:[%s8924_s1 + $0xa8] sm:$0xff]   ;;  %v6988_v1 = vld [vmem:[%s8924_s1 + $0xb0] sm:$0xff]   ;;  %v7002_v4 = vld [vmem:[%s8924_s1 + $0xb8] sm:$0xff]  }
  0x4d   : > { %3144 = vmatpush1.bf16.msra.mxu1 %v6873_v11  ;;  %3722 = vmatpush1.bf16.msra.mxu0 %v6874_v12  ;;  %v6924_v61 = vld [vmem:[%s7677_s7 + $0x164] ss:$44 sps:$4 sm:$0xff]   ;;  %v6928_v3 = vld [vmem:[%s7677_s7 + $0x160] ss:$44 sps:$4 sm:$0xff]   ;;  %v6932_v6 = vld [vmem:[%s7677_s7 + $0x1bc] ss:$44 sps:$4 sm:$0xff]  }
  0x4e   : > { %3145 = vmatprep.subr.bf16.mxu1 %v7565_v0  ;;  %3723 = vmatprep.subr.bf16.mxu0 %v7565_v0  ;;  %v6929_v5 = vld [vmem:[%s7677_s7 + $0x170] ss:$44 sps:$4 sm:$0xff]   ;;  %v6934_v7 = vld [vmem:[%s7677_s7 + $0x1cc] ss:$44 sps:$4 sm:$0xff]   ;;  %v6995_v10 = vld [vmem:[%s8924_s1 + $0x1c8] sm:$0xff]  }
  0x4f   : > { %v6987_v8 = vld [vmem:[%s8924_s1 + $0x1c0] sm:$0xff]   ;;  %v6937_v12 = vld [vmem:[%s7677_s7 + $0x1c8] ss:$44 sps:$4 sm:$0xff]   ;;  %v6943_v19 = vld [vmem:[%s7677_s7 + $0x220] ss:$44 sps:$4 sm:$0xff]  }
  0x50   : > { %v7016_v9 = vld [vmem:[%s8924_s1 + $0xc0] sm:$0xff]  }
  0x51   : > { %3146 = vmatpush1.bf16.msra.mxu1 %v6875_v13  ;;  %3724 = vmatpush1.bf16.msra.mxu0 %v6876_v14  ;;  %v6936_v11 = vld [vmem:[%s7677_s7 + $0x1b8] ss:$44 sps:$4 sm:$0xff]   ;;  %v6938_v13 = vld [vmem:[%s7677_s7 + $0x214] ss:$44 sps:$4 sm:$0xff]   ;;  %v6948_v21 = vld [vmem:[%s7677_s7 + $0x27c] ss:$44 sps:$4 sm:$0xff]  }
  0x52   : > { %3147 = vmatprep.subr.bf16.mxu1 %v7565_v0  ;;  %3725 = vmatprep.subr.bf16.mxu0 %v7565_v0  ;;  %v6940_v14 = vld [vmem:[%s7677_s7 + $0x224] ss:$44 sps:$4 sm:$0xff]  }
  0x55   : > { %3148 = vmatpush1.bf16.msra.mxu1 %v6877_v15  ;;  %3726 = vmatpush1.bf16.msra.mxu0 %v6878_v16  ;;  %v7009_v15 = vld [vmem:[%s8924_s1 + $0x1d0] sm:$0xff]   ;;  %v7031_v16 = vld [vmem:[%s8924_s1 + $0xc8] sm:$0xff]  }
  0x56   : > { %3149 = vmatprep.subr.bf16.mxu1 %v7565_v0  ;;  %3727 = vmatprep.subr.bf16.mxu0 %v7565_v0 }
  0x59   : > { %3150 = vmatpush1.bf16.msra.mxu1 %v6879_v17  ;;  %3728 = vmatpush1.bf16.msra.mxu0 %v6880_v18  ;;  %v7017_v17 = vld [vmem:[%s8924_s1 + $0x1d8] sm:$0xff]  }
  0x5a   : > { %3151 = vmatprep.subr.bf16.mxu1 %v7565_v0  ;;  %3729 = vmatprep.subr.bf16.mxu0 %v7565_v0  ;;  %v6942_v18 = vld [vmem:[%s7677_s7 + $0x210] ss:$44 sps:$4 sm:$0xff]  }
  0x5d   : > { %3152 = vmatpush1.bf16.msra.mxu1 %v6881_v20  ;;  %3730 = vmatpush1.bf16.msra.mxu0 %v6882_v22  ;;  %v6946_v20 = vld [vmem:[%s7677_s7 + $0x26c] ss:$44 sps:$4 sm:$0xff]  }
  0x5e   : > { %3153 = vmatprep.subr.bf16.mxu1 %v7565_v0  ;;  %3731 = vmatprep.subr.bf16.mxu0 %v7565_v0  ;;  %v7030_v22 = vld [vmem:[%s8924_s1 + $0x1e0] sm:$0xff]  }
  0x61   : > { %3154 = vmatpush1.bf16.msra.mxu1 %v6883_v23  ;;  %3732 = vmatpush1.bf16.msra.mxu0 %v6884_v24  ;;  %v7045_v23 = vld [vmem:[%s8924_s1 + $0xd0] sm:$0xff]   ;;  %v7038_v24 = vld [vmem:[%s8924_s1 + $0x1e8] sm:$0xff]  }
  0x62   : > { %3155 = vmatprep.subr.bf16.mxu1 %v7565_v0  ;;  %3733 = vmatprep.subr.bf16.mxu0 %v7565_v0 }
  0x65   : > { %3156 = vmatpush1.bf16.msra.mxu1 %v6885_v25  ;;  %3734 = vmatpush1.bf16.msra.mxu0 %v6886_v26  ;;  %v6950_v25 = vld [vmem:[%s7677_s7 + $0x268] ss:$44 sps:$4 sm:$0xff]   ;;  %v6951_v26 = vld [vmem:[%s7677_s7 + $0x278] ss:$44 sps:$4 sm:$0xff]  }
  0x66   : > { %3157 = vmatprep.subr.bf16.mxu1 %v7565_v0  ;;  %3735 = vmatprep.subr.bf16.mxu0 %v7565_v0 }
  0x69   : > { %3158 = vmatpush1.bf16.msra.mxu1 %v6887_v27  ;;  %3736 = vmatpush1.bf16.msra.mxu0 %v6888_v28  ;;  %v6953_v27 = vld [vmem:[%s7677_s7 + $0x2c4] ss:$44 sps:$4 sm:$0xff]   ;;  %v6955_v28 = vld [vmem:[%s7677_s7 + $0x2d4] ss:$44 sps:$4 sm:$0xff]  }
  0x6a   : > { %3159 = vmatprep.subr.bf16.mxu1 %v7565_v0  ;;  %3737 = vmatprep.subr.bf16.mxu0 %v7565_v0 }
  0x6d   : > { %3160 = vmatpush1.bf16.msra.mxu1 %v6889_v29  ;;  %3738 = vmatpush1.bf16.msra.mxu0 %v6890_v30  ;;  %v7052_v29 = vld [vmem:[%s8924_s1 + $0x1f0] sm:$0xff]   ;;  %v7059_v30 = vld [vmem:[%s8924_s1 + $0xd8] sm:$0xff]  }
  0x6e   : > { %3161 = vmatprep.subr.bf16.mxu1 %v7565_v0  ;;  %3739 = vmatprep.subr.bf16.mxu0 %v7565_v0 }
  0x71   : > { %3162 = vmatpush1.bf16.msra.mxu1 %v6891_v31  ;;  %3740 = vmatpush1.bf16.msra.mxu0 %v6892_v32  ;;  %v7060_v31 = vld [vmem:[%s8924_s1 + $0x1f8] sm:$0xff]   ;;  %v6957_v32 = vld [vmem:[%s7677_s7 + $0x2c0] ss:$44 sps:$4 sm:$0xff]  }
  0x72   : > { %3163 = vmatprep.subr.bf16.mxu1 %v7565_v0  ;;  %3741 = vmatprep.subr.bf16.mxu0 %v7565_v0 }
  0x75   : > { %3164 = vmatpush1.bf16.msra.mxu1 %v6893_v33  ;;  %3742 = vmatpush1.bf16.msra.mxu0 %v6894_v34  ;;  %v6958_v33 = vld [vmem:[%s7677_s7 + $0x2d0] ss:$44 sps:$4 sm:$0xff]  }
  0x76   : > { %3422 = vmatprep.subr.bf16.mxu1 %v7565_v0  ;;  %4000 = vmatprep.subr.bf16.mxu0 %v7565_v0  ;;  %v6960_v34 = vld [vmem:[%s7677_s7 + $0x31c] ss:$44 sps:$4 sm:$0xff]  }
  0x78   : > { %3166 = vmatmul.mubr.bf16.vlgmr.msra.gmra.mrb[0].mxu1 %v6895_v35  ;;  %3744 = vmatmul.mubr.bf16.vlgmr.msra.gmra.mrb[0].mxu0 %v6898_v36  ;;  %v6962_v35 = vld [vmem:[%s7677_s7 + $0x32c] ss:$44 sps:$4 sm:$0xff]  }
  0x79   : > { %3423 = vmatpush1.bf16.msra.mxu1 %v6902_v38  ;;  %4001 = vmatpush1.bf16.msra.mxu0 %v6901_v37  ;;  %v6964_v36 = vld [vmem:[%s7677_s7 + $0x318] ss:$44 sps:$4 sm:$0xff]   ;;  %v6965_v38 = vld [vmem:[%s7677_s7 + $0x328] ss:$44 sps:$4 sm:$0xff]  }
  0x7a   : > { %3173 = vmatprep.mubr.bf16.mxu1 %v6903_v39  ;;  %3751 = vmatprep.mubr.bf16.mxu0 %v6905_v40  ;;  %v7074_v37 = vld [vmem:[%s8924_s1 + $0xe0] sm:$0xff]   ;;  %v6967_v39 = vld [vmem:[%s7677_s7 + $0x374] ss:$44 sps:$4 sm:$0xff]   ;;  %v6969_v40 = vld [vmem:[%s7677_s7 + $0x384] ss:$44 sps:$4 sm:$0xff]  }
  0x7b   : > { %4002 = vmatprep.subr.bf16.mxu0 %v7565_v0  ;;  %3424 = vmatprep.subr.bf16.mxu1 %v7565_v0 }
  0x7d   : > { %3425 = vmatpush1.bf16.msra.mxu1 %v6916_v41  ;;  %4003 = vmatpush1.bf16.msra.mxu0 %v6909_v42  ;;  %v6971_v41 = vld [vmem:[%s7677_s7 + $0x370] ss:$44 sps:$4 sm:$0xff]   ;;  %v6972_v42 = vld [vmem:[%s7677_s7 + $0x380] ss:$44 sps:$4 sm:$0xff]  }
  0x7e   : > { %3426 = vmatprep.subr.bf16.mxu1 %v7565_v0  ;;  %4004 = vmatprep.subr.bf16.mxu0 %v7565_v0 }
  0x80   : > { %3174 = vmatmul.mubr.bf16.gmra.mrb[4].mxu1 %v6907_v43  ;;  %3752 = vmatmul.mubr.bf16.gmra.mrb[4].mxu0 %v6908_v44  ;;  %v6975_v43 = vld [vmem:[%s7677_s7 + $0x3cc] ss:$44 sps:$4 sm:$0xff]   ;;  %v6977_v44 = vld [vmem:[%s7677_s7 + $0x3dc] ss:$44 sps:$4 sm:$0xff]  }
  0x81   : > { %3181 = vmatprep.mubr.bf16.mxu1 %v6910_v45  ;;  %3759 = vmatprep.mubr.bf16.mxu0 %v6912_v46  ;;  %v7088_v45 = vld [vmem:[%s8924_s1 + $0xe8] sm:$0xff]   ;;  %v6979_v46 = vld [vmem:[%s7677_s7 + $0x3c8] ss:$44 sps:$4 sm:$0xff]  }
  0x82   : > { %4005 = vmatpush1.bf16.msra.mxu0 %v6923_v47  ;;  %3427 = vmatpush1.bf16.msra.mxu1 %v6930_v48  ;;  %v6980_v47 = vld [vmem:[%s7677_s7 + $0x3d8] ss:$44 sps:$4 sm:$0xff]  }
  0x83   : > { %4006 = vmatprep.subr.bf16.mxu0 %v7565_v0  ;;  %3428 = vmatprep.subr.bf16.mxu1 %v7565_v0  ;;  %v6981_v48 = vld [vmem:[%s7677_s7 + $0x424] ss:$44 sps:$4 sm:$0xff]  }
  0x86   : > { %4007 = vmatpush1.bf16.msra.mxu0 %v6931_v49  ;;  %3429 = vmatpush1.bf16.msra.mxu1 %v6945_v50  ;;  %v6983_v49 = vld [vmem:[%s7677_s7 + $0x434] ss:$44 sps:$4 sm:$0xff]  }
  0x87   : > { %4008 = vmatprep.subr.bf16.mxu0 %v7565_v0  ;;  %3430 = vmatprep.subr.bf16.mxu1 %v7565_v0  ;;  %v6985_v50 = vld [vmem:[%s7677_s7 + $0x420] ss:$44 sps:$4 sm:$0xff]  }
  0x88   : > { %3182 = vmatmul.mubr.bf16.gmra.mrb[8].mxu1 %v6914_v51  ;;  %3760 = vmatmul.mubr.bf16.gmra.mrb[8].mxu0 %v6915_v52  ;;  %v6986_v51 = vld [vmem:[%s7677_s7 + $0x430] ss:$44 sps:$4 sm:$0xff]  }
  0x89   : > { %3189 = vmatprep.mubr.bf16.mxu1 %v6917_v53  ;;  %3767 = vmatprep.mubr.bf16.mxu0 %v6919_v54  ;;  %v6989_v52 = vld [vmem:[%s7677_s7 + $0x47c] ss:$44 sps:$4 sm:$0xff]   ;;  %v6991_v53 = vld [vmem:[%s7677_s7 + $0x48c] ss:$44 sps:$4 sm:$0xff]  }
  0x8a   : > { %4009 = vmatpush1.bf16.msra.mxu0 %v6944_v55  ;;  %3431 = vmatpush1.bf16.msra.mxu1 %v6959_v56  ;;  %v7102_v54 = vld [vmem:[%s8924_s1 + $0xf0] sm:$0xff]   ;;  %v6993_v55 = vld [vmem:[%s7677_s7 + $0x478] ss:$44 sps:$4 sm:$0xff]  }
  0x8b   : > { %4010 = vmatprep.subr.bf16.mxu0 %v7565_v0  ;;  %3432 = vmatprep.subr.bf16.mxu1 %v7565_v0  ;;  %v6994_v56 = vld [vmem:[%s7677_s7 + $0x488] ss:$44 sps:$4 sm:$0xff]  }
  0x8e   : > { %4011 = vmatpush1.bf16.msra.mxu0 %v6952_v58  ;;  %3433 = vmatpush1.bf16.msra.mxu1 %v6973_v60  ;;  %v6998_v58 = vld [vmem:[%s7677_s7 + $0x4e4] ss:$44 sps:$4 sm:$0xff]   ;;  %v7001_v60 = vld [vmem:[%s7677_s7 + $0x4e0] ss:$44 sps:$4 sm:$0xff]  }
  0x8f   : > { %4012 = vmatprep.subr.bf16.mxu0 %v7565_v0  ;;  %3434 = vmatprep.subr.bf16.mxu1 %v7565_v0 }
  0x90   : > { %3190 = vmatmul.mubr.bf16.gmra.mrb[12].mxu1 %v6921_v57  ;;  %3768 = vmatmul.mubr.bf16.gmra.mrb[12].mxu0 %v6922_v59  ;;  %v6996_v57 = vld [vmem:[%s7677_s7 + $0x4d4] ss:$44 sps:$4 sm:$0xff]   ;;  %v7000_v59 = vld [vmem:[%s7677_s7 + $0x4d0] ss:$44 sps:$4 sm:$0xff]  }
  0x91   : > { %3197 = vmatprep.mubr.bf16.mxu1 %v6924_v61  ;;  %3775 = vmatprep.mubr.bf16.mxu0 %v6926_v62  ;;  %v7003_v61 = vld [vmem:[%s7677_s7 + $0x52c] ss:$44 sps:$4 sm:$0xff]   ;;  %v7005_v62 = vld [vmem:[%s7677_s7 + $0x53c] ss:$44 sps:$4 sm:$0xff]  }
  0x92   : > { %4013 = vmatpush1.bf16.msra.mxu0 %v6966_v63  ;;  %3435 = vmatpush1.bf16.msra.mxu1 %v6988_v1  ;;  %v7116_v63 = vld [vmem:[%s8924_s1 + $0xf8] sm:$0xff]  }
  0x93   : > { %4014 = vmatprep.subr.bf16.mxu0 %v7565_v0  ;;  %3436 = vmatprep.subr.bf16.mxu1 %v7565_v0  ;;  %v7007_v1 = vld [vmem:[%s7677_s7 + $0x528] ss:$44 sps:$4 sm:$0xff]  }
  0x96   : > { %4015 = vmatpush1.bf16.msra.mxu0 %v6974_v2  ;;  %3437 = vmatpush1.bf16.msra.mxu1 %v7002_v4  ;;  %v7008_v2 = vld [vmem:[%s7677_s7 + $0x538] ss:$44 sps:$4 sm:$0xff]   ;;  %v7012_v4 = vld [vmem:[%s7677_s7 + $0x594] ss:$44 sps:$4 sm:$0xff]  }
  0x97   : > { %4016 = vmatprep.subr.bf16.mxu0 %v7565_v0  ;;  %3438 = vmatprep.subr.bf16.mxu1 %v7565_v0 }
  0x98   : > { %3198 = vmatmul.mubr.bf16.gmra.mrb[16].mxu1 %v6928_v3  ;;  %3776 = vmatmul.mubr.bf16.gmra.mrb[16].mxu0 %v6929_v5  ;;  %v7010_v3 = vld [vmem:[%s7677_s7 + $0x584] ss:$44 sps:$4 sm:$0xff]   ;;  %v7014_v5 = vld [vmem:[%s7677_s7 + $0x580] ss:$44 sps:$4 sm:$0xff]  }
  0x99   : > { %3205 = vmatprep.mubr.bf16.mxu1 %v6932_v6  ;;  %3783 = vmatprep.mubr.bf16.mxu0 %v6934_v7  ;;  %v7015_v6 = vld [vmem:[%s7677_s7 + $0x590] ss:$44 sps:$4 sm:$0xff]  }
  0x9a   : > { %4017 = vmatpush1.bf16.msra.mxu0 %v6987_v8  ;;  %3439 = vmatpush1.bf16.msra.mxu1 %v7016_v9  ;;  %v7018_v7 = vld [vmem:[%s7677_s7 + $0x5dc] ss:$44 sps:$4 sm:$0xff]   ;;  %v7020_v8 = vld [vmem:[%s7677_s7 + $0x5ec] ss:$44 sps:$4 sm:$0xff]  }
  0x9b   : > { %4018 = vmatprep.subr.bf16.mxu0 %v7565_v0  ;;  %3440 = vmatprep.subr.bf16.mxu1 %v7565_v0  ;;  %v7022_v9 = vld [vmem:[%s7677_s7 + $0x5d8] ss:$44 sps:$4 sm:$0xff]  }
  0x9e   : > { %4019 = vmatpush1.bf16.msra.mxu0 %v6995_v10  ;;  %3441 = vmatpush1.bf16.msra.mxu1 %v7031_v16  ;;  %v7023_v10 = vld [vmem:[%s7677_s7 + $0x5e8] ss:$44 sps:$4 sm:$0xff]  }
  0x9f   : > { %4020 = vmatprep.subr.bf16.mxu0 %v7565_v0  ;;  %3442 = vmatprep.subr.bf16.mxu1 %v7565_v0  ;;  %v7034_v16 = vld [vmem:[%s7677_s7 + $0x69c] ss:$44 sps:$4 sm:$0xff]  }
  0xa0   : > { %3206 = vmatmul.mubr.bf16.gmra.mrb[20].mxu1 %v6936_v11  ;;  %3784 = vmatmul.mubr.bf16.gmra.mrb[20].mxu0 %v6937_v12  ;;  %v7024_v11 = vld [vmem:[%s7677_s7 + $0x634] ss:$44 sps:$4 sm:$0xff]   ;;  %v7026_v12 = vld [vmem:[%s7677_s7 + $0x644] ss:$44 sps:$4 sm:$0xff]  }
  0xa1   : > { %3213 = vmatprep.mubr.bf16.mxu1 %v6938_v13  ;;  %3791 = vmatprep.mubr.bf16.mxu0 %v6940_v14  ;;  %v7028_v13 = vld [vmem:[%s7677_s7 + $0x630] ss:$44 sps:$4 sm:$0xff]   ;;  %v7029_v14 = vld [vmem:[%s7677_s7 + $0x640] ss:$44 sps:$4 sm:$0xff]  }
  0xa2   : > { %4021 = vmatpush1.bf16.msra.mxu0 %v7009_v15  ;;  %3443 = vmatpush1.bf16.msra.mxu1 %v7045_v23  ;;  %v7032_v15 = vld [vmem:[%s7677_s7 + $0x68c] ss:$44 sps:$4 sm:$0xff]   ;;  %v7046_v23 = vld [vmem:[%s7677_s7 + $0x73c] ss:$44 sps:$4 sm:$0xff]  }
  0xa3   : > { %4022 = vmatprep.subr.bf16.mxu0 %v7565_v0  ;;  %3444 = vmatprep.subr.bf16.mxu1 %v7565_v0 }
  0xa6   : > { %4023 = vmatpush1.bf16.msra.mxu0 %v7017_v17  ;;  %3445 = vmatpush1.bf16.msra.mxu1 %v7059_v30  ;;  %v7036_v17 = vld [vmem:[%s7677_s7 + $0x688] ss:$44 sps:$4 sm:$0xff]   ;;  %v7058_v30 = vld [vmem:[%s7677_s7 + $0x7a0] ss:$44 sps:$4 sm:$0xff]  }
  0xa7   : > { %4024 = vmatprep.subr.bf16.mxu0 %v7565_v0  ;;  %3446 = vmatprep.subr.bf16.mxu1 %v7565_v0 }
  0xa8   : > { %3214 = vmatmul.mubr.bf16.gmra.mrb[24].mxu1 %v6942_v18  ;;  %3792 = vmatmul.mubr.bf16.gmra.mrb[24].mxu0 %v6943_v19  ;;  %v7037_v18 = vld [vmem:[%s7677_s7 + $0x698] ss:$44 sps:$4 sm:$0xff]  }
  0xa9   : > { %3221 = vmatprep.mubr.bf16.mxu1 %v6946_v20  ;;  %3799 = vmatprep.mubr.bf16.mxu0 %v6948_v21  ;;  %v7039_v19 = vld [vmem:[%s7677_s7 + $0x6e4] ss:$44 sps:$4 sm:$0xff]   ;;  %v7041_v20 = vld [vmem:[%s7677_s7 + $0x6f4] ss:$44 sps:$4 sm:$0xff]  }
  0xaa   : > { %4025 = vmatpush1.bf16.msra.mxu0 %v7030_v22  ;;  %3447 = vmatpush1.bf16.msra.mxu1 %v7074_v37  ;;  %v7043_v21 = vld [vmem:[%s7677_s7 + $0x6e0] ss:$44 sps:$4 sm:$0xff]   ;;  %v7044_v22 = vld [vmem:[%s7677_s7 + $0x6f0] ss:$44 sps:$4 sm:$0xff]  }
  0xab   : > { %4026 = vmatprep.subr.bf16.mxu0 %v7565_v0  ;;  %3448 = vmatprep.subr.bf16.mxu1 %v7565_v0  ;;  %v7072_v37 = vld [vmem:[%s7677_s7 + $0x840] ss:$44 sps:$4 sm:$0xff]  }
  0xae   : > { %4027 = vmatpush1.bf16.msra.mxu0 %v7038_v24  ;;  %3449 = vmatpush1.bf16.msra.mxu1 %v7088_v45  ;;  %v7048_v24 = vld [vmem:[%s7677_s7 + $0x74c] ss:$44 sps:$4 sm:$0xff]   ;;  %v7081_v45 = vld [vmem:[%s7677_s7 + $0x8f4] ss:$44 sps:$4 sm:$0xff]  }
  0xaf   : > { %4028 = vmatprep.subr.bf16.mxu0 %v7565_v0  ;;  %3450 = vmatprep.subr.bf16.mxu1 %v7565_v0 }
  0xb0   : > { %3222 = vmatmul.mubr.bf16.gmra.mrb[28].mxu1 %v6950_v25  ;;  %3800 = vmatmul.mubr.bf16.gmra.mrb[28].mxu0 %v6951_v26  ;;  %v7050_v25 = vld [vmem:[%s7677_s7 + $0x738] ss:$44 sps:$4 sm:$0xff]   ;;  %v7051_v26 = vld [vmem:[%s7677_s7 + $0x748] ss:$44 sps:$4 sm:$0xff]  }
  0xb1   : > { %3229 = vmatprep.mubr.bf16.mxu1 %v6953_v27  ;;  %3807 = vmatprep.mubr.bf16.mxu0 %v6955_v28  ;;  %v7053_v27 = vld [vmem:[%s7677_s7 + $0x794] ss:$44 sps:$4 sm:$0xff]   ;;  %v7055_v28 = vld [vmem:[%s7677_s7 + $0x7a4] ss:$44 sps:$4 sm:$0xff]  }
  0xb2   : > { %4029 = vmatpush1.bf16.msra.mxu0 %v7052_v29  ;;  %3451 = vmatpush1.bf16.msra.mxu1 %v7102_v54  ;;  %v7057_v29 = vld [vmem:[%s7677_s7 + $0x790] ss:$44 sps:$4 sm:$0xff]   ;;  %v7142_v54 = vld [vmem:[%s8924_s1 + $0x228] sm:$0xff]  }
  0xb3   : > { %4030 = vmatprep.subr.bf16.mxu0 %v7565_v0  ;;  %3452 = vmatprep.subr.bf16.mxu1 %v7565_v0 }
  0xb6   : > { %4031 = vmatpush1.bf16.msra.mxu0 %v7060_v31  ;;  %3453 = vmatpush1.bf16.msra.mxu1 %v7116_v63  ;;  %v7061_v31 = vld [vmem:[%s7677_s7 + $0x7ec] ss:$44 sps:$4 sm:$0xff]   ;;  %v7103_v63 = vld [vmem:[%s7677_s7 + $0x9fc] ss:$44 sps:$4 sm:$0xff]  }
  0xb7   : > { %4289 = vmatprep.subr.bf16.mxu0 %v7565_v0  ;;  %6258 = vmatprep.subr.bf16.mxu1 %v7565_v0 }
  0xb8   : > { %3230 = vmatmul.mubr.bf16.gmra.mrb[32].mxu1 %v6957_v32  ;;  %3808 = vmatmul.mubr.bf16.gmra.mrb[32].mxu0 %v6958_v33  ;;  %v7063_v32 = vld [vmem:[%s7677_s7 + $0x7fc] ss:$44 sps:$4 sm:$0xff]  }
  0xb9   : > { %3237 = vmatprep.mubr.bf16.mxu1 %v6960_v34  ;;  %3815 = vmatprep.mubr.bf16.mxu0 %v6962_v35  ;;  %v7065_v33 = vld [vmem:[%s7677_s7 + $0x7e8] ss:$44 sps:$4 sm:$0xff]   ;;  %v7066_v34 = vld [vmem:[%s7677_s7 + $0x7f8] ss:$44 sps:$4 sm:$0xff]  }
  0xba   : > { %v7067_v35 = vld [vmem:[%s7677_s7 + $0x844] ss:$44 sps:$4 sm:$0xff]  }
  0xc0   : > { %3238 = vmatmul.mubr.bf16.gmra.mrb[36].mxu1 %v6964_v36  ;;  %3816 = vmatmul.mubr.bf16.gmra.mrb[36].mxu0 %v6965_v38  ;;  %v7071_v36 = vld [vmem:[%s7677_s7 + $0x1c] ss:$44 sps:$4 sm:$0xff]   ;;  %v7069_v38 = vld [vmem:[%s7677_s7 + $0x18] ss:$44 sps:$4 sm:$0xff]  }
  0xc1   : > { %3245 = vmatprep.mubr.bf16.mxu1 %v6967_v39  ;;  %3823 = vmatprep.mubr.bf16.mxu0 %v6969_v40  ;;  %v7075_v39 = vld [vmem:[%s7677_s7 + $0x89c] ss:$44 sps:$4 sm:$0xff]  }
  0xc2   : > { %v7073_v40 = vld [vmem:[%s8924_s1 + $0x200] sm:$0xff]  }
  0xc8   : > { %3246 = vmatmul.mubr.bf16.gmra.mrb[40].mxu1 %v6971_v41  ;;  %3824 = vmatmul.mubr.bf16.gmra.mrb[40].mxu0 %v6972_v42  ;;  %v7077_v41 = vld [vmem:[%s7677_s7 + $0x74] ss:$44 sps:$4 sm:$0xff]   ;;  %v7079_v42 = vld [vmem:[%s7677_s7 + $0x898] ss:$44 sps:$4 sm:$0xff]  }
  0xc9   : > { %3253 = vmatprep.mubr.bf16.mxu1 %v6975_v43  ;;  %3831 = vmatprep.mubr.bf16.mxu0 %v6977_v44  ;;  %v7087_v43 = vld [vmem:[%s8924_s1 + $0x208] sm:$0xff]   ;;  %v7080_v44 = vld [vmem:[%s7677_s7 + $0x70] ss:$44 sps:$4 sm:$0xff]  }
  0xd0   : > { %3254 = vmatmul.mubr.bf16.gmra.mrb[44].mxu1 %v6979_v46  ;;  %3832 = vmatmul.mubr.bf16.gmra.mrb[44].mxu0 %v6980_v47  ;;  %v7083_v46 = vld [vmem:[%s7677_s7 + $0xcc] ss:$44 sps:$4 sm:$0xff]  }
  0xd1   : > { %3261 = vmatprep.mubr.bf16.mxu1 %v6981_v48  ;;  %3839 = vmatprep.mubr.bf16.mxu0 %v6983_v49  ;;  %v7101_v47 = vld [vmem:[%s8924_s1 + $0x210] sm:$0xff]   ;;  %v7115_v48 = vld [vmem:[%s8924_s1 + $0x218] sm:$0xff]  }
  0xd2   : > { %v7085_v49 = vld [vmem:[%s7677_s7 + $0x8f0] ss:$44 sps:$4 sm:$0xff]  }
  0xd8   : > { %3262 = vmatmul.mubr.bf16.gmra.mrb[48].mxu1 %v6985_v50  ;;  %3840 = vmatmul.mubr.bf16.gmra.mrb[48].mxu0 %v6986_v51  ;;  %v7086_v50 = vld [vmem:[%s7677_s7 + $0xc8] ss:$44 sps:$4 sm:$0xff]   ;;  %v7089_v51 = vld [vmem:[%s7677_s7 + $0x94c] ss:$44 sps:$4 sm:$0xff]  }
  0xd9   : > { %3269 = vmatprep.mubr.bf16.mxu1 %v6989_v52  ;;  %3847 = vmatprep.mubr.bf16.mxu0 %v6991_v53  ;;  %v7091_v52 = vld [vmem:[%s7677_s7 + $0x124] ss:$44 sps:$4 sm:$0xff]   ;;  %v7129_v53 = vld [vmem:[%s8924_s1 + $0x220] sm:$0xff]  }
  0xe0   : > { %3270 = vmatmul.mubr.bf16.gmra.mrb[52].mxu1 %v6993_v55  ;;  %3848 = vmatmul.mubr.bf16.gmra.mrb[52].mxu0 %v6994_v56  ;;  %v7093_v55 = vld [vmem:[%s7677_s7 + $0x948] ss:$44 sps:$4 sm:$0xff]   ;;  %v7094_v56 = vld [vmem:[%s7677_s7 + $0x120] ss:$44 sps:$4 sm:$0xff]  }
  0xe1   : > { %3277 = vmatprep.mubr.bf16.mxu1 %v6996_v57  ;;  %3855 = vmatprep.mubr.bf16.mxu0 %v6998_v58  ;;  %v7095_v57 = vld [vmem:[%s7677_s7 + $0x9a4] ss:$44 sps:$4 sm:$0xff]   ;;  %v7097_v58 = vld [vmem:[%s7677_s7 + $0x17c] ss:$44 sps:$4 sm:$0xff]  }
  0xe8   : > { %3278 = vmatmul.mubr.bf16.gmra.mrb[56].mxu1 %v7000_v59  ;;  %3856 = vmatmul.mubr.bf16.gmra.mrb[56].mxu0 %v7001_v60  ;;  %v7155_v59 = vld [vmem:[%s8924_s1 + $0x230] sm:$0xff]   ;;  %v7168_v60 = vld [vmem:[%s8924_s1 + $0x238] sm:$0xff]  }
  0xe9   : > { %3285 = vmatprep.mubr.bf16.mxu1 %v7003_v61  ;;  %3863 = vmatprep.mubr.bf16.mxu0 %v7005_v62  ;;  %v7099_v61 = vld [vmem:[%s7677_s7 + $0x9a0] ss:$44 sps:$4 sm:$0xff]   ;;  %v7100_v62 = vld [vmem:[%s7677_s7 + $0x178] ss:$44 sps:$4 sm:$0xff]  }
  0xf0   : > { %3286 = vmatmul.mubr.bf16.gmra.mrb[60].mxu1 %v7007_v1  ;;  %3864 = vmatmul.mubr.bf16.gmra.mrb[60].mxu0 %v7008_v2  ;;  %v7105_v1 = vld [vmem:[%s7677_s7 + $0x1d4] ss:$44 sps:$4 sm:$0xff]   ;;  %v7181_v2 = vld [vmem:[%s8924_s1 + $0x240] sm:$0xff]  }
  0xf1   : > { %3293 = vmatprep.mubr.bf16.mxu1 %v7010_v3  ;;  %3871 = vmatprep.mubr.bf16.mxu0 %v7012_v4  ;;  %v7194_v3 = vld [vmem:[%s8924_s1 + $0x248] sm:$0xff]  }
  0xf2   : > { %v7107_v4 = vld [vmem:[%s7677_s7 + $0x9f8] ss:$44 sps:$4 sm:$0xff]  }
  0xf8   : > { %3294 = vmatmul.mubr.bf16.gmra.mrb[64].mxu1 %v7014_v5  ;;  %3872 = vmatmul.mubr.bf16.gmra.mrb[64].mxu0 %v7015_v6  ;;  %v7108_v5 = vld [vmem:[%s7677_s7 + $0x1d0] ss:$44 sps:$4 sm:$0xff]   ;;  %v7109_v6 = vld [vmem:[%s7677_s7 + $0xa54] ss:$44 sps:$4 sm:$0xff]  }
  0xf9   : > { %3301 = vmatprep.mubr.bf16.mxu1 %v7018_v7  ;;  %3879 = vmatprep.mubr.bf16.mxu0 %v7020_v8  ;;  %v7111_v7 = vld [vmem:[%s7677_s7 + $0x22c] ss:$44 sps:$4 sm:$0xff]  }
  0xfa   : > { %v7207_v8 = vld [vmem:[%s8924_s1 + $0x250] sm:$0xff]  }
 0x100   : > { %3302 = vmatmul.mubr.bf16.gmra.mrb[68].mxu1 %v7022_v9  ;;  %3880 = vmatmul.mubr.bf16.gmra.mrb[68].mxu0 %v7023_v10  ;;  %v7113_v9 = vld [vmem:[%s7677_s7 + $0xa50] ss:$44 sps:$4 sm:$0xff]   ;;  %v7114_v10 = vld [vmem:[%s7677_s7 + $0x228] ss:$44 sps:$4 sm:$0xff]  }
 0x101   : > { %3309 = vmatprep.mubr.bf16.mxu1 %v7024_v11  ;;  %3887 = vmatprep.mubr.bf16.mxu0 %v7026_v12  ;;  %v7117_v11 = vld [vmem:[%s7677_s7 + $0xaac] ss:$44 sps:$4 sm:$0xff]   ;;  %v7119_v12 = vld [vmem:[%s7677_s7 + $0x284] ss:$44 sps:$4 sm:$0xff]  }
 0x108   : > { %3310 = vmatmul.mubr.bf16.gmra.mrb[72].mxu1 %v7028_v13  ;;  %3888 = vmatmul.mubr.bf16.gmra.mrb[72].mxu0 %v7029_v14  ;;  %v7220_v13 = vld [vmem:[%s8924_s1 + $0x258] sm:$0xff]  }
 0x109   : > { %3317 = vmatprep.mubr.bf16.mxu1 %v7032_v15  ;;  %3895 = vmatprep.mubr.bf16.mxu0 %v7034_v16  ;;  %v7121_v14 = vld [vmem:[%s7677_s7 + $0xaa8] ss:$44 sps:$4 sm:$0xff]   ;;  %v7122_v15 = vld [vmem:[%s7677_s7 + $0x280] ss:$44 sps:$4 sm:$0xff]  }
 0x10a   : > { %v7125_v16 = vld [vmem:[%s7677_s7 + $0xc] ss:$44 sps:$4 sm:$0xff]  }
 0x110   : > { %3318 = vmatmul.mubr.bf16.gmra.mrb[76].mxu1 %v7036_v17  ;;  %3896 = vmatmul.mubr.bf16.gmra.mrb[76].mxu0 %v7037_v18  ;;  %v7126_v17 = vld [vmem:[%s7677_s7 + $0x2dc] ss:$44 sps:$4 sm:$0xff]  }
 0x111   : > { %3325 = vmatprep.mubr.bf16.mxu1 %v7039_v19  ;;  %3903 = vmatprep.mubr.bf16.mxu0 %v7041_v20  ;;  %v7123_v18 = vld [vmem:[%s7677_s7 + $0x8] ss:$44 sps:$4 sm:$0xff]   ;;  %v7128_v19 = vld [vmem:[%s7677_s7 + $0x2d8] ss:$44 sps:$4 sm:$0xff]  }
 0x112   : > { %v7130_v20 = vld [vmem:[%s7677_s7 + $0x64] ss:$44 sps:$4 sm:$0xff]  }
 0x118   : > { %3326 = vmatmul.mubr.bf16.gmra.mrb[80].mxu1 %v7043_v21  ;;  %3904 = vmatmul.mubr.bf16.gmra.mrb[80].mxu0 %v7044_v22  ;;  %v7132_v21 = vld [vmem:[%s7677_s7 + $0x334] ss:$44 sps:$4 sm:$0xff]   ;;  %v7463_v22 = vld [vmem:[%s8924_s1 + $0x100] sm:$0xff]  }
 0x119   : > { %3333 = vmatprep.mubr.bf16.mxu1 %v7046_v23  ;;  %3911 = vmatprep.mubr.bf16.mxu0 %v7048_v24  ;;  %v7233_v23 = vld [vmem:[%s8924_s1 + $0x260] sm:$0xff]   ;;  %v7134_v24 = vld [vmem:[%s7677_s7 + $0x60] ss:$44 sps:$4 sm:$0xff]  }
 0x120   : > { %3334 = vmatmul.mubr.bf16.gmra.mrb[84].mxu1 %v7050_v25  ;;  %3912 = vmatmul.mubr.bf16.gmra.mrb[84].mxu0 %v7051_v26  ;;  %v7135_v25 = vld [vmem:[%s7677_s7 + $0x330] ss:$44 sps:$4 sm:$0xff]  }
 0x121   : > { %3341 = vmatprep.mubr.bf16.mxu1 %v7053_v27  ;;  %3919 = vmatprep.mubr.bf16.mxu0 %v7055_v28  ;;  %v7136_v26 = vld [vmem:[%s7677_s7 + $0xbc] ss:$44 sps:$4 sm:$0xff]   ;;  %v7464_v27 = vld [vmem:[%s8924_s1 + $0x108] sm:$0xff]   ;;  %v7138_v28 = vld [vmem:[%s7677_s7 + $0x38c] ss:$44 sps:$4 sm:$0xff]  }
 0x128   : > { %3342 = vmatmul.mubr.bf16.gmra.mrb[88].mxu1 %v7057_v29  ;;  %3920 = vmatmul.mubr.bf16.gmra.mrb[88].mxu0 %v7058_v30  ;;  %v7465_v29 = vld [vmem:[%s8924_s1 + $0x110] sm:$0xff]   ;;  %v7140_v30 = vld [vmem:[%s7677_s7 + $0xb8] ss:$44 sps:$4 sm:$0xff]  }
 0x129   : > { %3349 = vmatprep.mubr.bf16.mxu1 %v7061_v31  ;;  %3927 = vmatprep.mubr.bf16.mxu0 %v7063_v32  ;;  %v7141_v31 = vld [vmem:[%s7677_s7 + $0x388] ss:$44 sps:$4 sm:$0xff]  }
 0x12a   : > { %v7143_v32 = vld [vmem:[%s7677_s7 + $0x114] ss:$44 sps:$4 sm:$0xff]  }
 0x130   : > { %3350 = vmatmul.mubr.bf16.gmra.mrb[92].mxu1 %v7065_v33  ;;  %3928 = vmatmul.mubr.bf16.gmra.mrb[92].mxu0 %v7066_v34  ;;  %v7145_v33 = vld [vmem:[%s7677_s7 + $0x3e4] ss:$44 sps:$4 sm:$0xff]  }
 0x131   : > { %3357 = vmatprep.mubr.bf16.mxu1 %v7067_v35  ;;  %4032 = vmatprep.mubr.bf16.mxu0 %v7071_v36  ;;  %v7466_v34 = vld [vmem:[%s8924_s1 + $0x118] sm:$0xff]   ;;  %v7246_v35 = vld [vmem:[%s8924_s1 + $0x268] sm:$0xff]   ;;  %v7467_v36 = vld [vmem:[%s8924_s1 + $0x120] sm:$0xff]  }
 0x138   : > { %3358 = vmatmul.mubr.bf16.gmra.mrb[96].mxu1 %v7072_v37  ;;  %4033 = vmatmul.mubr.bf16.vlgmr.msra.gmra.mrb[0].mxu0 %v7069_v38  ;;  %v7147_v37 = vld [vmem:[%s7677_s7 + $0x110] ss:$44 sps:$4 sm:$0xff]   ;;  %v7148_v38 = vld [vmem:[%s7677_s7 + $0x3e0] ss:$44 sps:$4 sm:$0xff]  }
 0x139   : > { %3365 = vmatprep.mubr.bf16.mxu1 %v7075_v39  ;;  %4290 = vmatpush1.bf16.msra.mxu0 %v7073_v40  ;;  %v7149_v39 = vld [vmem:[%s7677_s7 + $0x16c] ss:$44 sps:$4 sm:$0xff]   ;;  %v7151_v40 = vld [vmem:[%s7677_s7 + $0x43c] ss:$44 sps:$4 sm:$0xff]  }
 0x13a   : > { %4040 = vmatprep.mubr.bf16.mxu0 %v7077_v41  ;;  %4291 = vmatprep.subr.bf16.mxu0 %v7565_v0  ;;  %v7468_v41 = vld [vmem:[%s8924_s1 + $0x128] sm:$0xff]  }
 0x13d   : > { %4292 = vmatpush1.bf16.msra.mxu0 %v7087_v43  ;;  %v7153_v43 = vld [vmem:[%s7677_s7 + $0x168] ss:$44 sps:$4 sm:$0xff]  }
 0x13e   : > { %4293 = vmatprep.subr.bf16.mxu0 %v7565_v0 }
 0x140   : > { %3366 = vmatmul.mubr.bf16.gmra.mrb[100].mxu1 %v7079_v42  ;;  %4041 = vmatmul.mubr.bf16.gmra.mrb[4].mxu0 %v7080_v44  ;;  %v7469_v42 = vld [vmem:[%s8924_s1 + $0x130] sm:$0xff]   ;;  %v7154_v44 = vld [vmem:[%s7677_s7 + $0x438] ss:$44 sps:$4 sm:$0xff]  }
 0x141   : > { %3373 = vmatprep.mubr.bf16.mxu1 %v7081_v45  ;;  %4048 = vmatprep.mubr.bf16.mxu0 %v7083_v46  ;;  %v7156_v45 = vld [vmem:[%s7677_s7 + $0x1c4] ss:$44 sps:$4 sm:$0xff]   ;;  %v7158_v46 = vld [vmem:[%s7677_s7 + $0x494] ss:$44 sps:$4 sm:$0xff]  }
 0x142   : > { %4294 = vmatpush1.bf16.msra.mxu0 %v7101_v47  ;;  %v7470_v47 = vld [vmem:[%s8924_s1 + $0x138] sm:$0xff]  }
 0x143   : > { %4295 = vmatprep.subr.bf16.mxu0 %v7565_v0 }
 0x146   : > { %4296 = vmatpush1.bf16.msra.mxu0 %v7115_v48  ;;  %v7259_v48 = vld [vmem:[%s8924_s1 + $0x270] sm:$0xff]  }
 0x147   : > { %4297 = vmatprep.subr.bf16.mxu0 %v7565_v0 }
 0x148   : > { %3374 = vmatmul.mubr.bf16.gmra.mrb[104].mxu1 %v7085_v49  ;;  %4049 = vmatmul.mubr.bf16.gmra.mrb[8].mxu0 %v7086_v50  ;;  %v7471_v49 = vld [vmem:[%s8924_s1 + $0x140] sm:$0xff]   ;;  %v7160_v50 = vld [vmem:[%s7677_s7 + $0x1c0] ss:$44 sps:$4 sm:$0xff]  }
 0x149   : > { %3381 = vmatprep.mubr.bf16.mxu1 %v7089_v51  ;;  %4056 = vmatprep.mubr.bf16.mxu0 %v7091_v52  ;;  %v7161_v51 = vld [vmem:[%s7677_s7 + $0x490] ss:$44 sps:$4 sm:$0xff]  }
 0x14a   : > { %4298 = vmatpush1.bf16.msra.mxu0 %v7129_v53  ;;  %v7162_v52 = vld [vmem:[%s7677_s7 + $0x21c] ss:$44 sps:$4 sm:$0xff]   ;;  %v7164_v53 = vld [vmem:[%s7677_s7 + $0x4ec] ss:$44 sps:$4 sm:$0xff]  }
 0x14b   : > { %4299 = vmatprep.subr.bf16.mxu0 %v7565_v0 }
 0x14e   : > { %4300 = vmatpush1.bf16.msra.mxu0 %v7142_v54  ;;  %v7472_v54 = vld [vmem:[%s8924_s1 + $0x148] sm:$0xff]  }
 0x14f   : > { %4301 = vmatprep.subr.bf16.mxu0 %v7565_v0 }
 0x150   : > { %3382 = vmatmul.mubr.bf16.gmra.mrb[108].mxu1 %v7093_v55  ;;  %4057 = vmatmul.mubr.bf16.gmra.mrb[12].mxu0 %v7094_v56  ;;  %v7473_v55 = vld [vmem:[%s8924_s1 + $0x150] sm:$0xff]   ;;  %v7166_v56 = vld [vmem:[%s7677_s7 + $0x218] ss:$44 sps:$4 sm:$0xff]  }
 0x151   : > { %3389 = vmatprep.mubr.bf16.mxu1 %v7095_v57  ;;  %4064 = vmatprep.mubr.bf16.mxu0 %v7097_v58  ;;  %v7167_v57 = vld [vmem:[%s7677_s7 + $0x4e8] ss:$44 sps:$4 sm:$0xff]  }
 0x152   : > { %4302 = vmatpush1.bf16.msra.mxu0 %v7155_v59  ;;  %v7169_v58 = vld [vmem:[%s7677_s7 + $0x274] ss:$44 sps:$4 sm:$0xff]   ;;  %v7171_v59 = vld [vmem:[%s7677_s7 + $0x544] ss:$44 sps:$4 sm:$0xff]  }
 0x153   : > { %4303 = vmatprep.subr.bf16.mxu0 %v7565_v0 }
 0x156   : > { %4304 = vmatpush1.bf16.msra.mxu0 %v7168_v60  ;;  %v7474_v60 = vld [vmem:[%s8924_s1 + $0x158] sm:$0xff]  }
 0x157   : > { %4305 = vmatprep.subr.bf16.mxu0 %v7565_v0 }
 0x158   : > { %3390 = vmatmul.mubr.bf16.gmra.mrb[112].mxu1 %v7099_v61  ;;  %4065 = vmatmul.mubr.bf16.gmra.mrb[16].mxu0 %v7100_v62  ;;  %v7272_v61 = vld [vmem:[%s8924_s1 + $0x278] sm:$0xff]   ;;  %v7475_v62 = vld [vmem:[%s8924_s1 + $0x160] sm:$0xff]  }
 0x159   : > { %3397 = vmatprep.mubr.bf16.mxu1 %v7103_v63  ;;  %4072 = vmatprep.mubr.bf16.mxu0 %v7105_v1  ;;  %v7173_v63 = vld [vmem:[%s7677_s7 + $0x270] ss:$44 sps:$4 sm:$0xff]   ;;  %v7174_v1 = vld [vmem:[%s7677_s7 + $0x540] ss:$44 sps:$4 sm:$0xff]  }
 0x15a   : > { %4306 = vmatpush1.bf16.msra.mxu0 %v7181_v2  ;;  %v7175_v2 = vld [vmem:[%s7677_s7 + $0x2cc] ss:$44 sps:$4 sm:$0xff]  }
 0x15b   : > { %4307 = vmatprep.subr.bf16.mxu0 %v7565_v0 }
 0x15e   : > { %4308 = vmatpush1.bf16.msra.mxu0 %v7194_v3  ;;  %v7177_v3 = vld [vmem:[%s7677_s7 + $0x59c] ss:$44 sps:$4 sm:$0xff]  }
 0x15f   : > { %4309 = vmatprep.subr.bf16.mxu0 %v7565_v0 }
 0x160   : > { %3398 = vmatmul.mubr.bf16.gmra.mrb[116].mxu1 %v7107_v4  ;;  %4073 = vmatmul.mubr.bf16.gmra.mrb[20].mxu0 %v7108_v5  ;;  %v7476_v4 = vld [vmem:[%s8924_s1 + $0x168] sm:$0xff]   ;;  %v7477_v5 = vld [vmem:[%s8924_s1 + $0x170] sm:$0xff]  }
 0x161   : > { %3405 = vmatprep.mubr.bf16.mxu1 %v7109_v6  ;;  %4080 = vmatprep.mubr.bf16.mxu0 %v7111_v7  ;;  %v7179_v6 = vld [vmem:[%s7677_s7 + $0x2c8] ss:$44 sps:$4 sm:$0xff]   ;;  %v7180_v7 = vld [vmem:[%s7677_s7 + $0x598] ss:$44 sps:$4 sm:$0xff]  }
 0x162   : > { %4310 = vmatpush1.bf16.msra.mxu0 %v7207_v8  ;;  %v7182_v8 = vld [vmem:[%s7677_s7 + $0x324] ss:$44 sps:$4 sm:$0xff]  }
 0x163   : > { %4311 = vmatprep.subr.bf16.mxu0 %v7565_v0 }
 0x166   : > { %4312 = vmatpush1.bf16.msra.mxu0 %v7220_v13  ;;  %v7190_v13 = vld [vmem:[%s7677_s7 + $0x64c] ss:$44 sps:$4 sm:$0xff]  }
 0x167   : > { %4313 = vmatprep.subr.bf16.mxu0 %v7565_v0 }
 0x168   : > { %3406 = vmatmul.mubr.bf16.gmra.mrb[120].mxu1 %v7113_v9  ;;  %4081 = vmatmul.mubr.bf16.gmra.mrb[24].mxu0 %v7114_v10  ;;  %v7184_v9 = vld [vmem:[%s7677_s7 + $0x5f4] ss:$44 sps:$4 sm:$0xff]  }
 0x169   : > { %3413 = vmatprep.mubr.bf16.mxu1 %v7117_v11  ;;  %4088 = vmatprep.mubr.bf16.mxu0 %v7119_v12  ;;  %v7478_v10 = vld [vmem:[%s8924_s1 + $0x178] sm:$0xff]   ;;  %v7186_v11 = vld [vmem:[%s7677_s7 + $0x320] ss:$44 sps:$4 sm:$0xff]   ;;  %v7188_v12 = vld [vmem:[%s7677_s7 + $0x37c] ss:$44 sps:$4 sm:$0xff]  }
 0x16a   : > { %4314 = vmatpush1.bf16.msra.mxu0 %v7233_v23  ;;  %v7206_v23 = vld [vmem:[%s7677_s7 + $0x6f8] ss:$44 sps:$4 sm:$0xff]  }
 0x16b   : > { %4315 = vmatprep.subr.bf16.mxu0 %v7565_v0 }
 0x16e   : > { %4316 = vmatpush1.bf16.msra.mxu0 %v7246_v35  ;;  %v7226_v35 = vld [vmem:[%s7677_s7 + $0x800] ss:$44 sps:$4 sm:$0xff]  }
 0x16f   : > { %4317 = vmatprep.subr.bf16.mxu0 %v7565_v0 }
 0x170   : > { %3414 = vmatmul.mubr.bf16.gmra.mrb[124].mxu1 %v7121_v14  ;;  %4089 = vmatmul.mubr.bf16.gmra.mrb[28].mxu0 %v7122_v15  ;;  %v7192_v14 = vld [vmem:[%s7677_s7 + $0x378] ss:$44 sps:$4 sm:$0xff]   ;;  %v7193_v15 = vld [vmem:[%s7677_s7 + $0x648] ss:$44 sps:$4 sm:$0xff]  }
 0x171   : > { %3454 = vmatprep.mubr.bf16.mxu1 %v7125_v16  ;;  %4096 = vmatprep.mubr.bf16.mxu0 %v7126_v17  ;;  %v7195_v16 = vld [vmem:[%s7677_s7 + $0x3d4] ss:$44 sps:$4 sm:$0xff]   ;;  %v7197_v17 = vld [vmem:[%s7677_s7 + $0x6a4] ss:$44 sps:$4 sm:$0xff]  }
 0x172   : > { %4318 = vmatpush1.bf16.msra.mxu0 %v7259_v48  ;;  %v7245_v48 = vld [vmem:[%s7677_s7 + $0x908] ss:$44 sps:$4 sm:$0xff]  }
 0x173   : > { %4319 = vmatprep.subr.bf16.mxu0 %v7565_v0 }
 0x176   : > { %4320 = vmatpush1.bf16.msra.mxu0 %v7272_v61  ;;  %v7266_v61 = vld [vmem:[%s7677_s7 + $0x79c] ss:$44 sps:$4 sm:$0xff]  }
 0x178   : > { %3455 = vmatmul.mubr.bf16.vlgmr.msra.gmra.mrb[0].mxu1 %v7123_v18  ;;  %4097 = vmatmul.mubr.bf16.gmra.mrb[32].mxu0 %v7128_v19  ;;  %v7199_v18 = vld [vmem:[%s7677_s7 + $0x3d0] ss:$44 sps:$4 sm:$0xff]   ;;  %v7200_v19 = vld [vmem:[%s7677_s7 + $0x6a0] ss:$44 sps:$4 sm:$0xff]  }
 0x179   : > { %6274 = vmatpush1.bf16.msra.mxu1 %v7463_v22  ;;  %3462 = vmatprep.mubr.bf16.mxu1 %v7130_v20  ;;  %v7201_v20 = vld [vmem:[%s7677_s7 + $0x42c] ss:$44 sps:$4 sm:$0xff]   ;;  %v7205_v22 = vld [vmem:[%s7677_s7 + $0x428] ss:$44 sps:$4 sm:$0xff]  }
 0x17a   : > { %4104 = vmatprep.mubr.bf16.mxu0 %v7132_v21  ;;  %6259 = vmatprep.subr.bf16.mxu1 %v7565_v0  ;;  %v7203_v21 = vld [vmem:[%s7677_s7 + $0x6fc] ss:$44 sps:$4 sm:$0xff]  }
 0x17d   : > { %6275 = vmatpush1.bf16.msra.mxu1 %v7464_v27  ;;  %v7213_v27 = vld [vmem:[%s7677_s7 + $0x750] ss:$44 sps:$4 sm:$0xff]  }
 0x17e   : > { %6260 = vmatprep.subr.bf16.mxu1 %v7565_v0 }
 0x180   : > { %3463 = vmatmul.mubr.bf16.gmra.mrb[4].mxu1 %v7134_v24  ;;  %4105 = vmatmul.mubr.bf16.gmra.mrb[36].mxu0 %v7135_v25  ;;  %v7208_v24 = vld [vmem:[%s7677_s7 + $0x484] ss:$44 sps:$4 sm:$0xff]   ;;  %v7210_v25 = vld [vmem:[%s7677_s7 + $0x754] ss:$44 sps:$4 sm:$0xff]  }
 0x181   : > { %3470 = vmatprep.mubr.bf16.mxu1 %v7136_v26  ;;  %4112 = vmatprep.mubr.bf16.mxu0 %v7138_v28  ;;  %v7212_v26 = vld [vmem:[%s7677_s7 + $0x480] ss:$44 sps:$4 sm:$0xff]   ;;  %v7214_v28 = vld [vmem:[%s7677_s7 + $0x4dc] ss:$44 sps:$4 sm:$0xff]  }
 0x182   : > { %6276 = vmatpush1.bf16.msra.mxu1 %v7465_v29  ;;  %v7216_v29 = vld [vmem:[%s7677_s7 + $0x7ac] ss:$44 sps:$4 sm:$0xff]  }
 0x183   : > { %6261 = vmatprep.subr.bf16.mxu1 %v7565_v0 }
 0x186   : > { %6277 = vmatpush1.bf16.msra.mxu1 %v7466_v34  ;;  %v7225_v34 = vld [vmem:[%s7677_s7 + $0x530] ss:$44 sps:$4 sm:$0xff]  }
 0x187   : > { %6262 = vmatprep.subr.bf16.mxu1 %v7565_v0 }
 0x188   : > { %3471 = vmatmul.mubr.bf16.gmra.mrb[8].mxu1 %v7140_v30  ;;  %4113 = vmatmul.mubr.bf16.gmra.mrb[40].mxu0 %v7141_v31  ;;  %v7218_v30 = vld [vmem:[%s7677_s7 + $0x4d8] ss:$44 sps:$4 sm:$0xff]   ;;  %v7219_v31 = vld [vmem:[%s7677_s7 + $0x7a8] ss:$44 sps:$4 sm:$0xff]  }
 0x189   : > { %3478 = vmatprep.mubr.bf16.mxu1 %v7143_v32  ;;  %4120 = vmatprep.mubr.bf16.mxu0 %v7145_v33  ;;  %v7221_v32 = vld [vmem:[%s7677_s7 + $0x534] ss:$44 sps:$4 sm:$0xff]   ;;  %v7223_v33 = vld [vmem:[%s7677_s7 + $0x804] ss:$44 sps:$4 sm:$0xff]  }
 0x18a   : > { %6278 = vmatpush1.bf16.msra.mxu1 %v7467_v36  ;;  %v7227_v36 = vld [vmem:[%s7677_s7 + $0x58c] ss:$44 sps:$4 sm:$0xff]  }
 0x18b   : > { %6263 = vmatprep.subr.bf16.mxu1 %v7565_v0 }
 0x18e   : > { %6279 = vmatpush1.bf16.msra.mxu1 %v7468_v41  ;;  %v7236_v41 = vld [vmem:[%s7677_s7 + $0x8b4] ss:$44 sps:$4 sm:$0xff]  }
 0x18f   : > { %6264 = vmatprep.subr.bf16.mxu1 %v7565_v0 }
 0x190   : > { %3479 = vmatmul.mubr.bf16.gmra.mrb[12].mxu1 %v7147_v37  ;;  %4121 = vmatmul.mubr.bf16.gmra.mrb[44].mxu0 %v7148_v38  ;;  %v7229_v37 = vld [vmem:[%s7677_s7 + $0x85c] ss:$44 sps:$4 sm:$0xff]  }
 0x191   : > { %3486 = vmatprep.mubr.bf16.mxu1 %v7149_v39  ;;  %4128 = vmatprep.mubr.bf16.mxu0 %v7151_v40  ;;  %v7231_v38 = vld [vmem:[%s7677_s7 + $0x588] ss:$44 sps:$4 sm:$0xff]   ;;  %v7232_v39 = vld [vmem:[%s7677_s7 + $0x858] ss:$44 sps:$4 sm:$0xff]  }
 0x192   : > { %6280 = vmatpush1.bf16.msra.mxu1 %v7469_v42  ;;  %v7234_v40 = vld [vmem:[%s7677_s7 + $0x5e4] ss:$44 sps:$4 sm:$0xff]   ;;  %v8268_v42 = vld [vmem:[%s8924_s1 + $0x280] sm:$0xff]  }
 0x193   : > { %6265 = vmatprep.subr.bf16.mxu1 %v7565_v0 }
 0x196   : > { %6281 = vmatpush1.bf16.msra.mxu1 %v7470_v47  ;;  %v7244_v47 = vld [vmem:[%s7677_s7 + $0x638] ss:$44 sps:$4 sm:$0xff]  }
 0x197   : > { %6266 = vmatprep.subr.bf16.mxu1 %v7565_v0 }
 0x198   : > { %3487 = vmatmul.mubr.bf16.gmra.mrb[16].mxu1 %v7153_v43  ;;  %4129 = vmatmul.mubr.bf16.gmra.mrb[48].mxu0 %v7154_v44  ;;  %v7238_v43 = vld [vmem:[%s7677_s7 + $0x5e0] ss:$44 sps:$4 sm:$0xff]   ;;  %v7239_v44 = vld [vmem:[%s7677_s7 + $0x8b0] ss:$44 sps:$4 sm:$0xff]  }
 0x199   : > { %3494 = vmatprep.mubr.bf16.mxu1 %v7156_v45  ;;  %4136 = vmatprep.mubr.bf16.mxu0 %v7158_v46  ;;  %v7240_v45 = vld [vmem:[%s7677_s7 + $0x63c] ss:$44 sps:$4 sm:$0xff]   ;;  %v7242_v46 = vld [vmem:[%s7677_s7 + $0x90c] ss:$44 sps:$4 sm:$0xff]  }
 0x19a   : > { %6282 = vmatpush1.bf16.msra.mxu1 %v7471_v49  ;;  %v7247_v49 = vld [vmem:[%s7677_s7 + $0x694] ss:$44 sps:$4 sm:$0xff]  }
 0x19b   : > { %6267 = vmatprep.subr.bf16.mxu1 %v7565_v0 }
 0x19e   : > { %6283 = vmatpush1.bf16.msra.mxu1 %v7472_v54  ;;  %v7255_v54 = vld [vmem:[%s7677_s7 + $0x9bc] ss:$44 sps:$4 sm:$0xff]  }
 0x19f   : > { %6268 = vmatprep.subr.bf16.mxu1 %v7565_v0 }
 0x1a0   : > { %3495 = vmatmul.mubr.bf16.gmra.mrb[20].mxu1 %v7160_v50  ;;  %4137 = vmatmul.mubr.bf16.gmra.mrb[52].mxu0 %v7161_v51  ;;  %v7249_v50 = vld [vmem:[%s7677_s7 + $0x964] ss:$44 sps:$4 sm:$0xff]  }
 0x1a1   : > { %3502 = vmatprep.mubr.bf16.mxu1 %v7162_v52  ;;  %4144 = vmatprep.mubr.bf16.mxu0 %v7164_v53  ;;  %v7251_v51 = vld [vmem:[%s7677_s7 + $0x690] ss:$44 sps:$4 sm:$0xff]   ;;  %v7252_v52 = vld [vmem:[%s7677_s7 + $0x960] ss:$44 sps:$4 sm:$0xff]  }
 0x1a2   : > { %6284 = vmatpush1.bf16.msra.mxu1 %v7473_v55  ;;  %v7253_v53 = vld [vmem:[%s7677_s7 + $0x6ec] ss:$44 sps:$4 sm:$0xff]   ;;  %v7257_v55 = vld [vmem:[%s7677_s7 + $0x6e8] ss:$44 sps:$4 sm:$0xff]  }
 0x1a3   : > { %6269 = vmatprep.subr.bf16.mxu1 %v7565_v0 }
 0x1a6   : > { %6285 = vmatpush1.bf16.msra.mxu1 %v7474_v60  ;;  %v7265_v60 = vld [vmem:[%s7677_s7 + $0xa10] ss:$44 sps:$4 sm:$0xff]  }
 0x1a7   : > { %6270 = vmatprep.subr.bf16.mxu1 %v7565_v0 }
 0x1a8   : > { %3503 = vmatmul.mubr.bf16.gmra.mrb[24].mxu1 %v7166_v56  ;;  %4145 = vmatmul.mubr.bf16.gmra.mrb[56].mxu0 %v7167_v57  ;;  %v7258_v56 = vld [vmem:[%s7677_s7 + $0x9b8] ss:$44 sps:$4 sm:$0xff]  }
 0x1a9   : > { %3510 = vmatprep.mubr.bf16.mxu1 %v7169_v58  ;;  %4152 = vmatprep.mubr.bf16.mxu0 %v7171_v59  ;;  %v7260_v57 = vld [vmem:[%s7677_s7 + $0x744] ss:$44 sps:$4 sm:$0xff]   ;;  %v7262_v58 = vld [vmem:[%s7677_s7 + $0xa14] ss:$44 sps:$4 sm:$0xff]  }
 0x1aa   : > { %6286 = vmatpush1.bf16.msra.mxu1 %v7475_v62  ;;  %v7264_v59 = vld [vmem:[%s7677_s7 + $0x740] ss:$44 sps:$4 sm:$0xff]  }
 0x1ab   : > { %6271 = vmatprep.subr.bf16.mxu1 %v7565_v0  ;;  %v7268_v62 = vld [vmem:[%s7677_s7 + $0xa6c] ss:$44 sps:$4 sm:$0xff]  }
 0x1ae   : > { %6287 = vmatpush1.bf16.msra.mxu1 %v7476_v4  ;;  %v7277_v4 = vld [vmem:[%s7677_s7 + $0x7f0] ss:$44 sps:$4 sm:$0xff]  }
 0x1af   : > { %6272 = vmatprep.subr.bf16.mxu1 %v7565_v0 }
 0x1b0   : > { %3511 = vmatmul.mubr.bf16.gmra.mrb[28].mxu1 %v7173_v63  ;;  %4153 = vmatmul.mubr.bf16.gmra.mrb[60].mxu0 %v7174_v1  ;;  %v7270_v63 = vld [vmem:[%s7677_s7 + $0x798] ss:$44 sps:$4 sm:$0xff]   ;;  %v7271_v1 = vld [vmem:[%s7677_s7 + $0xa68] ss:$44 sps:$4 sm:$0xff]  }
 0x1b1   : > { %3518 = vmatprep.mubr.bf16.mxu1 %v7175_v2  ;;  %4160 = vmatprep.mubr.bf16.mxu0 %v7177_v3  ;;  %v7273_v2 = vld [vmem:[%s7677_s7 + $0x7f4] ss:$44 sps:$4 sm:$0xff]   ;;  %v7275_v3 = vld [vmem:[%s7677_s7 + $0xac4] ss:$44 sps:$4 sm:$0xff]  }
 0x1b2   : > { %6288 = vmatpush1.bf16.msra.mxu1 %v7477_v5  ;;  %v7278_v5 = vld [vmem:[%s7677_s7 + $0xac0] ss:$44 sps:$4 sm:$0xff]  }
 0x1b3   : > { %6273 = vmatprep.subr.bf16.mxu1 %v7565_v0  ;;  %v7187_v0 = vld [vmem:[%s7677_s7 + $0x5f0] ss:$44 sps:$4 sm:$0xff]  }
 0x1b6   : > { %6289 = vmatpush1.bf16.msra.mxu1 %v7478_v10  ;;  %v7285_v10 = vld [vmem:[%s7677_s7 + $0x8a4] ss:$44 sps:$4 sm:$0xff]  }
 0x1b7   : > { %6178 = vmatprep.subr.bf16.mxu1 %v8268_v42 }
 0x1b8   : > { %3519 = vmatmul.mubr.bf16.gmra.mrb[32].mxu1 %v7179_v6  ;;  %4161 = vmatmul.mubr.bf16.gmra.mrb[64].mxu0 %v7180_v7  ;;  %v7279_v6 = vld [vmem:[%s7677_s7 + $0x84c] ss:$44 sps:$4 sm:$0xff]   ;;  %v7283_v7 = vld [vmem:[%s7677_s7 + $0x24] ss:$44 sps:$4 sm:$0xff]  }
 0x1b9   : > { %3526 = vmatprep.mubr.bf16.mxu1 %v7182_v8  ;;  %4168 = vmatprep.mubr.bf16.mxu0 %v7184_v9  ;;  %v7284_v8 = vld [vmem:[%s7677_s7 + $0x848] ss:$44 sps:$4 sm:$0xff]   ;;  %v7281_v9 = vld [vmem:[%s7677_s7 + $0x20] ss:$44 sps:$4 sm:$0xff]  }
 0x1c0   : > { %3527 = vmatmul.mubr.bf16.gmra.mrb[36].mxu1 %v7186_v11  ;;  %4169 = vmatmul.mubr.bf16.gmra.mrb[68].mxu0 %v7187_v0  ;;  %v7287_v11 = vld [vmem:[%s7677_s7 + $0x7c] ss:$44 sps:$4 sm:$0xff]   ;;  %v7289_v0 = vld [vmem:[%s7677_s7 + $0x8a0] ss:$44 sps:$4 sm:$0xff]  }
 0x1c1   : > { %3534 = vmatprep.mubr.bf16.mxu1 %v7188_v12  ;;  %4176 = vmatprep.mubr.bf16.mxu0 %v7190_v13  ;;  %v7290_v12 = vld [vmem:[%s7677_s7 + $0x78] ss:$44 sps:$4 sm:$0xff]   ;;  %v7291_v13 = vld [vmem:[%s7677_s7 + $0x8fc] ss:$44 sps:$4 sm:$0xff]  }
 0x1c8   : > { %3535 = vmatmul.mubr.bf16.gmra.mrb[40].mxu1 %v7192_v14  ;;  %4177 = vmatmul.mubr.bf16.gmra.mrb[72].mxu0 %v7193_v15  ;;  %v7293_v14 = vld [vmem:[%s7677_s7 + $0xd4] ss:$44 sps:$4 sm:$0xff]   ;;  %v7295_v15 = vld [vmem:[%s7677_s7 + $0x8f8] ss:$44 sps:$4 sm:$0xff]  }
 0x1c9   : > { %3542 = vmatprep.mubr.bf16.mxu1 %v7195_v16  ;;  %4184 = vmatprep.mubr.bf16.mxu0 %v7197_v17  ;;  %v7296_v16 = vld [vmem:[%s7677_s7 + $0xd0] ss:$44 sps:$4 sm:$0xff]   ;;  %v7297_v17 = vld [vmem:[%s7677_s7 + $0x954] ss:$44 sps:$4 sm:$0xff]  }
 0x1d0   : > { %3543 = vmatmul.mubr.bf16.gmra.mrb[44].mxu1 %v7199_v18  ;;  %4185 = vmatmul.mubr.bf16.gmra.mrb[76].mxu0 %v7200_v19  ;;  %v7299_v18 = vld [vmem:[%s7677_s7 + $0x12c] ss:$44 sps:$4 sm:$0xff]  }
 0x1d1   : > { %3550 = vmatprep.mubr.bf16.mxu1 %v7201_v20  ;;  %4192 = vmatprep.mubr.bf16.mxu0 %v7203_v21  ;;  %v7301_v21 = vld [vmem:[%s7677_s7 + $0x950] ss:$44 sps:$4 sm:$0xff]  }
 0x1d8   : > { %3551 = vmatmul.mubr.bf16.gmra.mrb[48].mxu1 %v7205_v22  ;;  %4193 = vmatmul.mubr.bf16.gmra.mrb[80].mxu0 %v7206_v23  ;;  %v7302_v23 = vld [vmem:[%s7677_s7 + $0x128] ss:$44 sps:$4 sm:$0xff]  }
 0x1d9   : > { %3558 = vmatprep.mubr.bf16.mxu1 %v7208_v24  ;;  %4200 = vmatprep.mubr.bf16.mxu0 %v7210_v25  ;;  %v7303_v24 = vld [vmem:[%s7677_s7 + $0x9ac] ss:$44 sps:$4 sm:$0xff]  }
 0x1e0   : > { %3559 = vmatmul.mubr.bf16.gmra.mrb[52].mxu1 %v7212_v26  ;;  %4201 = vmatmul.mubr.bf16.gmra.mrb[84].mxu0 %v7213_v27  ;;  %v7305_v26 = vld [vmem:[%s7677_s7 + $0x184] ss:$44 sps:$4 sm:$0xff]  }
 0x1e1   : > { %3566 = vmatprep.mubr.bf16.mxu1 %v7214_v28  ;;  %4208 = vmatprep.mubr.bf16.mxu0 %v7216_v29  ;;  %v7307_v29 = vld [vmem:[%s7677_s7 + $0x9a8] ss:$44 sps:$4 sm:$0xff]  }
 0x1e8   : > { %3567 = vmatmul.mubr.bf16.gmra.mrb[56].mxu1 %v7218_v30  ;;  %4209 = vmatmul.mubr.bf16.gmra.mrb[88].mxu0 %v7219_v31  ;;  %v7308_v31 = vld [vmem:[%s7677_s7 + $0x180] ss:$44 sps:$4 sm:$0xff]  }
 0x1e9   : > { %3574 = vmatprep.mubr.bf16.mxu1 %v7221_v32  ;;  %4216 = vmatprep.mubr.bf16.mxu0 %v7223_v33  ;;  %v7309_v32 = vld [vmem:[%s7677_s7 + $0xa04] ss:$44 sps:$4 sm:$0xff]  }
 0x1f0   : > { %3575 = vmatmul.mubr.bf16.gmra.mrb[60].mxu1 %v7225_v34  ;;  %4217 = vmatmul.mubr.bf16.gmra.mrb[92].mxu0 %v7226_v35  ;;  %v7311_v34 = vld [vmem:[%s7677_s7 + $0x1dc] ss:$44 sps:$4 sm:$0xff]  }
 0x1f1   : > { %3582 = vmatprep.mubr.bf16.mxu1 %v7227_v36  ;;  %4224 = vmatprep.mubr.bf16.mxu0 %v7229_v37  ;;  %v7313_v37 = vld [vmem:[%s7677_s7 + $0xa00] ss:$44 sps:$4 sm:$0xff]  }
 0x1f8   : > { %3583 = vmatmul.mubr.bf16.gmra.mrb[64].mxu1 %v7231_v38  ;;  %4225 = vmatmul.mubr.bf16.gmra.mrb[96].mxu0 %v7232_v39  ;;  %v7314_v39 = vld [vmem:[%s7677_s7 + $0x1d8] ss:$44 sps:$4 sm:$0xff]  }
 0x1f9   : > { %3590 = vmatprep.mubr.bf16.mxu1 %v7234_v40  ;;  %4232 = vmatprep.mubr.bf16.mxu0 %v7236_v41  ;;  %v7315_v40 = vld [vmem:[%s7677_s7 + $0xa5c] ss:$44 sps:$4 sm:$0xff]  }
 0x200   : > { %3591 = vmatmul.mubr.bf16.gmra.mrb[68].mxu1 %v7238_v43  ;;  %4233 = vmatmul.mubr.bf16.gmra.mrb[100].mxu0 %v7239_v44  ;;  %v7317_v43 = vld [vmem:[%s7677_s7 + $0x234] ss:$44 sps:$4 sm:$0xff]  }
 0x201   : > { %3598 = vmatprep.mubr.bf16.mxu1 %v7240_v45  ;;  %4240 = vmatprep.mubr.bf16.mxu0 %v7242_v46  ;;  %v7319_v46 = vld [vmem:[%s7677_s7 + $0xa58] ss:$44 sps:$4 sm:$0xff]  }
 0x208   : > { %3599 = vmatmul.mubr.bf16.gmra.mrb[72].mxu1 %v7244_v47  ;;  %4241 = vmatmul.mubr.bf16.gmra.mrb[104].mxu0 %v7245_v48  ;;  %v7320_v48 = vld [vmem:[%s7677_s7 + $0x230] ss:$44 sps:$4 sm:$0xff]  }
 0x209   : > { %3606 = vmatprep.mubr.bf16.mxu1 %v7247_v49  ;;  %4248 = vmatprep.mubr.bf16.mxu0 %v7249_v50  ;;  %v7321_v49 = vld [vmem:[%s7677_s7 + $0xab4] ss:$44 sps:$4 sm:$0xff]  }
 0x210   : > { %3607 = vmatmul.mubr.bf16.gmra.mrb[76].mxu1 %v7251_v51  ;;  %4249 = vmatmul.mubr.bf16.gmra.mrb[108].mxu0 %v7252_v52  ;;  %v7323_v51 = vld [vmem:[%s7677_s7 + $0x28c] ss:$44 sps:$4 sm:$0xff]  }
 0x211   : > { %3614 = vmatprep.mubr.bf16.mxu1 %v7253_v53  ;;  %4256 = vmatprep.mubr.bf16.mxu0 %v7255_v54  ;;  %v7325_v54 = vld [vmem:[%s7677_s7 + $0xab0] ss:$44 sps:$4 sm:$0xff]  }
 0x218   : > { %3615 = vmatmul.mubr.bf16.gmra.mrb[80].mxu1 %v7257_v55  ;;  %4257 = vmatmul.mubr.bf16.gmra.mrb[112].mxu0 %v7258_v56  ;;  %v7326_v56 = vld [vmem:[%s7677_s7 + $0x288] ss:$44 sps:$4 sm:$0xff]  }
 0x219   : > { %3622 = vmatprep.mubr.bf16.mxu1 %v7260_v57  ;;  %4264 = vmatprep.mubr.bf16.mxu0 %v7262_v58  ;;  %v7329_v57 = vld [vmem:[%s7677_s7 + $0x854] ss:$44 sps:$4 sm:$0xff]  }
 0x220   : > { %3623 = vmatmul.mubr.bf16.gmra.mrb[84].mxu1 %v7264_v59  ;;  %4265 = vmatmul.mubr.bf16.gmra.mrb[116].mxu0 %v7265_v60  ;;  %v7330_v59 = vld [vmem:[%s7677_s7 + $0x2e4] ss:$44 sps:$4 sm:$0xff]  }
 0x221   : > { %3630 = vmatprep.mubr.bf16.mxu1 %v7266_v61  ;;  %4272 = vmatprep.mubr.bf16.mxu0 %v7268_v62  ;;  %v7327_v62 = vld [vmem:[%s7677_s7 + $0x850] ss:$44 sps:$4 sm:$0xff]  }
 0x228   : > { %3631 = vmatmul.mubr.bf16.gmra.mrb[88].mxu1 %v7270_v63  ;;  %4273 = vmatmul.mubr.bf16.gmra.mrb[120].mxu0 %v7271_v1  ;;  %v7332_v1 = vld [vmem:[%s7677_s7 + $0x2e0] ss:$44 sps:$4 sm:$0xff]  }
 0x229   : > { %3638 = vmatprep.mubr.bf16.mxu1 %v7273_v2  ;;  %4280 = vmatprep.mubr.bf16.mxu0 %v7275_v3  ;;  %v7334_v3 = vld [vmem:[%s7677_s7 + $0x8ac] ss:$44 sps:$4 sm:$0xff]  }
 0x230   : > { %3639 = vmatmul.mubr.bf16.gmra.mrb[92].mxu1 %v7277_v4  ;;  %4281 = vmatmul.mubr.bf16.gmra.mrb[124].mxu0 %v7278_v5  ;;  %v7336_v4 = vld [vmem:[%s7677_s7 + $0x33c] ss:$44 sps:$4 sm:$0xff]   ;;  %v7340_v5 = vld [vmem:[%s8924_s1 + $0x288] sm:$0xff]  }
 0x231   : > { %3646 = vmatprep.mubr.bf16.mxu1 %v7279_v6  ;;  %4321 = vmatprep.mubr.bf16.mxu0 %v7283_v7  ;;  %v7347_v6 = vld [vmem:[%s8924_s1 + $0x290] sm:$0xff]  }
 0x238   : > { %3647 = vmatmul.mubr.bf16.gmra.mrb[96].mxu1 %v7284_v8  ;;  %4322 = vmatmul.mubr.bf16.vlgmr.msra.gmra.mrb[0].mxu0 %v7281_v9  ;;  %v7338_v9 = vld [vmem:[%s7677_s7 + $0x8a8] ss:$44 sps:$4 sm:$0xff]  }
 0x239   : > { %3654 = vmatprep.mubr.bf16.mxu1 %v7285_v10  ;;  %4329 = vmatprep.mubr.bf16.mxu0 %v7287_v11  ;;  %v7339_v11 = vld [vmem:[%s7677_s7 + $0x338] ss:$44 sps:$4 sm:$0xff]  }
 0x240   : > { %3655 = vmatmul.mubr.bf16.gmra.mrb[100].mxu1 %v7289_v0  ;;  %4330 = vmatmul.mubr.bf16.gmra.mrb[4].mxu0 %v7290_v12  ;;  %v7341_v0 = vld [vmem:[%s7677_s7 + $0x904] ss:$44 sps:$4 sm:$0xff]  }
 0x241   : > { %3662 = vmatprep.mubr.bf16.mxu1 %v7291_v13  ;;  %4337 = vmatprep.mubr.bf16.mxu0 %v7293_v14  ;;  %v7354_v13 = vld [vmem:[%s8924_s1 + $0x298] sm:$0xff]  }
 0x248   : > { %3663 = vmatmul.mubr.bf16.gmra.mrb[104].mxu1 %v7295_v15  ;;  %4338 = vmatmul.mubr.bf16.gmra.mrb[8].mxu0 %v7296_v16  ;;  %v7361_v15 = vld [vmem:[%s8924_s1 + $0x2a0] sm:$0xff]  }
 0x249   : > { %3670 = vmatprep.mubr.bf16.mxu1 %v7297_v17  ;;  %4345 = vmatprep.mubr.bf16.mxu0 %v7299_v18  ;;  %v7345_v17 = vld [vmem:[%s7677_s7 + $0x900] ss:$44 sps:$4 sm:$0xff]  }
 0x24b   : > { %v8311_v19 = vpop.f32.mrb[0].mxu1 }
 0x24c   : > { %v3458_v20 = vpop.f32.mrb[1].mxu1 }
 0x24d   : > { %v8314_v22 = vpop.f32.mrb[2].mxu1  ;;  %v7346_v20 = vld [vmem:[%s7677_s7 + $0x390] ss:$44 sps:$4 sm:$0xff]  }
 0x24e   : > { %v3461_v25 = vpop.f32.mrb[3].mxu1 }
 0x24f   : > { %v7368_v25 = vld [vmem:[%s8924_s1 + $0x2a8] sm:$0xff]  }
 0x250   : > { %3671 = vmatmul.mubr.bf16.gmra.mrb[108].mxu1 %v7301_v21  ;;  %4346 = vmatmul.mubr.bf16.gmra.mrb[12].mxu0 %v7302_v23  ;;  %v7348_v21 = vld [vmem:[%s7677_s7 + $0x95c] ss:$44 sps:$4 sm:$0xff]  }
 0x251   : > { %3678 = vmatprep.mubr.bf16.mxu1 %v7303_v24  ;;  %4353 = vmatprep.mubr.bf16.mxu0 %v7305_v26  ;;  %v7350_v24 = vld [vmem:[%s7677_s7 + $0x3ec] ss:$44 sps:$4 sm:$0xff]  }
 0x253   : > { %v8319_v27 = vpop.f32.mrb[4].mxu1 }
 0x254   : > { %v3466_v28 = vpop.f32.mrb[5].mxu1 }
 0x255   : > { %v8322_v30 = vpop.f32.mrb[6].mxu1  ;;  %v7375_v28 = vld [vmem:[%s8924_s1 + $0x2b0] sm:$0xff]  }
 0x256   : > { %v3469_v33 = vpop.f32.mrb[7].mxu1 }
 0x257   : > { %v7353_v33 = vld [vmem:[%s7677_s7 + $0x3e8] ss:$44 sps:$4 sm:$0xff]  }
 0x258   : > { %3679 = vmatmul.mubr.bf16.gmra.mrb[112].mxu1 %v7307_v29  ;;  %4354 = vmatmul.mubr.bf16.gmra.mrb[16].mxu0 %v7308_v31  ;;  %v7352_v31 = vld [vmem:[%s7677_s7 + $0x958] ss:$44 sps:$4 sm:$0xff]  }
 0x259   : > { %3686 = vmatprep.mubr.bf16.mxu1 %v7309_v32  ;;  %4361 = vmatprep.mubr.bf16.mxu0 %v7311_v34  ;;  %v7355_v34 = vld [vmem:[%s7677_s7 + $0x9b4] ss:$44 sps:$4 sm:$0xff]  }
 0x25b   : > { %v8327_v35 = vpop.f32.mrb[8].mxu1 }
 0x25c   : > { %v3474_v36 = vpop.f32.mrb[9].mxu1 }
 0x25d   : > { %v8330_v38 = vpop.f32.mrb[10].mxu1 }
 0x25e   : > { %v3477_v41 = vpop.f32.mrb[11].mxu1 }
 0x260   : > { %3687 = vmatmul.mubr.bf16.gmra.mrb[116].mxu1 %v7313_v37  ;;  %4362 = vmatmul.mubr.bf16.gmra.mrb[20].mxu0 %v7314_v39  ;;  %v7357_v37 = vld [vmem:[%s7677_s7 + $0x444] ss:$44 sps:$4 sm:$0xff]  }
 0x261   : > { %3694 = vmatprep.mubr.bf16.mxu1 %v7315_v40  ;;  %4369 = vmatprep.mubr.bf16.mxu0 %v7317_v43  ;;  %v7382_v39 = vld [vmem:[%s8924_s1 + $0x2b8] sm:$0xff]  }
 0x262   : > { %v7359_v43 = vld [vmem:[%s7677_s7 + $0x9b0] ss:$44 sps:$4 sm:$0xff]  }
 0x263   : > { %v8335_v44 = vpop.f32.mrb[12].mxu1 }
 0x264   : > { %v3482_v45 = vpop.f32.mrb[13].mxu1 }
 0x265   : > { %v8338_v47 = vpop.f32.mrb[14].mxu1 }
 0x266   : > { %v3485_v50 = vpop.f32.mrb[15].mxu1 }
 0x267   : > { %v7364_v50 = vld [vmem:[%s7677_s7 + $0x49c] ss:$44 sps:$4 sm:$0xff]  }
 0x268   : > { %3695 = vmatmul.mubr.bf16.gmra.mrb[120].mxu1 %v7319_v46  ;;  %4370 = vmatmul.mubr.bf16.gmra.mrb[24].mxu0 %v7320_v48  ;;  %v7360_v46 = vld [vmem:[%s7677_s7 + $0x440] ss:$44 sps:$4 sm:$0xff]  }
 0x269   : > { %3702 = vmatprep.mubr.bf16.mxu1 %v7321_v49  ;;  %4377 = vmatprep.mubr.bf16.mxu0 %v7323_v51  ;;  %v7362_v48 = vld [vmem:[%s7677_s7 + $0xa0c] ss:$44 sps:$4 sm:$0xff]  }
 0x26b   : > { %v8343_v52 = vpop.f32.mrb[16].mxu1 }
 0x26c   : > { %v3490_v53 = vpop.f32.mrb[17].mxu1 }
 0x26d   : > { %v8346_v55 = vpop.f32.mrb[18].mxu1 }
 0x26e   : > { %v3493_v58 = vpop.f32.mrb[19].mxu1 }
 0x26f   : > { %v7369_v58 = vld [vmem:[%s7677_s7 + $0xa64] ss:$44 sps:$4 sm:$0xff]  }
 0x270   : > { %3703 = vmatmul.mubr.bf16.gmra.mrb[124].mxu1 %v7325_v54  ;;  %4378 = vmatmul.mubr.bf16.gmra.mrb[28].mxu0 %v7326_v56  ;;  %v7366_v54 = vld [vmem:[%s7677_s7 + $0xa08] ss:$44 sps:$4 sm:$0xff]  }
 0x271   : > { %3935 = vmatprep.mubr.bf16.mxu1 %v7329_v57  ;;  %4385 = vmatprep.mubr.bf16.mxu0 %v7330_v59  ;;  %v7367_v57 = vld [vmem:[%s7677_s7 + $0x498] ss:$44 sps:$4 sm:$0xff]  }
 0x273   : > { %v8351_v60 = vpop.f32.mrb[20].mxu1 }
 0x274   : > { %v3498_v61 = vpop.f32.mrb[21].mxu1 }
 0x275   : > { %v8354_v63 = vpop.f32.mrb[22].mxu1  ;;  %v7371_v61 = vld [vmem:[%s7677_s7 + $0x4f4] ss:$44 sps:$4 sm:$0xff]  }
 0x276   : > { %v3501_v2 = vpop.f32.mrb[23].mxu1 }
 0x277   : > { %v7373_v2 = vld [vmem:[%s7677_s7 + $0xa60] ss:$44 sps:$4 sm:$0xff]  }
 0x278   : > { %3936 = vmatmul.mubr.bf16.vlgmr.msra.gmra.mrb[96].mxu1 %v7327_v62  ;;  %4386 = vmatmul.mubr.bf16.gmra.mrb[32].mxu0 %v7332_v1 }
 0x279   : > { %6179 = vmatpush3.bf16.msra.mxu1 %v8268_v42  ;;  %3943 = vmatprep.mubr.bf16.mxu1 %v7334_v3  ;;  %v7343_v42 = vld [vmem:[%s7677_s7 + $0x394] ss:$44 sps:$4 sm:$0xff]  }
 0x27a   : > { %4393 = vmatprep.mubr.bf16.mxu0 %v7336_v4  ;;  %6180 = vmatprep.subr.bf16.mxu1 %v7340_v5  ;;  %v7374_v4 = vld [vmem:[%s7677_s7 + $0x4f0] ss:$44 sps:$4 sm:$0xff]  }
 0x27b   : > { %v8366_v7 = vpop.f32.mrb[24].mxu1 }
 0x27c   : > { %v3506_v8 = vpop.f32.mrb[25].mxu1 }
 0x27d   : > { %v8369_v10 = vpop.f32.mrb[26].mxu1  ;;  %6181 = vmatpush3.bf16.msra.mxu1 %v7340_v5  ;;  %v7376_v5 = vld [vmem:[%s7677_s7 + $0xabc] ss:$44 sps:$4 sm:$0xff]   ;;  %v7378_v8 = vld [vmem:[%s7677_s7 + $0x54c] ss:$44 sps:$4 sm:$0xff]  }
 0x27e   : > { %v3509_v12 = vpop.f32.mrb[27].mxu1  ;;  %6182 = vmatprep.subr.bf16.mxu1 %v7347_v6 }
 0x280   : > { %3944 = vmatmul.mubr.bf16.gmra.mrb[100].mxu1 %v7338_v9  ;;  %4394 = vmatmul.mubr.bf16.gmra.mrb[36].mxu0 %v7339_v11 }
 0x281   : > { %3951 = vmatprep.mubr.bf16.mxu1 %v7341_v0  ;;  %4401 = vmatprep.mubr.bf16.mxu0 %v7343_v42  ;;  %v7380_v0 = vld [vmem:[%s7677_s7 + $0xab8] ss:$44 sps:$4 sm:$0xff]   ;;  %v7381_v42 = vld [vmem:[%s7677_s7 + $0x548] ss:$44 sps:$4 sm:$0xff]  }
 0x282   : > { %6183 = vmatpush3.bf16.msra.mxu1 %v7347_v6 }
 0x283   : > { %v8377_v14 = vpop.f32.mrb[28].mxu1  ;;  %6184 = vmatprep.subr.bf16.mxu1 %v7354_v13 }
 0x284   : > { %v3514_v16 = vpop.f32.mrb[29].mxu1 }
 0x285   : > { %v8383_v18 = vpop.f32.mrb[30].mxu1  ;;  %v7383_v16 = vld [vmem:[%s7677_s7 + $0x5a4] ss:$44 sps:$4 sm:$0xff]  }
 0x286   : > { %v3517_v23 = vpop.f32.mrb[31].mxu1  ;;  %6185 = vmatpush3.bf16.msra.mxu1 %v7354_v13  ;;  %v7385_v13 = vld [vmem:[%s7677_s7 + $0x28] ss:$44 sps:$4 sm:$0xff]  }
 0x287   : > { %6186 = vmatprep.subr.bf16.mxu1 %v7361_v15 }
 0x288   : > { %3952 = vmatmul.mubr.bf16.gmra.mrb[104].mxu1 %v7345_v17  ;;  %4402 = vmatmul.mubr.bf16.gmra.mrb[40].mxu0 %v7346_v20 }
 0x289   : > { %3959 = vmatprep.mubr.bf16.mxu1 %v7348_v21  ;;  %4409 = vmatprep.mubr.bf16.mxu0 %v7350_v24  ;;  %v7387_v21 = vld [vmem:[%s7677_s7 + $0x80] ss:$44 sps:$4 sm:$0xff]  }
 0x28a   : > { %6187 = vmatpush3.bf16.msra.mxu1 %v7361_v15  ;;  %v7386_v24 = vld [vmem:[%s7677_s7 + $0x5a0] ss:$44 sps:$4 sm:$0xff]  }
 0x28b   : > { %v8391_v26 = vpop.f32.mrb[32].mxu1  ;;  %6188 = vmatprep.subr.bf16.mxu1 %v7368_v25 }
 0x28c   : > { %v3522_v29 = vpop.f32.mrb[33].mxu1 }
 0x28d   : > { %v8397_v32 = vpop.f32.mrb[34].mxu1  ;;  %v7388_v29 = vld [vmem:[%s7677_s7 + $0x5fc] ss:$44 sps:$4 sm:$0xff]  }
 0x28e   : > { %v3525_v36 = vpop.f32.mrb[35].mxu1  ;;  %6189 = vmatpush3.bf16.msra.mxu1 %v7368_v25  ;;  %v7390_v25 = vld [vmem:[%s7677_s7 + $0xd8] ss:$44 sps:$4 sm:$0xff]  }
 0x28f   : > { %6190 = vmatprep.subr.bf16.mxu1 %v7375_v28 }
 0x290   : > { %3960 = vmatmul.mubr.bf16.gmra.mrb[108].mxu1 %v7352_v31  ;;  %4410 = vmatmul.mubr.bf16.gmra.mrb[44].mxu0 %v7353_v33 }
 0x291   : > { %3967 = vmatprep.mubr.bf16.mxu1 %v7355_v34  ;;  %4417 = vmatprep.mubr.bf16.mxu0 %v7357_v37  ;;  %v7392_v34 = vld [vmem:[%s7677_s7 + $0x130] ss:$44 sps:$4 sm:$0xff]   ;;  %v7391_v37 = vld [vmem:[%s7677_s7 + $0x5f8] ss:$44 sps:$4 sm:$0xff]  }
 0x292   : > { %6191 = vmatpush3.bf16.msra.mxu1 %v7375_v28 }
 0x293   : > { %v8405_v40 = vpop.f32.mrb[36].mxu1  ;;  %6192 = vmatprep.subr.bf16.mxu1 %v7382_v39 }
 0x294   : > { %v3530_v41 = vpop.f32.mrb[37].mxu1 }
 0x295   : > { %v8408_v45 = vpop.f32.mrb[38].mxu1 }
 0x296   : > { %v3533_v49 = vpop.f32.mrb[39].mxu1  ;;  %6193 = vmatpush3.bf16.msra.mxu1 %v7382_v39  ;;  %v7395_v39 = vld [vmem:[%s7677_s7 + $0x188] ss:$44 sps:$4 sm:$0xff]  }
 0x297   : > { %v7397_v49 = vld [vmem:[%s7677_s7 + $0x1e0] ss:$44 sps:$4 sm:$0xff]  }
 0x298   : > { %3968 = vmatmul.mubr.bf16.gmra.mrb[112].mxu1 %v7359_v43  ;;  %4418 = vmatmul.mubr.bf16.gmra.mrb[48].mxu0 %v7360_v46  ;;  %v7393_v43 = vld [vmem:[%s7677_s7 + $0x654] ss:$44 sps:$4 sm:$0xff]  }
 0x299   : > { %3975 = vmatprep.mubr.bf16.mxu1 %v7362_v48  ;;  %4425 = vmatprep.mubr.bf16.mxu0 %v7364_v50 }
 0x29b   : > { %v8413_v51 = vpop.f32.mrb[40].mxu1 }
 0x29c   : > { %v3538_v53 = vpop.f32.mrb[41].mxu1 }
 0x29d   : > { %v8416_v56 = vpop.f32.mrb[42].mxu1  ;;  %v7396_v53 = vld [vmem:[%s7677_s7 + $0x650] ss:$44 sps:$4 sm:$0xff]  }
 0x29e   : > { %v3541_v59 = vpop.f32.mrb[43].mxu1 }
 0x2a0   : > { %3976 = vmatmul.mubr.bf16.gmra.mrb[116].mxu1 %v7366_v54  ;;  %4426 = vmatmul.mubr.bf16.gmra.mrb[52].mxu0 %v7367_v57  ;;  %v7400_v54 = vld [vmem:[%s7677_s7 + $0x238] ss:$44 sps:$4 sm:$0xff]  }
 0x2a1   : > { %3983 = vmatprep.mubr.bf16.mxu1 %v7369_v58  ;;  %4433 = vmatprep.mubr.bf16.mxu0 %v7371_v61  ;;  %v7398_v58 = vld [vmem:[%s7677_s7 + $0x6ac] ss:$44 sps:$4 sm:$0xff]  }
 0x2a3   : > { %v8421_v62 = vpop.f32.mrb[44].mxu1 }
 0x2a4   : > { %v3546_v1 = vpop.f32.mrb[45].mxu1 }
 0x2a5   : > { %v8424_v3 = vpop.f32.mrb[46].mxu1  ;;  %v7402_v1 = vld [vmem:[%s7677_s7 + $0x290] ss:$44 sps:$4 sm:$0xff]  }
 0x2a6   : > { %v3549_v6 = vpop.f32.mrb[47].mxu1 }
 0x2a8   : > { %3984 = vmatmul.mubr.bf16.gmra.mrb[120].mxu1 %v7373_v2  ;;  %4434 = vmatmul.mubr.bf16.gmra.mrb[56].mxu0 %v7374_v4  ;;  %v7401_v4 = vld [vmem:[%s7677_s7 + $0x6a8] ss:$44 sps:$4 sm:$0xff]  }
 0x2a9   : > { %3991 = vmatprep.mubr.bf16.mxu1 %v7376_v5  ;;  %4441 = vmatprep.mubr.bf16.mxu0 %v7378_v8  ;;  %v7405_v5 = vld [vmem:[%s7677_s7 + $0x2e8] ss:$44 sps:$4 sm:$0xff]   ;;  %v7403_v8 = vld [vmem:[%s7677_s7 + $0x704] ss:$44 sps:$4 sm:$0xff]  }
 0x2ab   : > { %v8429_v9 = vpop.f32.mrb[48].mxu1 }
 0x2ac   : > { %v3554_v11 = vpop.f32.mrb[49].mxu1 }
 0x2ad   : > { %v8432_v12 = vpop.f32.mrb[50].mxu1 }
 0x2ae   : > { %v3557_v15 = vpop.f32.mrb[51].mxu1 }
 0x2af   : > { %v7406_v15 = vld [vmem:[%s7677_s7 + $0x700] ss:$44 sps:$4 sm:$0xff]  }
 0x2b0   : > { %3992 = vmatmul.mubr.bf16.gmra.mrb[124].mxu1 %v7380_v0  ;;  %4442 = vmatmul.mubr.bf16.gmra.mrb[60].mxu0 %v7381_v42  ;;  %v7407_v42 = vld [vmem:[%s7677_s7 + $0x340] ss:$44 sps:$4 sm:$0xff]  }
 0x2b1   : > { %6194 = vmatprep.mubr.bf16.mxu1 %v7385_v13  ;;  %4449 = vmatprep.mubr.bf16.mxu0 %v7383_v16  ;;  %v7410_v16 = vld [vmem:[%s7677_s7 + $0x398] ss:$44 sps:$4 sm:$0xff]  }
 0x2b3   : > { %v8437_v17 = vpop.f32.mrb[52].mxu1 }
 0x2b4   : > { %v3562_v20 = vpop.f32.mrb[53].mxu1 }
 0x2b5   : > { %v8440_v23 = vpop.f32.mrb[54].mxu1 }
 0x2b6   : > { %v3565_v28 = vpop.f32.mrb[55].mxu1 }
 0x2b7   : > { %v7412_v28 = vld [vmem:[%s7677_s7 + $0x3f0] ss:$44 sps:$4 sm:$0xff]  }
 0x2b8   : > { %6195 = vmatmul.mubr.bf16.vlgmr.msra.gmra.mrb[128].mxu1 %v7387_v21  ;;  %4450 = vmatmul.mubr.bf16.gmra.mrb[64].mxu0 %v7386_v24  ;;  %v7408_v21 = vld [vmem:[%s7677_s7 + $0x75c] ss:$44 sps:$4 sm:$0xff]  }
 0x2b9   : > { %6198 = vmatprep.mubr.bf16.mxu1 %v7390_v25  ;;  %4457 = vmatprep.mubr.bf16.mxu0 %v7388_v29 }
 0x2bb   : > { %v8445_v31 = vpop.f32.mrb[56].mxu1 }
 0x2bc   : > { %v3570_v33 = vpop.f32.mrb[57].mxu1 }
 0x2bd   : > { %v8448_v36 = vpop.f32.mrb[58].mxu1  ;;  %v7411_v33 = vld [vmem:[%s7677_s7 + $0x758] ss:$44 sps:$4 sm:$0xff]  }
 0x2be   : > { %v3573_v41 = vpop.f32.mrb[59].mxu1 }
 0x2c0   : > { %6199 = vmatmul.mubr.bf16.gmra.mrb[132].mxu1 %v7392_v34  ;;  %4458 = vmatmul.mubr.bf16.gmra.mrb[68].mxu0 %v7391_v37  ;;  %v7415_v34 = vld [vmem:[%s7677_s7 + $0x448] ss:$44 sps:$4 sm:$0xff]  }
 0x2c1   : > { %6202 = vmatprep.mubr.bf16.mxu1 %v7395_v39  ;;  %4465 = vmatprep.mubr.bf16.mxu0 %v7393_v43  ;;  %v7413_v39 = vld [vmem:[%s7677_s7 + $0x7b4] ss:$44 sps:$4 sm:$0xff]  }
 0x2c3   : > { %v8453_v46 = vpop.f32.mrb[60].mxu1 }
 0x2c4   : > { %v3578_v48 = vpop.f32.mrb[61].mxu1 }
 0x2c5   : > { %v8456_v50 = vpop.f32.mrb[62].mxu1  ;;  %v7417_v48 = vld [vmem:[%s7677_s7 + $0x4a0] ss:$44 sps:$4 sm:$0xff]  }
 0x2c6   : > { %v3581_v57 = vpop.f32.mrb[63].mxu1 }
 0x2c8   : > { %6203 = vmatmul.mubr.bf16.gmra.mrb[136].mxu1 %v7397_v49  ;;  %4466 = vmatmul.mubr.bf16.gmra.mrb[72].mxu0 %v7396_v53  ;;  %v7416_v53 = vld [vmem:[%s7677_s7 + $0x7b0] ss:$44 sps:$4 sm:$0xff]  }
 0x2c9   : > { %6206 = vmatprep.mubr.bf16.mxu1 %v7400_v54  ;;  %4473 = vmatprep.mubr.bf16.mxu0 %v7398_v58  ;;  %v7420_v54 = vld [vmem:[%s7677_s7 + $0x4f8] ss:$44 sps:$4 sm:$0xff]  }
 0x2ca   : > { %v7418_v58 = vld [vmem:[%s7677_s7 + $0x80c] ss:$44 sps:$4 sm:$0xff]  }
 0x2cb   : > { %v8461_v59 = vpop.f32.mrb[64].mxu1 }
 0x2cc   : > { %v3586_v61 = vpop.f32.mrb[65].mxu1 }
 0x2cd   : > { %v8464_v2 = vpop.f32.mrb[66].mxu1 }
 0x2ce   : > { %v3589_v6 = vpop.f32.mrb[67].mxu1 }
 0x2cf   : > { %v7421_v6 = vld [vmem:[%s7677_s7 + $0x808] ss:$44 sps:$4 sm:$0xff]  }
 0x2d0   : > { %6207 = vmatmul.mubr.bf16.gmra.mrb[140].mxu1 %v7402_v1  ;;  %4474 = vmatmul.mubr.bf16.gmra.mrb[76].mxu0 %v7401_v4  ;;  %v7422_v4 = vld [vmem:[%s7677_s7 + $0x550] ss:$44 sps:$4 sm:$0xff]  }
 0x2d1   : > { %6210 = vmatprep.mubr.bf16.mxu1 %v7405_v5  ;;  %4481 = vmatprep.mubr.bf16.mxu0 %v7403_v8  ;;  %v7425_v8 = vld [vmem:[%s7677_s7 + $0x5a8] ss:$44 sps:$4 sm:$0xff]  }
 0x2d3   : > { %v8469_v11 = vpop.f32.mrb[68].mxu1 }
 0x2d4   : > { %v3594_v0 = vpop.f32.mrb[69].mxu1 }
 0x2d5   : > { %v8472_v13 = vpop.f32.mrb[70].mxu1 }
 0x2d6   : > { %v3597_v20 = vpop.f32.mrb[71].mxu1 }
 0x2d7   : > { %v7427_v20 = vld [vmem:[%s7677_s7 + $0x600] ss:$44 sps:$4 sm:$0xff]  }
 0x2d8   : > { %6211 = vmatmul.mubr.bf16.gmra.mrb[144].mxu1 %v7407_v42  ;;  %4482 = vmatmul.mubr.bf16.gmra.mrb[80].mxu0 %v7406_v15  ;;  %v7423_v42 = vld [vmem:[%s7677_s7 + $0x864] ss:$44 sps:$4 sm:$0xff]  }
 0x2d9   : > { %6214 = vmatprep.mubr.bf16.mxu1 %v7410_v16  ;;  %4489 = vmatprep.mubr.bf16.mxu0 %v7408_v21 }
 0x2db   : > { %v8477_v24 = vpop.f32.mrb[72].mxu1 }
 0x2dc   : > { %v3602_v25 = vpop.f32.mrb[73].mxu1 }
 0x2dd   : > { %v8480_v29 = vpop.f32.mrb[74].mxu1  ;;  %v7426_v25 = vld [vmem:[%s7677_s7 + $0x860] ss:$44 sps:$4 sm:$0xff]  }
 0x2de   : > { %v3605_v37 = vpop.f32.mrb[75].mxu1 }
 0x2e0   : > { %6215 = vmatmul.mubr.bf16.gmra.mrb[148].mxu1 %v7412_v28  ;;  %4490 = vmatmul.mubr.bf16.gmra.mrb[84].mxu0 %v7411_v33  ;;  %v7430_v28 = vld [vmem:[%s7677_s7 + $0x658] ss:$44 sps:$4 sm:$0xff]  }
 0x2e1   : > { %6218 = vmatprep.mubr.bf16.mxu1 %v7415_v34  ;;  %4497 = vmatprep.mubr.bf16.mxu0 %v7413_v39  ;;  %v7428_v34 = vld [vmem:[%s7677_s7 + $0x8bc] ss:$44 sps:$4 sm:$0xff]  }
 0x2e3   : > { %v8485_v41 = vpop.f32.mrb[76].mxu1 }
 0x2e4   : > { %v3610_v43 = vpop.f32.mrb[77].mxu1 }
 0x2e5   : > { %v8488_v49 = vpop.f32.mrb[78].mxu1  ;;  %v7432_v43 = vld [vmem:[%s7677_s7 + $0x6b0] ss:$44 sps:$4 sm:$0xff]  }
 0x2e6   : > { %v3613_v57 = vpop.f32.mrb[79].mxu1 }
 0x2e8   : > { %6219 = vmatmul.mubr.bf16.gmra.mrb[152].mxu1 %v7417_v48  ;;  %4498 = vmatmul.mubr.bf16.gmra.mrb[88].mxu0 %v7416_v53  ;;  %v7431_v53 = vld [vmem:[%s7677_s7 + $0x8b8] ss:$44 sps:$4 sm:$0xff]  }
 0x2e9   : > { %6222 = vmatprep.mubr.bf16.mxu1 %v7420_v54  ;;  %4505 = vmatprep.mubr.bf16.mxu0 %v7418_v58  ;;  %v7435_v54 = vld [vmem:[%s7677_s7 + $0x708] ss:$44 sps:$4 sm:$0xff]  }
 0x2ea   : > { %v7433_v58 = vld [vmem:[%s7677_s7 + $0x914] ss:$44 sps:$4 sm:$0xff]  }
 0x2eb   : > { %v8493_v61 = vpop.f32.mrb[80].mxu1 }
 0x2ec   : > { %v3618_v1 = vpop.f32.mrb[81].mxu1 }
 0x2ed   : > { %v8496_v5 = vpop.f32.mrb[82].mxu1 }
 0x2ee   : > { %v3621_v0 = vpop.f32.mrb[83].mxu1 }
 0x2ef   : > { %v7436_v0 = vld [vmem:[%s7677_s7 + $0x910] ss:$44 sps:$4 sm:$0xff]  }
 0x2f0   : > { %6223 = vmatmul.mubr.bf16.gmra.mrb[156].mxu1 %v7422_v4  ;;  %4506 = vmatmul.mubr.bf16.gmra.mrb[92].mxu0 %v7421_v6  ;;  %v7437_v6 = vld [vmem:[%s7677_s7 + $0x760] ss:$44 sps:$4 sm:$0xff]  }
 0x2f1   : > { %6226 = vmatprep.mubr.bf16.mxu1 %v7425_v8  ;;  %4513 = vmatprep.mubr.bf16.mxu0 %v7423_v42  ;;  %v7440_v42 = vld [vmem:[%s7677_s7 + $0x7b8] ss:$44 sps:$4 sm:$0xff]  }
 0x2f3   : > { %v8501_v15 = vpop.f32.mrb[84].mxu1 }
 0x2f4   : > { %v3626_v16 = vpop.f32.mrb[85].mxu1 }
 0x2f5   : > { %v8504_v21 = vpop.f32.mrb[86].mxu1 }
 0x2f6   : > { %v3629_v33 = vpop.f32.mrb[87].mxu1 }
 0x2f8   : > { %6227 = vmatmul.mubr.bf16.gmra.mrb[160].mxu1 %v7427_v20  ;;  %4514 = vmatmul.mubr.bf16.gmra.mrb[96].mxu0 %v7426_v25  ;;  %v7438_v20 = vld [vmem:[%s7677_s7 + $0x96c] ss:$44 sps:$4 sm:$0xff]  }
 0x2f9   : > { %6230 = vmatprep.mubr.bf16.mxu1 %v7430_v28  ;;  %4521 = vmatprep.mubr.bf16.mxu0 %v7428_v34  ;;  %v8528_v25 = vld [vmem:[%s8925_s2] ss:$0 sm:$0xff]  ;;  %v7442_v34 = vld [vmem:[%s7677_s7 + $0x810] ss:$44 sps:$4 sm:$0xff]  }
 0x2fa   : > { %v6290_v28 = vadd.f32 %v8528_v25, %v8311_v19  ;;  %v6294_v19 = vadd.f32 %v8528_v25, %v8319_v27  ;;  %v6298_v27 = vadd.f32 %v8528_v25, %v8327_v35  ;;  %v6302_v35 = vadd.f32 %v8528_v25, %v8335_v44 }
 0x2fb   : > { %v8509_v37 = vpop.f32.mrb[88].mxu1  ;;  %v6306_v44 = vadd.f32 %v8528_v25, %v8343_v52  ;;  %v6312_v52 = vadd.f32 %v8528_v25, %v8354_v63 }
 0x2fc   : > { %v3634_v39 = vpop.f32.mrb[89].mxu1 }
 0x2fd   : > { %v8512_v48 = vpop.f32.mrb[90].mxu1  ;;  %v6292_v39 = vadd.f32 %v8528_v25, %v8314_v22 }
 0x2fe   : > { %v3637_v57 = vpop.f32.mrb[91].mxu1 }
 0x2ff   : > { %v7445_v57 = vld [vmem:[%s7677_s7 + $0x868] ss:$44 sps:$4 sm:$0xff]  }
 0x300   : > { %6231 = vmatmul.mubr.bf16.gmra.mrb[164].mxu1 %v7432_v43  ;;  %4522 = vmatmul.mubr.bf16.gmra.mrb[100].mxu0 %v7431_v53 }
 0x301   : > { %6234 = vmatprep.mubr.bf16.mxu1 %v7435_v54  ;;  %4529 = vmatprep.mubr.bf16.mxu0 %v7433_v58  ;;  %v7441_v54 = vld [vmem:[%s7677_s7 + $0x968] ss:$44 sps:$4 sm:$0xff]  }
 0x303   : > { %v8517_v1 = vpop.f32.mrb[92].mxu1 }
 0x304   : > { %v3642_v4 = vpop.f32.mrb[93].mxu1 }
 0x305   : > { %v8520_v8 = vpop.f32.mrb[94].mxu1  ;;  %v7443_v4 = vld [vmem:[%s7677_s7 + $0x9c4] ss:$44 sps:$4 sm:$0xff]  }
 0x306   : > { %v3645_v16 = vpop.f32.mrb[95].mxu1 }
 0x307   : > { %v6296_v16 = vadd.f32 %v8528_v25, %v8322_v30 }
 0x308   : > { %6235 = vmatmul.mubr.bf16.gmra.mrb[168].mxu1 %v7437_v6  ;;  %4530 = vmatmul.mubr.bf16.gmra.mrb[104].mxu0 %v7436_v0 }
 0x309   : > { %6238 = vmatprep.mubr.bf16.mxu1 %v7440_v42  ;;  %4537 = vmatprep.mubr.bf16.mxu0 %v7438_v20  ;;  %v7447_v42 = vld [vmem:[%s7677_s7 + $0x8c0] ss:$44 sps:$4 sm:$0xff]  }
 0x30b   : > { %v4323_v33 = vpop.f32.mrb[0].mxu0 }
 0x30c   : > { %v8535_v43 = vadd.f32 %v6290_v28, %v4323_v33  ;;  %v4325_v53 = vpop.f32.mrb[1].mxu0  ;;  %v7446_v33 = vld [vmem:[%s7677_s7 + $0x9c0] ss:$44 sps:$4 sm:$0xff]  }
 0x30d   : > { %v4326_v58 = vpop.f32.mrb[2].mxu0  ;;  %v7448_v53 = vld [vmem:[%s7677_s7 + $0xa1c] ss:$44 sps:$4 sm:$0xff]  }
 0x30e   : > { %v8540_v6 = vadd.f32 %v6292_v39, %v4326_v58  ;;  %v4328_v0 = vpop.f32.mrb[3].mxu0  ;;  %v7450_v39 = vld [vmem:[%s7677_s7 + $0x918] ss:$44 sps:$4 sm:$0xff]   ;;  %v7452_v58 = vld [vmem:[%s7677_s7 + $0x970] ss:$44 sps:$4 sm:$0xff]  }
 0x310   : > { %6239 = vmatmul.mubr.bf16.gmra.mrb[172].mxu1 %v7442_v34  ;;  %4538 = vmatmul.mubr.bf16.gmra.mrb[108].mxu0 %v7441_v54 }
 0x311   : > { %6242 = vmatprep.mubr.bf16.mxu1 %v7445_v57  ;;  %4545 = vmatprep.mubr.bf16.mxu0 %v7443_v4  ;;  %v6300_v4 = vadd.f32 %v8528_v25, %v8330_v38 }
 0x313   : > { %v4331_v22 = vpop.f32.mrb[4].mxu0 }
 0x314   : > { %v8547_v20 = vadd.f32 %v6294_v19, %v4331_v22  ;;  %v4333_v28 = vpop.f32.mrb[5].mxu0  ;;  %v7451_v22 = vld [vmem:[%s7677_s7 + $0xa18] ss:$44 sps:$4 sm:$0xff]  }
 0x315   : > { %v4334_v34 = vpop.f32.mrb[6].mxu0  ;;  %v7453_v28 = vld [vmem:[%s7677_s7 + $0xa74] ss:$44 sps:$4 sm:$0xff]  }
 0x316   : > { %v8552_v54 = vadd.f32 %v6296_v16, %v4334_v34  ;;  %v4336_v57 = vpop.f32.mrb[7].mxu0  ;;  %v7455_v16 = vld [vmem:[%s7677_s7 + $0x9c8] ss:$44 sps:$4 sm:$0xff]   ;;  %v7457_v34 = vld [vmem:[%s7677_s7 + $0xa20] ss:$44 sps:$4 sm:$0xff]  }
 0x318   : > { %6243 = vmatmul.mubr.bf16.gmra.mrb[176].mxu1 %v7447_v42  ;;  %4546 = vmatmul.mubr.bf16.gmra.mrb[112].mxu0 %v7446_v33 }
 0x319   : > { %6246 = vmatprep.mubr.bf16.mxu1 %v7450_v39  ;;  %4553 = vmatprep.mubr.bf16.mxu0 %v7448_v53  ;;  %v6304_v53 = vadd.f32 %v8528_v25, %v8338_v47  ;;  %v7462_v47 = vld [vmem:[%s7677_s7 + $0xad0] ss:$44 sps:$4 sm:$0xff]  }
 0x31b   : > { %v4339_v30 = vpop.f32.mrb[8].mxu0 }
 0x31c   : > { %v8559_v0 = vadd.f32 %v6298_v27, %v4339_v30  ;;  %v4341_v19 = vpop.f32.mrb[9].mxu0  ;;  %v7456_v30 = vld [vmem:[%s7677_s7 + $0xa70] ss:$44 sps:$4 sm:$0xff]  }
 0x31d   : > { %v4342_v42 = vpop.f32.mrb[10].mxu0 }
 0x31e   : > { %v8564_v33 = vadd.f32 %v6300_v4, %v4342_v42  ;;  %v4344_v39 = vpop.f32.mrb[11].mxu0  ;;  %v7460_v4 = vld [vmem:[%s7677_s7 + $0xa78] ss:$44 sps:$4 sm:$0xff]  }
 0x320   : > { %6247 = vmatmul.mubr.bf16.gmra.mrb[180].mxu1 %v7452_v58  ;;  %4554 = vmatmul.mubr.bf16.gmra.mrb[116].mxu0 %v7451_v22  ;;  %v7458_v58 = vld [vmem:[%s7677_s7 + $0xacc] ss:$44 sps:$4 sm:$0xff]  }
 0x321   : > { %6250 = vmatprep.mubr.bf16.mxu1 %v7455_v16  ;;  %4561 = vmatprep.mubr.bf16.mxu0 %v7453_v28  ;;  %v6308_v28 = vadd.f32 %v8528_v25, %v8346_v55 }
 0x323   : > { %v4347_v38 = vpop.f32.mrb[12].mxu0 }
 0x324   : > { %v8571_v57 = vadd.f32 %v6302_v35, %v4347_v38  ;;  %v4349_v27 = vpop.f32.mrb[13].mxu0  ;;  %v7461_v38 = vld [vmem:[%s7677_s7 + $0xac8] ss:$44 sps:$4 sm:$0xff]   ;;  %s5374_s7 = sshll.u32 %s7552_s15, 6 }
 0x325   : > { %v4350_v19 = vpop.f32.mrb[14].mxu0  ;;  %p237_p7 = scmp.lt.s32.totalorder %s5374_s7, 4095 }
 0x326   : > { %v8576_v22 = vadd.f32 %v6304_v53, %v4350_v19  ;;  %v4352_v16 = vpop.f32.mrb[15].mxu0 }
 0x327   : > { %s8971_s7 = smov (!%p237_p7, %s5374_s7), 4095 }
 0x328   : > { %6251 = vmatmul.mubr.bf16.gmra.mrb[184].mxu1 %v7457_v34  ;;  %4562 = vmatmul.mubr.bf16.gmra.mrb[120].mxu0 %v7456_v30  ;;  %v6310_v34 = vadd.f32 %v8528_v25, %v8351_v60  ;;  %s5375_s15 = sshll.u32 %s8971_s7, 2 }
 0x329   : > { %6254 = vmatprep.mubr.bf16.mxu1 %v7460_v4  ;;  %4569 = vmatprep.mubr.bf16.mxu0 %v7458_v58  ;;  %s8724_s6 = scalar_lea.vmem %s8926_s3, %s5375_s15 }
 0x32b   : > { %v4355_v42 = vpop.f32.mrb[16].mxu0 }
 0x32c   : > { %v8583_v39 = vadd.f32 %v6306_v44, %v4355_v42  ;;  %v4357_v35 = vpop.f32.mrb[17].mxu0  ;;  %v6314_v42 = vadd.f32 %v8528_v25, %v8366_v7 }
 0x32d   : > { %v4358_v27 = vpop.f32.mrb[18].mxu0 }
 0x32e   : > { %v8586_v53 = vadd.f32 %v6308_v28, %v4358_v27  ;;  %v4360_v19 = vpop.f32.mrb[19].mxu0 }
 0x32f   : > { %v6318_v19 = vadd.f32 %v8528_v25, %v8377_v14  ;;  %v6324_v14 = vadd.f32 %v8528_v25, %v8397_v32  ;;  %v6328_v32 = vadd.f32 %v8528_v25, %v8408_v45  ;;  %v6332_v45 = vadd.f32 %v8528_v25, %v8416_v56 }
 0x330   : > { %6255 = vmatmul.mubr.bf16.gmra.mrb[188].mxu1 %v7462_v47  ;;  %4570 = vmatmul.mubr.bf16.gmra.mrb[124].mxu0 %v7461_v38  ;;  %v6316_v47 = vadd.f32 %v8528_v25, %v8369_v10  ;;  %v6336_v56 = vadd.f32 %v8528_v25, %v8424_v3  ;;  %v6340_v3 = vadd.f32 %v8528_v25, %v8432_v12 }
 0x331   : > { %v6344_v12 = vadd.f32 %v8528_v25, %v8440_v23  ;;  %v6348_v23 = vadd.f32 %v8528_v25, %v8448_v36  ;;  %v6352_v36 = vadd.f32 %v8528_v25, %v8456_v50 }
 0x333   : > { %v4363_v30 = vpop.f32.mrb[20].mxu0 }
 0x334   : > { %v8592_v4 = vadd.f32 %v6310_v34, %v4363_v30  ;;  %v4365_v55 = vpop.f32.mrb[21].mxu0  ;;  %v6320_v30 = vadd.f32 %v8528_v25, %v8383_v18 }
 0x335   : > { %v4366_v58 = vpop.f32.mrb[22].mxu0 }
 0x336   : > { %v8594_v16 = vadd.f32 %v6312_v52, %v4366_v58  ;;  %v4368_v44 = vpop.f32.mrb[23].mxu0 }
 0x337   : > { %v6322_v44 = vadd.f32 %v8528_v25, %v8391_v26  ;;  %v6326_v26 = vadd.f32 %v8528_v25, %v8405_v40  ;;  %v6330_v40 = vadd.f32 %v8528_v25, %v8413_v51  ;;  %v6334_v51 = vadd.f32 %v8528_v25, %v8421_v62 }
 0x338   : > { %v6338_v62 = vadd.f32 %v8528_v25, %v8429_v9  ;;  %v6342_v9 = vadd.f32 %v8528_v25, %v8437_v17  ;;  %v6346_v17 = vadd.f32 %v8528_v25, %v8445_v31  ;;  %v6350_v31 = vadd.f32 %v8528_v25, %v8453_v46 }
 0x339   : > { %v6354_v46 = vadd.f32 %v8528_v25, %v8461_v59 }
 0x33b   : > { %v4371_v28 = vpop.f32.mrb[24].mxu0 }
 0x33c   : > { %v8600_v35 = vadd.f32 %v6314_v42, %v4371_v28  ;;  %v4373_v60 = vpop.f32.mrb[25].mxu0 }
 0x33d   : > { %v4374_v38 = vpop.f32.mrb[26].mxu0 }
 0x33e   : > { %v8602_v27 = vadd.f32 %v6316_v47, %v4374_v38  ;;  %v4376_v63 = vpop.f32.mrb[27].mxu0 }
 0x343   : > { %v4379_v34 = vpop.f32.mrb[28].mxu0 }
 0x344   : > { %v8608_v52 = vadd.f32 %v6318_v19, %v4379_v34  ;;  %v4381_v7 = vpop.f32.mrb[29].mxu0 }
 0x345   : > { %v4382_v55 = vpop.f32.mrb[30].mxu0 }
 0x346   : > { %v8610_v58 = vadd.f32 %v6320_v30, %v4382_v55  ;;  %v4384_v10 = vpop.f32.mrb[31].mxu0 }
 0x34b   : > { %v8614_v42 = vpop.f32.mrb[96].mxu1  ;;  %v4387_v28 = vpop.f32.mrb[32].mxu0 }
 0x34c   : > { %8929 = vst [vmem:[#allocation5_spill] sm:$0xff] %v8614_v42  ;;  %v3939_v47 = vpop.f32.mrb[97].mxu1  ;;  %v8618_v60 = vadd.f32 %v6322_v44, %v4387_v28  ;;  %v4389_v18 = vpop.f32.mrb[33].mxu0 }
 0x34d   : > { %v8620_v38 = vpop.f32.mrb[98].mxu1  ;;  %v4390_v63 = vpop.f32.mrb[34].mxu0 }
 0x34e   : > { %8930 = vst [vmem:[#allocation6_spill] sm:$0xff] %v8620_v38  ;;  %v3942_v19 = vpop.f32.mrb[99].mxu1  ;;  %v8622_v34 = vadd.f32 %v6324_v14, %v4390_v63  ;;  %v4392_v30 = vpop.f32.mrb[35].mxu0 }
 0x353   : > { %v8626_v7 = vpop.f32.mrb[100].mxu1  ;;  %v4395_v55 = vpop.f32.mrb[36].mxu0 }
 0x354   : > { %8931 = vst [vmem:[#allocation7_spill] sm:$0xff] %v8626_v7  ;;  %v3947_v10 = vpop.f32.mrb[101].mxu1  ;;  %v8630_v44 = vadd.f32 %v6326_v26, %v4395_v55  ;;  %v4397_v28 = vpop.f32.mrb[37].mxu0 }
 0x355   : > { %v8632_v47 = vpop.f32.mrb[102].mxu1  ;;  %v4398_v18 = vpop.f32.mrb[38].mxu0 }
 0x356   : > { %8932 = vst [vmem:[#allocation8_spill] sm:$0xff] %v8632_v47  ;;  %v3950_v19 = vpop.f32.mrb[103].mxu1  ;;  %v8634_v14 = vadd.f32 %v6328_v32, %v4398_v18  ;;  %v4400_v63 = vpop.f32.mrb[39].mxu0 }
 0x35b   : > { %v8638_v30 = vpop.f32.mrb[104].mxu1  ;;  %v4403_v7 = vpop.f32.mrb[40].mxu0 }
 0x35c   : > { %8933 = vst [vmem:[#allocation9_spill] sm:$0xff] %v8638_v30  ;;  %v3955_v10 = vpop.f32.mrb[105].mxu1  ;;  %v8642_v26 = vadd.f32 %v6330_v40, %v4403_v7  ;;  %v4405_v55 = vpop.f32.mrb[41].mxu0 }
 0x35d   : > { %v8644_v28 = vpop.f32.mrb[106].mxu1  ;;  %v4406_v47 = vpop.f32.mrb[42].mxu0 }
 0x35e   : > { %8934 = vst [vmem:[#allocation10_spill] sm:$0xff] %v8644_v28  ;;  %v3958_v19 = vpop.f32.mrb[107].mxu1  ;;  %v8646_v32 = vadd.f32 %v6332_v45, %v4406_v47  ;;  %v4408_v18 = vpop.f32.mrb[43].mxu0 }
 0x363   : > { %v8650_v63 = vpop.f32.mrb[108].mxu1  ;;  %v4411_v30 = vpop.f32.mrb[44].mxu0 }
 0x364   : > { %8935 = vst [vmem:[#allocation11_spill] sm:$0xff] %v8650_v63  ;;  %v3963_v10 = vpop.f32.mrb[109].mxu1  ;;  %v8654_v7 = vadd.f32 %v6334_v51, %v4411_v30  ;;  %v4413_v40 = vpop.f32.mrb[45].mxu0 }
 0x365   : > { %v8656_v55 = vpop.f32.mrb[110].mxu1  ;;  %v4414_v28 = vpop.f32.mrb[46].mxu0 }
 0x366   : > { %8936 = vst [vmem:[#allocation12_spill] sm:$0xff] %v8656_v55  ;;  %v3966_v19 = vpop.f32.mrb[111].mxu1  ;;  %v8658_v47 = vadd.f32 %v6336_v56, %v4414_v28  ;;  %v4416_v45 = vpop.f32.mrb[47].mxu0 }
 0x36b   : > { %v8662_v18 = vpop.f32.mrb[112].mxu1  ;;  %v4419_v63 = vpop.f32.mrb[48].mxu0 }
 0x36c   : > { %8937 = vst [vmem:[#allocation13_spill] sm:$0xff] %v8662_v18  ;;  %v3971_v10 = vpop.f32.mrb[113].mxu1  ;;  %v8666_v30 = vadd.f32 %v6338_v62, %v4419_v63  ;;  %v4421_v51 = vpop.f32.mrb[49].mxu0 }
 0x36d   : > { %v8668_v40 = vpop.f32.mrb[114].mxu1  ;;  %v4422_v55 = vpop.f32.mrb[50].mxu0 }
 0x36e   : > { %8938 = vst [vmem:[#allocation14_spill] sm:$0xff] %v8668_v40  ;;  %v3974_v19 = vpop.f32.mrb[115].mxu1  ;;  %v8670_v28 = vadd.f32 %v6340_v3, %v4422_v55  ;;  %v4424_v56 = vpop.f32.mrb[51].mxu0 }
 0x373   : > { %v8674_v45 = vpop.f32.mrb[116].mxu1  ;;  %v4427_v18 = vpop.f32.mrb[52].mxu0 }
 0x374   : > { %8939 = vst [vmem:[#allocation15_spill] sm:$0xff] %v8674_v45  ;;  %v3979_v10 = vpop.f32.mrb[117].mxu1  ;;  %v8678_v63 = vadd.f32 %v6342_v9, %v4427_v18  ;;  %v4429_v62 = vpop.f32.mrb[53].mxu0 }
 0x375   : > { %v8680_v51 = vpop.f32.mrb[118].mxu1  ;;  %v4430_v40 = vpop.f32.mrb[54].mxu0 }
 0x376   : > { %8940 = vst [vmem:[#allocation16_spill] sm:$0xff] %v8680_v51  ;;  %v3982_v19 = vpop.f32.mrb[119].mxu1  ;;  %v8682_v55 = vadd.f32 %v6344_v12, %v4430_v40  ;;  %v4432_v3 = vpop.f32.mrb[55].mxu0 }
 0x37b   : > { %v8686_v56 = vpop.f32.mrb[120].mxu1  ;;  %v4435_v10 = vpop.f32.mrb[56].mxu0 }
 0x37c   : > { %8941 = vst [vmem:[#allocation17_spill] sm:$0xff] %v8686_v56  ;;  %v3987_v45 = vpop.f32.mrb[121].mxu1  ;;  %v8690_v18 = vadd.f32 %v6346_v17, %v4435_v10  ;;  %v4437_v9 = vpop.f32.mrb[57].mxu0 }
 0x37d   : > { %v8692_v62 = vpop.f32.mrb[122].mxu1  ;;  %v4438_v19 = vpop.f32.mrb[58].mxu0 }
 0x37e   : > { %8942 = vst [vmem:[#allocation18_spill] sm:$0xff] %v8692_v62  ;;  %v3990_v40 = vpop.f32.mrb[123].mxu1  ;;  %v8694_v12 = vadd.f32 %v6348_v23, %v4438_v19  ;;  %v4440_v3 = vpop.f32.mrb[59].mxu0 }
 0x380   : > { %8943 = vst [vmem:[#allocation19_spill] sm:$0xff] %v8694_v12 }
 0x383   : > { %v8698_v51 = vpop.f32.mrb[124].mxu1  ;;  %v4443_v45 = vpop.f32.mrb[60].mxu0 }
 0x384   : > { %8944 = vst [vmem:[#allocation20_spill] sm:$0xff] %v8698_v51  ;;  %v3995_v56 = vpop.f32.mrb[125].mxu1  ;;  %v8703_v17 = vadd.f32 %v6350_v31, %v4443_v45  ;;  %v4445_v10 = vpop.f32.mrb[61].mxu0  ;;  %v6356_v31 = vadd.f32 %v8528_v25, %v8464_v2 }
 0x385   : > { %v8705_v9 = vpop.f32.mrb[126].mxu1  ;;  %v4446_v40 = vpop.f32.mrb[62].mxu0 }
 0x386   : > { %8945 = vst [vmem:[#allocation21_spill] sm:$0xff] %v8705_v9  ;;  %v3998_v23 = vpop.f32.mrb[127].mxu1  ;;  %v8707_v19 = vadd.f32 %v6352_v36, %v4446_v40  ;;  %v4448_v3 = vpop.f32.mrb[63].mxu0 }
 0x38b   : > { %v6196_v51 = vpop.f32.mrb[128].mxu1  ;;  %v4451_v56 = vpop.f32.mrb[64].mxu0 }
 0x38c   : > { %v4621_v62 = vadd.f32 %v8547_v20, %v6196_v51  ;;  %v4612_v50 = vpop.f32.mrb[129].mxu1  ;;  %v8714_v45 = vadd.f32 %v6354_v46, %v4451_v56  ;;  %v4453_v10 = vpop.f32.mrb[65].mxu0 }
 0x38d   : > { %v4613_v23 = vadd.f32 %v8535_v43, %v4612_v50  ;;  %v6197_v36 = vpop.f32.mrb[130].mxu1  ;;  %v4454_v40 = vpop.f32.mrb[66].mxu0 }
 0x38e   : > { %v4624_v3 = vadd.f32 %v8552_v54, %v6197_v36  ;;  %v4615_v9 = vpop.f32.mrb[131].mxu1  ;;  %v8718_v59 = vadd.f32 %v6356_v31, %v4454_v40  ;;  %v4456_v38 = vpop.f32.mrb[67].mxu0  ;;  %v4869_v51 = vmax.f32 %v4621_v62, 0.0  ;;  %v6358_v54 = vadd.f32 %v8528_v25, %v8469_v11 }
 0x38f   : > { %v4616_v20 = vadd.f32 %v8540_v6, %v4615_v9  ;;  %v4867_v12 = vmax.f32 %v4613_v23, 0.0  ;;  %v6360_v9 = vadd.f32 %v8528_v25, %v8472_v13 }
 0x390   : > { %v4870_v42 = vmax.f32 %v4624_v3, 0.0 }
 0x391   : > { %v4868_v2 = vmax.f32 %v4616_v20, 0.0 }
 0x392   : > { %v5955_v43 = vpack.c.bf16 %v4870_v42, %v4869_v51 }
 0x393   : > { %v5950_v46 = vpack.c.bf16 %v4868_v2, %v4867_v12  ;;  %v6200_v56 = vpop.f32.mrb[132].mxu1  ;;  %v4459_v38 = vpop.f32.mrb[68].mxu0 }
 0x394   : > { %6107 = vst [vmem:[%s8724_s6 + $0x8] sm:$0xff] %v5955_v43   ;;  %v4637_v6 = vadd.f32 %v8571_v57, %v6200_v56  ;;  %v4628_v62 = vpop.f32.mrb[133].mxu1  ;;  %v8733_v50 = vadd.f32 %v6358_v54, %v4459_v38  ;;  %v4461_v31 = vpop.f32.mrb[69].mxu0  ;;  %v6364_v38 = vadd.f32 %v8528_v25, %v8480_v29 }
 0x395   : > { %5951 = vst [vmem:[%s8724_s6] sm:$0xff] %v5950_v46   ;;  %v4629_v10 = vadd.f32 %v8559_v0, %v4628_v62  ;;  %v6201_v42 = vpop.f32.mrb[134].mxu1  ;;  %v4462_v23 = vpop.f32.mrb[70].mxu0  ;;  %v6362_v0 = vadd.f32 %v8528_v25, %v8477_v24 }
 0x396   : > { %v4640_v11 = vadd.f32 %v8576_v22, %v6201_v42  ;;  %v4631_v12 = vpop.f32.mrb[135].mxu1  ;;  %v8737_v36 = vadd.f32 %v6360_v9, %v4462_v23  ;;  %v4464_v57 = vpop.f32.mrb[71].mxu0  ;;  %v4873_v3 = vmax.f32 %v4637_v6, 0.0 }
 0x397   : > { %v4632_v40 = vadd.f32 %v8564_v33, %v4631_v12  ;;  %v4871_v20 = vmax.f32 %v4629_v10, 0.0 }
 0x398   : > { %v4874_v13 = vmax.f32 %v4640_v11, 0.0 }
 0x399   : > { %v4872_v51 = vmax.f32 %v4632_v40, 0.0 }
 0x39a   : > { %v5965_v2 = vpack.c.bf16 %v4874_v13, %v4873_v3 }
 0x39b   : > { %v5960_v43 = vpack.c.bf16 %v4872_v51, %v4871_v20  ;;  %v6204_v54 = vpop.f32.mrb[136].mxu1  ;;  %v4467_v46 = vpop.f32.mrb[72].mxu0 }
 0x39c   : > { %6109 = vst [vmem:[%s8724_s6 + $0x18] sm:$0xff] %v5965_v2   ;;  %v4653_v22 = vadd.f32 %v8592_v4, %v6204_v54  ;;  %v4644_v56 = vpop.f32.mrb[137].mxu1  ;;  %v8747_v33 = vadd.f32 %v6362_v0, %v4467_v46  ;;  %v4469_v6 = vpop.f32.mrb[73].mxu0  ;;  %v6368_v2 = vadd.f32 %v8528_v25, %v8488_v49 }
 0x39d   : > { %6108 = vst [vmem:[%s8724_s6 + $0x10] sm:$0xff] %v5960_v43   ;;  %v4645_v62 = vadd.f32 %v8583_v39, %v4644_v56  ;;  %v6205_v9 = vpop.f32.mrb[138].mxu1  ;;  %v4470_v31 = vpop.f32.mrb[74].mxu0  ;;  %v6366_v39 = vadd.f32 %v8528_v25, %v8485_v41 }
 0x39e   : > { %v4656_v24 = vadd.f32 %v8594_v16, %v6205_v9  ;;  %v4647_v10 = vpop.f32.mrb[139].mxu1  ;;  %v8751_v42 = vadd.f32 %v6364_v38, %v4470_v31  ;;  %v4472_v4 = vpop.f32.mrb[75].mxu0  ;;  %v4877_v11 = vmax.f32 %v4653_v22, 0.0 }
 0x39f   : > { %v4648_v23 = vadd.f32 %v8586_v53, %v4647_v10  ;;  %v4875_v12 = vmax.f32 %v4645_v62, 0.0 }
 0x3a0   : > { %v4878_v29 = vmax.f32 %v4656_v24, 0.0 }
 0x3a1   : > { %v4876_v57 = vmax.f32 %v4648_v23, 0.0 }
 0x3a2   : > { %v5975_v40 = vpack.c.bf16 %v4878_v29, %v4877_v11  ;;  %v6372_v11 = vadd.f32 %v8528_v25, %v8496_v5 }
 0x3a3   : > { %v5970_v3 = vpack.c.bf16 %v4876_v57, %v4875_v12  ;;  %v6208_v13 = vpop.f32.mrb[140].mxu1  ;;  %v4475_v20 = vpop.f32.mrb[76].mxu0 }
 0x3a4   : > { %6111 = vst [vmem:[%s8724_s6 + $0x28] sm:$0xff] %v5975_v40   ;;  %v4669_v16 = vadd.f32 %v8608_v52, %v6208_v13  ;;  %v4660_v51 = vpop.f32.mrb[141].mxu1  ;;  %v8761_v53 = vadd.f32 %v6366_v39, %v4475_v20  ;;  %v4477_v0 = vpop.f32.mrb[77].mxu0 }
 0x3a5   : > { %6110 = vst [vmem:[%s8724_s6 + $0x20] sm:$0xff] %v5970_v3   ;;  %v4661_v43 = vadd.f32 %v8600_v35, %v4660_v51  ;;  %v6209_v54 = vpop.f32.mrb[142].mxu1  ;;  %v4478_v46 = vpop.f32.mrb[78].mxu0  ;;  %v6370_v35 = vadd.f32 %v8528_v25, %v8493_v61 }
 0x3a6   : > { %v4672_v41 = vadd.f32 %v8610_v58, %v6209_v54  ;;  %v4663_v22 = vpop.f32.mrb[143].mxu1  ;;  %v8765_v56 = vadd.f32 %v6368_v2, %v4478_v46  ;;  %v4480_v52 = vpop.f32.mrb[79].mxu0  ;;  %v4881_v6 = vmax.f32 %v4669_v16, 0.0 }
 0x3a7   : > { %v4664_v38 = vadd.f32 %v8602_v27, %v4663_v22  ;;  %v4879_v62 = vmax.f32 %v4661_v43, 0.0 }
 0x3a8   : > { %v4882_v49 = vmax.f32 %v4672_v41, 0.0  ;;  %v6376_v41 = vadd.f32 %v8528_v25, %v8504_v21 }
 0x3a9   : > { %v4880_v9 = vmax.f32 %v4664_v38, 0.0 }
 0x3aa   : > { %v5985_v31 = vpack.c.bf16 %v4882_v49, %v4881_v6 }
 0x3ab   : > { %v5980_v24 = vpack.c.bf16 %v4880_v9, %v4879_v62  ;;  %v6212_v10 = vpop.f32.mrb[144].mxu1  ;;  %v4483_v4 = vpop.f32.mrb[80].mxu0 }
 0x3ac   : > { %6113 = vst [vmem:[%s8724_s6 + $0x38] sm:$0xff] %v5985_v31   ;;  %v4685_v58 = vadd.f32 %v8630_v44, %v6212_v10  ;;  %v4676_v23 = vpop.f32.mrb[145].mxu1  ;;  %v8775_v27 = vadd.f32 %v6370_v35, %v4483_v4  ;;  %v4485_v29 = vpop.f32.mrb[81].mxu0 }
 0x3ad   : > { %6112 = vst [vmem:[%s8724_s6 + $0x30] sm:$0xff] %v5980_v24   ;;  %v4677_v12 = vadd.f32 %v8618_v60, %v4676_v23  ;;  %v6213_v57 = vpop.f32.mrb[146].mxu1  ;;  %v4486_v40 = vpop.f32.mrb[82].mxu0  ;;  %v6374_v60 = vadd.f32 %v8528_v25, %v8501_v15  ;;  %v6380_v29 = vadd.f32 %v8528_v25, %v8512_v48 }
 0x3ae   : > { %v4688_v61 = vadd.f32 %v8634_v14, %v6213_v57  ;;  %v4679_v39 = vpop.f32.mrb[147].mxu1  ;;  %v8779_v3 = vadd.f32 %v6372_v11, %v4486_v40  ;;  %v4488_v44 = vpop.f32.mrb[83].mxu0  ;;  %v4885_v20 = vmax.f32 %v4685_v58, 0.0 }
 0x3af   : > { %v4680_v13 = vadd.f32 %v8622_v34, %v4679_v39  ;;  %v4883_v16 = vmax.f32 %v4677_v12, 0.0 }
 0x3b0   : > { %v4886_v5 = vmax.f32 %v4688_v61, 0.0 }
 0x3b1   : > { %v4884_v51 = vmax.f32 %v4680_v13, 0.0 }
 0x3b2   : > { %v5995_v2 = vpack.c.bf16 %v4886_v5, %v4885_v20 }
 0x3b3   : > { %v5990_v0 = vpack.c.bf16 %v4884_v51, %v4883_v16  ;;  %v6216_v43 = vpop.f32.mrb[148].mxu1  ;;  %v4491_v54 = vpop.f32.mrb[84].mxu0 }
 0x3b4   : > { %6115 = vst [vmem:[%s8724_s6 + $0x48] sm:$0xff] %v5995_v2   ;;  %v4701_v14 = vadd.f32 %v8654_v7, %v6216_v43  ;;  %v4692_v46 = vpop.f32.mrb[149].mxu1  ;;  %v8789_v34 = vadd.f32 %v6374_v60, %v4491_v54  ;;  %v4493_v22 = vpop.f32.mrb[85].mxu0  ;;  %v6384_v54 = vadd.f32 %v8528_v25, %v8520_v8 }
 0x3b5   : > { %6114 = vst [vmem:[%s8724_s6 + $0x40] sm:$0xff] %v5990_v0   ;;  %v4693_v52 = vadd.f32 %v8642_v26, %v4692_v46  ;;  %v6217_v38 = vpop.f32.mrb[150].mxu1  ;;  %v4494_v6 = vpop.f32.mrb[86].mxu0  ;;  %v6378_v26 = vadd.f32 %v8528_v25, %v8509_v37 }
 0x3b6   : > { %v4704_v15 = vadd.f32 %v8658_v47, %v6217_v38  ;;  %v4695_v49 = vpop.f32.mrb[151].mxu1  ;;  %v8793_v62 = vadd.f32 %v6376_v41, %v4494_v6  ;;  %v4496_v7 = vpop.f32.mrb[87].mxu0  ;;  %v4889_v31 = vmax.f32 %v4701_v14, 0.0  ;;  %v8946_v6 = vld [vmem:[#allocation19_spill] sm:$0xff] }
 0x3b7   : > { %v4696_v9 = vadd.f32 %v8646_v32, %v4695_v49  ;;  %v4887_v35 = vmax.f32 %v4693_v52, 0.0 }
 0x3b8   : > { %v4890_v21 = vmax.f32 %v4704_v15, 0.0 }
 0x3b9   : > { %v4888_v24 = vmax.f32 %v4696_v9, 0.0 }
 0x3ba   : > { %v6005_v10 = vpack.c.bf16 %v4890_v21, %v4889_v31  ;;  %v8947_v21 = vld [vmem:[#allocation5_spill] sm:$0xff] }
 0x3bb   : > { %v6000_v4 = vpack.c.bf16 %v4888_v24, %v4887_v35  ;;  %v6220_v58 = vpop.f32.mrb[152].mxu1  ;;  %v4499_v23 = vpop.f32.mrb[88].mxu0 }
 0x3bc   : > { %6117 = vst [vmem:[%s8724_s6 + $0x58] sm:$0xff] %v6005_v10   ;;  %v4717_v47 = vadd.f32 %v8678_v63, %v6220_v58  ;;  %v4708_v11 = vpop.f32.mrb[153].mxu1  ;;  %v8803_v32 = vadd.f32 %v6378_v26, %v4499_v23  ;;  %v4501_v12 = vpop.f32.mrb[89].mxu0 }
 0x3bd   : > { %6116 = vst [vmem:[%s8724_s6 + $0x50] sm:$0xff] %v6000_v4   ;;  %v4709_v57 = vadd.f32 %v8666_v30, %v4708_v11  ;;  %v6221_v40 = vpop.f32.mrb[154].mxu1  ;;  %v4502_v61 = vpop.f32.mrb[90].mxu0  ;;  %v6382_v30 = vadd.f32 %v8528_v25, %v8517_v1  ;;  %v8948_v4 = vld [vmem:[#allocation6_spill] sm:$0xff] }
 0x3be   : > { %v4720_v37 = vadd.f32 %v8682_v55, %v6221_v40  ;;  %v4711_v39 = vpop.f32.mrb[155].mxu1  ;;  %v8807_v44 = vadd.f32 %v6380_v29, %v4502_v61  ;;  %v4504_v63 = vpop.f32.mrb[91].mxu0  ;;  %v4893_v20 = vmax.f32 %v4717_v47, 0.0  ;;  %v6388_v58 = vadd.f32 %v8528_v25, %v8948_v4 }
 0x3bf   : > { %v4712_v13 = vadd.f32 %v8670_v28, %v4711_v39  ;;  %v4891_v5 = vmax.f32 %v4709_v57, 0.0 }
 0x3c0   : > { %v4894_v48 = vmax.f32 %v4720_v37, 0.0 }
 0x3c1   : > { %v4892_v16 = vmax.f32 %v4712_v13, 0.0 }
 0x3c2   : > { %v6015_v51 = vpack.c.bf16 %v4894_v48, %v4893_v20 }
 0x3c3   : > { %v6010_v2 = vpack.c.bf16 %v4892_v16, %v4891_v5  ;;  %v6224_v60 = vpop.f32.mrb[156].mxu1  ;;  %v4507_v0 = vpop.f32.mrb[92].mxu0  ;;  %v8949_v5 = vld [vmem:[#allocation7_spill] sm:$0xff] }
 0x3c4   : > { %6119 = vst [vmem:[%s8724_s6 + $0x68] sm:$0xff] %v6015_v51   ;;  %v4733_v55 = vadd.f32 %v8703_v17, %v6224_v60  ;;  %v4724_v43 = vpop.f32.mrb[157].mxu1  ;;  %v8817_v28 = vadd.f32 %v6382_v30, %v4507_v0  ;;  %v4509_v14 = vpop.f32.mrb[93].mxu0  ;;  %v8950_v60 = vld [vmem:[#allocation8_spill] sm:$0xff] }
 0x3c5   : > { %6118 = vst [vmem:[%s8724_s6 + $0x60] sm:$0xff] %v6010_v2   ;;  %v4725_v46 = vadd.f32 %v8690_v18, %v4724_v43  ;;  %v6225_v41 = vpop.f32.mrb[158].mxu1  ;;  %v4510_v22 = vpop.f32.mrb[94].mxu0  ;;  %v6386_v18 = vadd.f32 %v8528_v25, %v8947_v21  ;;  %v6392_v0 = vadd.f32 %v8528_v25, %v8950_v60 }
 0x3c6   : > { %v4736_v1 = vadd.f32 %v8707_v19, %v6225_v41  ;;  %v4727_v52 = vpop.f32.mrb[159].mxu1  ;;  %v8821_v38 = vadd.f32 %v6384_v54, %v4510_v22  ;;  %v4512_v17 = vpop.f32.mrb[95].mxu0  ;;  %v4897_v49 = vmax.f32 %v4733_v55, 0.0 }
 0x3c7   : > { %v4728_v15 = vadd.f32 %v8946_v6, %v4727_v52  ;;  %v4895_v7 = vmax.f32 %v4725_v46, 0.0 }
 0x3c8   : > { %v4898_v8 = vmax.f32 %v4736_v1, 0.0 }
 0x3c9   : > { %v4896_v9 = vmax.f32 %v4728_v15, 0.0 }
 0x3ca   : > { %v6025_v31 = vpack.c.bf16 %v4898_v8, %v4897_v49  ;;  %v8951_v8 = vld [vmem:[#allocation9_spill] sm:$0xff] }
 0x3cb   : > { %v6020_v35 = vpack.c.bf16 %v4896_v9, %v4895_v7  ;;  %v6228_v24 = vpop.f32.mrb[160].mxu1  ;;  %v4515_v10 = vpop.f32.mrb[96].mxu0 }
 0x3cc   : > { %6121 = vst [vmem:[%s8724_s6 + $0x78] sm:$0xff] %v6025_v31   ;;  %v4749_v19 = vadd.f32 %v8733_v50, %v6228_v24  ;;  %v4740_v26 = vpop.f32.mrb[161].mxu1  ;;  %v8831_v23 = vadd.f32 %v6386_v18, %v4515_v10  ;;  %v4517_v47 = vpop.f32.mrb[97].mxu0  ;;  %v8952_v18 = vld [vmem:[#allocation10_spill] sm:$0xff] }
 0x3cd   : > { %6120 = vst [vmem:[%s8724_s6 + $0x70] sm:$0xff] %v6020_v35   ;;  %v4741_v11 = vadd.f32 %v8714_v45, %v4740_v26  ;;  %v6229_v29 = vpop.f32.mrb[162].mxu1  ;;  %v4518_v12 = vpop.f32.mrb[98].mxu0  ;;  %v6390_v45 = vadd.f32 %v8528_v25, %v8949_v5  ;;  %v6396_v35 = vadd.f32 %v8528_v25, %v8952_v18 }
 0x3ce   : > { %v4752_v57 = vadd.f32 %v8737_v36, %v6229_v29  ;;  %v4743_v40 = vpop.f32.mrb[163].mxu1  ;;  %v8835_v61 = vadd.f32 %v6388_v58, %v4518_v12  ;;  %v4520_v50 = vpop.f32.mrb[99].mxu0  ;;  %v4901_v39 = vmax.f32 %v4749_v19, 0.0 }
 0x3cf   : > { %v4744_v37 = vadd.f32 %v8718_v59, %v4743_v40  ;;  %v4899_v13 = vmax.f32 %v4741_v11, 0.0 }
 0x3d0   : > { %v4902_v63 = vmax.f32 %v4752_v57, 0.0 }
 0x3d1   : > { %v4900_v20 = vmax.f32 %v4744_v37, 0.0  ;;  %v8953_v37 = vld [vmem:[#allocation11_spill] sm:$0xff] }
 0x3d2   : > { %v6035_v48 = vpack.c.bf16 %v4902_v63, %v4901_v39 }
 0x3d3   : > { %v6030_v16 = vpack.c.bf16 %v4900_v20, %v4899_v13  ;;  %v6232_v51 = vpop.f32.mrb[164].mxu1  ;;  %v4523_v30 = vpop.f32.mrb[100].mxu0 }
 0x3d4   : > { %6123 = vst [vmem:[%s8724_s6 + $0x88] sm:$0xff] %v6035_v48   ;;  %v4765_v36 = vadd.f32 %v8761_v53, %v6232_v51  ;;  %v4756_v2 = vpop.f32.mrb[165].mxu1  ;;  %v8845_v59 = vadd.f32 %v6390_v45, %v4523_v30  ;;  %v4525_v55 = vpop.f32.mrb[101].mxu0  ;;  %v8954_v48 = vld [vmem:[#allocation12_spill] sm:$0xff] }
 0x3d5   : > { %6122 = vst [vmem:[%s8724_s6 + $0x80] sm:$0xff] %v6030_v16   ;;  %v4757_v43 = vadd.f32 %v8747_v33, %v4756_v2  ;;  %v6233_v54 = vpop.f32.mrb[166].mxu1  ;;  %v4526_v14 = vpop.f32.mrb[102].mxu0  ;;  %v6394_v33 = vadd.f32 %v8528_v25, %v8951_v8  ;;  %v6400_v5 = vadd.f32 %v8528_v25, %v8954_v48 }
 0x3d6   : > { %v4768_v46 = vadd.f32 %v8765_v56, %v6233_v54  ;;  %v4759_v41 = vpop.f32.mrb[167].mxu1  ;;  %v8849_v22 = vadd.f32 %v6392_v0, %v4526_v14  ;;  %v4528_v53 = vpop.f32.mrb[103].mxu0  ;;  %v4905_v52 = vmax.f32 %v4765_v36, 0.0 }
 0x3d7   : > { %v4760_v1 = vadd.f32 %v8751_v42, %v4759_v41  ;;  %v4903_v6 = vmax.f32 %v4757_v43, 0.0  ;;  %v8955_v41 = vld [vmem:[#allocation13_spill] sm:$0xff] }
 0x3d8   : > { %v4906_v17 = vmax.f32 %v4768_v46, 0.0  ;;  %v6402_v53 = vadd.f32 %v8528_v25, %v8955_v41 }
 0x3d9   : > { %v4904_v15 = vmax.f32 %v4760_v1, 0.0 }
 0x3da   : > { %v6045_v49 = vpack.c.bf16 %v4906_v17, %v4905_v52 }
 0x3db   : > { %v6040_v7 = vpack.c.bf16 %v4904_v15, %v4903_v6  ;;  %v6236_v9 = vpop.f32.mrb[168].mxu1  ;;  %v4531_v31 = vpop.f32.mrb[104].mxu0  ;;  %v8956_v6 = vld [vmem:[#allocation14_spill] sm:$0xff] }
 0x3dc   : > { %6125 = vst [vmem:[%s8724_s6 + $0x98] sm:$0xff] %v6045_v49   ;;  %v4781_v56 = vadd.f32 %v8789_v34, %v6236_v9  ;;  %v4772_v21 = vpop.f32.mrb[169].mxu1  ;;  %v8859_v42 = vadd.f32 %v6394_v33, %v4531_v31  ;;  %v4533_v24 = vpop.f32.mrb[105].mxu0  ;;  %v6404_v15 = vadd.f32 %v8528_v25, %v8956_v6 }
 0x3dd   : > { %6124 = vst [vmem:[%s8724_s6 + $0x90] sm:$0xff] %v6040_v7   ;;  %v4773_v10 = vadd.f32 %v8775_v27, %v4772_v21  ;;  %v6237_v19 = vpop.f32.mrb[170].mxu1  ;;  %v4534_v26 = vpop.f32.mrb[106].mxu0  ;;  %v6398_v27 = vadd.f32 %v8528_v25, %v8953_v37 }
 0x3de   : > { %v4784_v4 = vadd.f32 %v8793_v62, %v6237_v19  ;;  %v4775_v58 = vpop.f32.mrb[171].mxu1  ;;  %v8863_v47 = vadd.f32 %v6396_v35, %v4534_v26  ;;  %v4536_v34 = vpop.f32.mrb[107].mxu0  ;;  %v4909_v29 = vmax.f32 %v4781_v56, 0.0  ;;  %v8957_v19 = vld [vmem:[#allocation15_spill] sm:$0xff] }
 0x3df   : > { %v4776_v11 = vadd.f32 %v8779_v3, %v4775_v58  ;;  %v4907_v57 = vmax.f32 %v4773_v10, 0.0 }
 0x3e0   : > { %v4910_v12 = vmax.f32 %v4784_v4, 0.0 }
 0x3e1   : > { %v4908_v40 = vmax.f32 %v4776_v11, 0.0 }
 0x3e2   : > { %v6055_v50 = vpack.c.bf16 %v4910_v12, %v4909_v29  ;;  %v8958_v29 = vld [vmem:[#allocation16_spill] sm:$0xff] }
 0x3e3   : > { %v6050_v39 = vpack.c.bf16 %v4908_v40, %v4907_v57  ;;  %v6240_v63 = vpop.f32.mrb[172].mxu1  ;;  %v4539_v13 = vpop.f32.mrb[108].mxu0 }
 0x3e4   : > { %6127 = vst [vmem:[%s8724_s6 + $0xa8] sm:$0xff] %v6055_v50   ;;  %v4797_v62 = vadd.f32 %v8817_v28, %v6240_v63  ;;  %v4788_v20 = vpop.f32.mrb[173].mxu1  ;;  %v6399_v3 = vadd.f32 %v6398_v27, %v4539_v13  ;;  %v4541_v45 = vpop.f32.mrb[109].mxu0 }
 0x3e5   : > { %6126 = vst [vmem:[%s8724_s6 + $0xa0] sm:$0xff] %v6050_v39   ;;  %v4789_v16 = vadd.f32 %v8803_v32, %v4788_v20  ;;  %v6241_v51 = vpop.f32.mrb[174].mxu1  ;;  %v4542_v30 = vpop.f32.mrb[110].mxu0 }
 0x3e6   : > { %v4800_v36 = vadd.f32 %v8821_v38, %v6241_v51  ;;  %v4791_v2 = vpop.f32.mrb[175].mxu1  ;;  %v6401_v60 = vadd.f32 %v6400_v5, %v4542_v30  ;;  %v4544_v0 = vpop.f32.mrb[111].mxu0  ;;  %v4913_v55 = vmax.f32 %v4797_v62, 0.0 }
 0x3e7   : > { %v4792_v28 = vadd.f32 %v8807_v44, %v4791_v2  ;;  %v4911_v54 = vmax.f32 %v4789_v16, 0.0  ;;  %v8959_v16 = vld [vmem:[#allocation17_spill] sm:$0xff] }
 0x3e8   : > { %v4914_v43 = vmax.f32 %v4800_v36, 0.0 }
 0x3e9   : > { %v4912_v14 = vmax.f32 %v4792_v28, 0.0 }
 0x3ea   : > { %v6065_v46 = vpack.c.bf16 %v4914_v43, %v4913_v55 }
 0x3eb   : > { %v6060_v32 = vpack.c.bf16 %v4912_v14, %v4911_v54  ;;  %v6244_v1 = vpop.f32.mrb[176].mxu1  ;;  %v4547_v52 = vpop.f32.mrb[112].mxu0 }
 0x3ec   : > { %6129 = vst [vmem:[%s8724_s6 + $0xb8] sm:$0xff] %v6065_v46   ;;  %v4813_v38 = vadd.f32 %v8845_v59, %v6244_v1  ;;  %v4804_v17 = vpop.f32.mrb[177].mxu1  ;;  %v6403_v44 = vadd.f32 %v6402_v53, %v4547_v52  ;;  %v4549_v49 = vpop.f32.mrb[113].mxu0 }
 0x3ed   : > { %6128 = vst [vmem:[%s8724_s6 + $0xb0] sm:$0xff] %v6060_v32   ;;  %v4805_v8 = vadd.f32 %v8831_v23, %v4804_v17  ;;  %v6245_v33 = vpop.f32.mrb[178].mxu1  ;;  %v4550_v7 = vpop.f32.mrb[114].mxu0  ;;  %v7479_v23 = vld [vmem:[%s8925_s2] ss:$0 sm:$0xff] }
 0x3ee   : > { %v4816_v9 = vadd.f32 %v8849_v22, %v6245_v33  ;;  %v4807_v31 = vpop.f32.mrb[179].mxu1  ;;  %v6405_v56 = vadd.f32 %v6404_v15, %v4550_v7  ;;  %v4552_v21 = vpop.f32.mrb[115].mxu0  ;;  %v4917_v18 = vmax.f32 %v4813_v38, 0.0  ;;  %v6406_v26 = vadd.f32 %v7479_v23, %v8957_v19  ;;  %v8961_v49 = vld [vmem:[#allocation20_spill] sm:$0xff] }
 0x3ef   : > { %v4808_v59 = vadd.f32 %v8835_v61, %v4807_v31  ;;  %v4915_v24 = vmax.f32 %v4805_v8, 0.0  ;;  %v6408_v12 = vadd.f32 %v7479_v23, %v8958_v29  ;;  %v6410_v51 = vadd.f32 %v7479_v23, %v8959_v16  ;;  %v8962_v31 = vld [vmem:[#allocation21_spill] sm:$0xff] }
 0x3f0   : > { %v4918_v35 = vmax.f32 %v4816_v9, 0.0  ;;  %v6414_v8 = vadd.f32 %v7479_v23, %v8961_v49  ;;  %v6416_v21 = vadd.f32 %v7479_v23, %v8962_v31 }
 0x3f1   : > { %v4916_v25 = vmax.f32 %v4808_v59, 0.0 }
 0x3f2   : > { %v6075_v10 = vpack.c.bf16 %v4918_v35, %v4917_v18 }
 0x3f3   : > { %v6070_v4 = vpack.c.bf16 %v4916_v25, %v4915_v24  ;;  %v6248_v58 = vpop.f32.mrb[180].mxu1  ;;  %v4555_v22 = vpop.f32.mrb[116].mxu0 }
 0x3f4   : > { %6131 = vst [vmem:[%s8724_s6 + $0xc8] sm:$0xff] %v6075_v10   ;;  %v4829_v34 = vadd.f32 %v6399_v3, %v6248_v58  ;;  %v4820_v11 = vpop.f32.mrb[181].mxu1  ;;  %v6407_v61 = vadd.f32 %v6406_v26, %v4555_v22  ;;  %v4557_v57 = vpop.f32.mrb[117].mxu0 }
 0x3f5   : > { %6130 = vst [vmem:[%s8724_s6 + $0xc0] sm:$0xff] %v6070_v4   ;;  %v4821_v40 = vadd.f32 %v8859_v42, %v4820_v11  ;;  %v6249_v50 = vpop.f32.mrb[182].mxu1  ;;  %v4558_v37 = vpop.f32.mrb[118].mxu0 }
 0x3f6   : > { %v4832_v27 = vadd.f32 %v6401_v60, %v6249_v50  ;;  %v4823_v39 = vpop.f32.mrb[183].mxu1  ;;  %v6409_v63 = vadd.f32 %v6408_v12, %v4558_v37  ;;  %v4560_v13 = vpop.f32.mrb[119].mxu0  ;;  %v4921_v20 = vmax.f32 %v4829_v34, 0.0  ;;  %v8960_v60 = vld [vmem:[#allocation18_spill] sm:$0xff] }
 0x3f7   : > { %v4824_v62 = vadd.f32 %v8863_v47, %v4823_v39  ;;  %v4919_v5 = vmax.f32 %v4821_v40, 0.0  ;;  %v6412_v28 = vadd.f32 %v7479_v23, %v8960_v60 }
 0x3f8   : > { %v4922_v48 = vmax.f32 %v4832_v27, 0.0 }
 0x3f9   : > { %v4920_v3 = vmax.f32 %v4824_v62, 0.0 }
 0x3fa   : > { %v6085_v45 = vpack.c.bf16 %v4922_v48, %v4921_v20 }
 0x3fb   : > { %v6080_v30 = vpack.c.bf16 %v4920_v3, %v4919_v5  ;;  %v6252_v36 = vpop.f32.mrb[184].mxu1  ;;  %v4563_v42 = vpop.f32.mrb[120].mxu0 }
 0x3fc   : > { %6133 = vst [vmem:[%s8724_s6 + $0xd8] sm:$0xff] %v6085_v45   ;;  %v4845_v2 = vadd.f32 %v6407_v61, %v6252_v36  ;;  %v4836_v0 = vpop.f32.mrb[185].mxu1  ;;  %v6411_v55 = vadd.f32 %v6410_v51, %v4563_v42  ;;  %v4565_v43 = vpop.f32.mrb[121].mxu0 }
 0x3fd   : > { %6132 = vst [vmem:[%s8724_s6 + $0xd0] sm:$0xff] %v6080_v30   ;;  %v4837_v54 = vadd.f32 %v6403_v44, %v4836_v0  ;;  %v6253_v47 = vpop.f32.mrb[186].mxu1  ;;  %v4566_v14 = vpop.f32.mrb[122].mxu0 }
 0x3fe   : > { %v4848_v46 = vadd.f32 %v6409_v63, %v6253_v47  ;;  %v4839_v41 = vpop.f32.mrb[187].mxu1  ;;  %v6413_v53 = vadd.f32 %v6412_v28, %v4566_v14  ;;  %v4568_v32 = vpop.f32.mrb[123].mxu0  ;;  %v4925_v52 = vmax.f32 %v4845_v2, 0.0 }
 0x3ff   : > { %v4840_v1 = vadd.f32 %v6405_v56, %v4839_v41  ;;  %v4923_v17 = vmax.f32 %v4837_v54, 0.0 }
 0x400   : > { %v4926_v38 = vmax.f32 %v4848_v46, 0.0 }
 0x401   : > { %v4924_v6 = vmax.f32 %v4840_v1, 0.0 }
 0x402   : > { %v6095_v15 = vpack.c.bf16 %v4926_v38, %v4925_v52 }
 0x403   : > { %v6090_v33 = vpack.c.bf16 %v4924_v6, %v4923_v17  ;;  %v6256_v7 = vpop.f32.mrb[188].mxu1  ;;  %v4571_v44 = vpop.f32.mrb[124].mxu0 }
 0x404   : > { %6135 = vst [vmem:[%s8724_s6 + $0xe8] sm:$0xff] %v6095_v15   ;;  %v4852_v9 = vpop.f32.mrb[189].mxu1  ;;  %v6415_v59 = vadd.f32 %v6414_v8, %v4571_v44  ;;  %v4573_v18 = vpop.f32.mrb[125].mxu0 }
 0x405   : > { %6134 = vst [vmem:[%s8724_s6 + $0xe0] sm:$0xff] %v6090_v33   ;;  %v4853_v35 = vadd.f32 %v6411_v55, %v4852_v9  ;;  %v6257_v56 = vpop.f32.mrb[190].mxu1  ;;  %v4574_v24 = vpop.f32.mrb[126].mxu0 }
 0x406   : > { %v4855_v25 = vpop.f32.mrb[191].mxu1  ;;  %v4861_v10 = vadd.f32 %v6415_v59, %v6256_v7  ;;  %v6417_v19 = vadd.f32 %v6416_v21, %v4574_v24  ;;  %v4576_v26 = vpop.f32.mrb[127].mxu0 }
 0x407   : > { %v4856_v4 = vadd.f32 %v6413_v53, %v4855_v25  ;;  %v4927_v58 = vmax.f32 %v4853_v35, 0.0 }
 0x408   : > { %v4864_v22 = vadd.f32 %v6417_v19, %v6257_v56  ;;  %v4929_v11 = vmax.f32 %v4861_v10, 0.0 }
 0x409   : > { %v4928_v34 = vmax.f32 %v4856_v4, 0.0 }
 0x40a   : > { %v4930_v29 = vmax.f32 %v4864_v22, 0.0 }
 0x40b   : > { %v6100_v12 = vpack.c.bf16 %v4928_v34, %v4927_v58 }
 0x40c   : > { %v6105_v23 = vpack.c.bf16 %v4930_v29, %v4929_v11 }
 0x40d   : > { %6136 = vst [vmem:[%s8724_s6 + $0xf0] sm:$0xff] %v6100_v12  }
 0x40e   : > { %6137 = vst [vmem:[%s8724_s6 + $0xf8] sm:$0xff] %v6105_v23  }
 0x40f PF: > { %s16_s17 = sadd.s32 1, %s7560_s17   ;;  %s8963_s12 = smov %s7544_s13 }
 0x410   : > { %p13_p9 = scmp.ge.s32.totalorder %s16_s17, 66   ;;  %s8964_s13 = smov %s7548_s14 }
 0x411   : > { %s8965_s14 = smov %s7631_s23  ;;  %s8966_s15 = smov %s7556_s16 }
 0x412   : > { %s8967_s16 = smov %s8969_s19  ;;  %15 = sbr.rel (!%p13_p9) target bundleno = 4 (0x4), region = 78 }
 0x419   :  { %5279 = vsyncpa [#allocation3], 1 }
 0x41a   :  { %5281 = vsyncpa [#allocation3 + $0x1], 1 }

</bundles_post_ra>
